<compile_context>
chip_gen: v7x
topology: tpu7x:2x2x1
jax: 0.10.0
libtpu: 0.0.40
codegen_flags: <defaults>
</compile_context>

<pallas_src>
import math

import jax
import jax.numpy as jnp
from jax.experimental import pallas as pl
from jax.experimental.pallas import tpu as pltpu


MATMUL_DTYPE = jnp.bfloat16   # MXU operand dtype; accumulation stays f32


# --------------------------------------------------------------------------
# In-kernel helpers (operate on values, traced inside the Pallas kernel)
# --------------------------------------------------------------------------
def _dot(a, b):
    """2-D matmul with bf16 operands and f32 accumulation."""
    return jax.lax.dot_general(
        a.astype(MATMUL_DTYPE), b.astype(MATMUL_DTYPE),
        (((1,), (0,)), ((), ())),
        preferred_element_type=jnp.float32)


def _stgcn_layer(x, wt0, wt1, wt2, bt, ln_g, ln_b, wqkv, bqkv, wg_pad, bg,
                 sp, sn, attn_bias, a_big):
    """One AttentionSTGCNLayer on the flat [NT, C] view. Returns [NT, Cout] f32."""
    cout = bt.shape[-1]
    cpad = wg_pad.shape[0]                 # Cout rounded up to a 128-lane block

    # ---- temporal Conv1d (kernel=3, padding=1): time shifts via MXU ----
    # sp/sn are [NT, NT] sub/super-diagonal selectors masked at node boundaries.
    xp = _dot(sp, x)                       # x[t-1] per row (zero at t == 0)
    xn = _dot(sn, x)                       # x[t+1] per row (zero at t == T-1)
    y = _dot(xp, wt0) + _dot(x, wt1) + _dot(xn, wt2) + bt        # [NT, Cout]

    # ---- LayerNorm over channels (single pass, f32) ----
    inv_c = 1.0 / cout
    mu = jnp.sum(y, axis=-1, keepdims=True) * inv_c
    ms = jnp.sum(y * y, axis=-1, keepdims=True) * inv_c
    y = (y - mu) * jax.lax.rsqrt(ms - mu * mu + 1e-5) * ln_g + ln_b

    # ---- fused Q/K/V projection; slices are 128-lane aligned (pad lanes = 0) --
    qkv = _dot(y, wqkv) + bqkv                                   # [NT, 3*CPAD]
    q = qkv[:, 0:cpad]
    k = qkv[:, cpad:2 * cpad]
    v = qkv[:, 2 * cpad:3 * cpad]

    # ---- fused block-diagonal temporal self-attention over [NT, NT] ----
    scale = 1.0 / math.sqrt(cout)
    s = jax.lax.dot_general(
        q.astype(MATMUL_DTYPE), k.astype(MATMUL_DTYPE),
        (((1,), (1,)), ((), ())),                                # q @ k.T
        preferred_element_type=jnp.float32) * scale + attn_bias  # [NT, NT]
    s = s - jnp.max(s, axis=-1, keepdims=True)
    p = jnp.exp(s)
    p = p * pl.reciprocal(jnp.sum(p, axis=-1, keepdims=True), approx=True)
    att = jnp.maximum(_dot(p, v), 0.0)                           # [NT, CPAD], ReLU

    # ---- GCN spatial conv: out = (A_hat (x) I_T) @ (att @ Wg) + bg ----
    h = _dot(att, wg_pad)                                        # [NT, Cout]
    out = _dot(a_big, h) + bg
    return jnp.maximum(out, 0.0)                                 # ReLU


def _make_fused_kernel(n_layers, n_nodes, t_steps):
    """Build the fused forward kernel for a fixed number of STGCN layers."""
    def kernel(*refs):
        x_ref, abig_ref, sp_ref, sn_ref, bias_ref = refs[0:5]
        lrefs = refs[5:5 + 10 * n_layers]
        wo_ref = refs[5 + 10 * n_layers]
        bo_ref = refs[6 + 10 * n_layers]
        o_ref = refs[7 + 10 * n_layers]

        # constants resident in VMEM, loaded once, shared across layers
        a_big = abig_ref[...]              # [NT, NT] bf16  (A_hat (x) I_T)
        sp = sp_ref[...]                   # [NT, NT] bf16  (t-1 shift)
        sn = sn_ref[...]                   # [NT, NT] bf16  (t+1 shift)
        attn_bias = bias_ref[...]          # [NT, NT] f32   (0 / -1e9 block mask)

        x = x_ref[...]                     # [NT, Cin] f32

        for li in range(n_layers):
            largs = [r[...] for r in lrefs[10 * li:10 * li + 10]]
            x = _stgcn_layer(x, *largs, sp=sp, sn=sn,
                             attn_bias=attn_bias, a_big=a_big)

        # readout: mean over time of (x_t @ W + b) == (mean_t x_t) @ W + b
        xm = jnp.mean(x.reshape(n_nodes, t_steps, x.shape[-1]), axis=1)
        o_ref[...] = jax.lax.dot_general(
            xm, wo_ref[...], (((1,), (0,)), ((), ())),
            preferred_element_type=jnp.float32) + bo_ref[...]
    return kernel


# --------------------------------------------------------------------------
# Glue: GCN adjacency normalization (dense PyG GCNConv semantics)
# --------------------------------------------------------------------------
def gcn_adjacency(edge_index, edge_weight, num_nodes):
    # the torch forward softmax-normalizes the edge weights globally first
    w = jax.nn.softmax(edge_weight)
    src, dst = edge_index[0], edge_index[1]
    loop = jnp.arange(num_nodes, dtype=src.dtype)
    src = jnp.concatenate([src, loop])
    dst = jnp.concatenate([dst, loop])
    w = jnp.concatenate([w, jnp.ones((num_nodes,), w.dtype)])
    deg = jnp.zeros((num_nodes,), w.dtype).at[dst].add(w)
    dinv = jnp.where(deg > 0, jax.lax.rsqrt(jnp.maximum(deg, 1e-12)), 0.0)
    norm = dinv[src] * w * dinv[dst]
    a_hat = jnp.zeros((num_nodes, num_nodes), w.dtype).at[dst, src].add(norm)
    return a_hat


# --------------------------------------------------------------------------
# Deterministic parameter init (shapes match the torch module __init__)
# --------------------------------------------------------------------------
def _init_linear(key, fin, fout):
    b = 1.0 / math.sqrt(fin)
    kw, kb = jax.random.split(key)
    w = jax.random.uniform(kw, (fin, fout), jnp.float32, -b, b)   # stored as W.T
    bias = jax.random.uniform(kb, (1, fout), jnp.float32, -b, b)
    return w, bias


def init_layer_params(key, cin, cout):
    ks = jax.random.split(key, 5)
    # temporal conv: xavier_uniform(gain=0.1), bias = 0
    # NOTE: stored as (K, Cin, Cout); torch Conv1d weights [Cout, Cin, K] must be
    # permuted to this layout before import.
    bound = 0.1 * math.sqrt(6.0 / (cin * 3 + cout * 3))
    wt = jax.random.uniform(ks[0], (3, cin, cout), jnp.float32, -bound, bound)
    bt = jnp.zeros((1, cout), jnp.float32)
    ln_g = jnp.ones((1, cout), jnp.float32)
    ln_b = jnp.zeros((1, cout), jnp.float32)
    wq, bq = _init_linear(ks[1], cout, cout)
    wk, bk = _init_linear(ks[2], cout, cout)
    wv, bv = _init_linear(ks[3], cout, cout)
    gb = math.sqrt(6.0 / (cout + cout))                      # glorot for GCN weight
    wg = jax.random.uniform(ks[4], (cout, cout), jnp.float32, -gb, gb)
    bg = jnp.zeros((1, cout), jnp.float32)                   # GCN bias init = zeros
    return dict(wt=wt, bt=bt, ln_g=ln_g, ln_b=ln_b, wq=wq, bq=bq,
                wk=wk, bk=bk, wv=wv, bv=bv, wg=wg, bg=bg)


def init_model_params(key, in_channels, hidden_channels, out_channels, num_layers=3):
    keys = jax.random.split(key, num_layers)
    params = {
        "input_layer": init_layer_params(keys[0], in_channels, hidden_channels),
        "hidden_layers": [
            init_layer_params(keys[1 + i], hidden_channels, hidden_channels)
            for i in range(num_layers - 2)
        ],
    }
    w_out, b_out = _init_linear(keys[-1], hidden_channels, out_channels)
    params["w_out"], params["b_out"] = w_out, b_out
    return params


# --------------------------------------------------------------------------
# Full forward (mirrors AttentionSTGCN.forward) — ONE fused pallas_call
# --------------------------------------------------------------------------
def attention_stgcn_forward(params, x_tnc, edge_index, edge_weight):
    # x_tnc: [T, N, Cin]  == torch.stack([g.x for g in graph_sequence])
    T, N, Cin = x_tnc.shape
    NT = N * T
    a_hat = gcn_adjacency(edge_index, edge_weight, N)             # [N, N] f32
    # spatial mix applied on the flat [NT, C] view: A_big = A_hat (x) I_T
    a_big = jnp.kron(a_hat, jnp.eye(T, dtype=a_hat.dtype)).astype(MATMUL_DTYPE)

    x = jnp.transpose(x_tnc, (1, 0, 2)).reshape(NT, Cin)          # [NT, Cin]

    # +-1 time-shift selector matrices (masked at per-node block boundaries)
    idx = jnp.arange(NT)
    t_idx = idx % T
    node_idx = idx // T
    sp = ((idx[:, None] == idx[None, :] + 1) &
          (t_idx[:, None] != 0)).astype(MATMUL_DTYPE)             # selects x[t-1]
    sn = ((idx[:, None] + 1 == idx[None, :]) &
          (t_idx[:, None] != T - 1)).astype(MATMUL_DTYPE)         # selects x[t+1]
    # additive block-diagonal attention mask (0 inside a node's TxT block)
    attn_bias = jnp.where(node_idx[:, None] == node_idx[None, :],
                          0.0, -1e9).astype(jnp.float32)

    layer_params = [params["input_layer"]] + list(params["hidden_layers"])
    n_layers = len(layer_params)
    chid = layer_params[0]["wt"].shape[-1]
    cout = params["w_out"].shape[-1]
    cpad = ((chid + 127) // 128) * 128                            # lane-aligned C
    pad_c = cpad - chid

    inputs = [x, a_big, sp, sn, attn_bias]
    cins = []
    for lp in layer_params:
        cin_l = lp["wt"].shape[1]
        cins.append(cin_l)
        wt0, wt1, wt2 = (lp["wt"][k].astype(MATMUL_DTYPE) for k in range(3))
        # pad each of Q/K/V to a full 128-lane block (zero pad => q/k/v pad = 0)
        wqkv = jnp.concatenate(
            [jnp.pad(lp[w], ((0, 0), (0, pad_c))) for w in ("wq", "wk", "wv")],
            axis=-1).astype(MATMUL_DTYPE)                          # [C, 3*CPAD]
        bqkv = jnp.concatenate(
            [jnp.pad(lp[b], ((0, 0), (0, pad_c))) for b in ("bq", "bk", "bv")],
            axis=-1)                                               # [1, 3*CPAD] f32
        wg_pad = jnp.pad(lp["wg"], ((0, pad_c), (0, 0))).astype(MATMUL_DTYPE)
        inputs += [wt0, wt1, wt2, lp["bt"], lp["ln_g"], lp["ln_b"],
                   wqkv, bqkv, wg_pad, lp["bg"]]
    inputs += [params["w_out"], params["b_out"]]

    # ---- advisory cost estimate ----
    flops, trans = 0, 0
    for cin_l in cins:
        flops += 2 * NT * NT * cin_l * 2            # time-shift matmuls
        flops += 3 * 2 * NT * cin_l * chid          # temporal-conv taps
        flops += 2 * NT * chid * 3 * cpad           # fused QKV
        flops += 2 * NT * NT * cpad * 2             # scores + attention*V
        flops += 2 * NT * cpad * chid               # GCN weight
        flops += 2 * NT * NT * chid                 # (A_hat (x) I_T) spatial mix
        trans += NT * NT + 2 * NT                   # exp + rsqrt + reciprocal
    flops += 2 * N * chid * cout
    in_bytes = sum(math.prod(a.shape) * a.dtype.itemsize for a in inputs)
    out_bytes = N * cout * 4

    # ---- VMEM budget from the actual footprint (well under v7x's 64 MiB) ----
    act_bytes = 16 * NT * max(NT, 3 * cpad) * 4     # live f32 temporaries, generous
    vmem_limit = int(min(48 * 1024 * 1024,
                         max(4 * 1024 * 1024, 2 * (in_bytes + act_bytes))))

    vmem_spec = pl.BlockSpec(memory_space=pltpu.MemorySpace.VMEM)
    # TODO(synk): on v7x (2 TCs/chip) and for large N, add a node-block grid axis
    # with dimension_semantics=("parallel",) and stream A_big column tiles; at
    # N=16 the whole problem fits one core's VMEM so a single invocation wins.
    return pl.pallas_call(
        _make_fused_kernel(n_layers, N, T),
        out_shape=jax.ShapeDtypeStruct((N, cout), jnp.float32),
        in_specs=[vmem_spec for _ in inputs],
        out_specs=vmem_spec,
        compiler_params=pltpu.CompilerParams(vmem_limit_bytes=vmem_limit),
        cost_estimate=pl.CostEstimate(
            flops=int(flops), transcendentals=int(trans),
            bytes_accessed=int(in_bytes + out_bytes)),
    )(*inputs)


# --------------------------------------------------------------------------
if __name__ == "__main__":
    # Small deterministic problem: T=8 time steps, N=16 nodes (N*T = 128 = one
    # MXU tile), in_channels=4, hidden_channels=32, out_channels=8, 3 layers.
    T, N, CIN, CHID, COUT, NUM_LAYERS = 8, 16, 4, 32, 8, 3

    root = jax.random.PRNGKey(0)
    k_x, k_w, k_p = jax.random.split(root, 3)

    x_seq = jax.random.normal(k_x, (T, N, CIN), jnp.float32)

    # simple bidirectional ring graph, shared across the sequence
    fwd_src = jnp.arange(N, dtype=jnp.int32)
    fwd_dst = (fwd_src + 1) % N
    edge_index = jnp.stack([
        jnp.concatenate([fwd_src, fwd_dst]),
        jnp.concatenate([fwd_dst, fwd_src]),
    ])                                                       # [2, 2N]
    edge_weight = jax.random.uniform(k_w, (2 * N,), jnp.float32)

    params = init_model_params(k_p, CIN, CHID, COUT, NUM_LAYERS)

    fwd = jax.jit(attention_stgcn_forward)
    out = fwd(params, x_seq, edge_index, edge_weight)
    jax.block_until_ready(out)

    assert out.shape == (N, COUT)
    assert bool(jnp.all(jnp.isfinite(out)))
    print("KERNEL_OK")
</pallas_src>

<mosaic_0001>
module attributes {stable_mosaic.version = 11 : i64} {
  func.func private @main(%arg0: i32) attributes {dimension_semantics = [#tpu.dimension_semantics<core_parallel>], iteration_bounds = array<i64: 2>, tpu.core_type = #tpu.core_type<sc_scalar_subcore>, window_params = []} {
    return
  }
}

module attributes {stable_mosaic.version = 11 : i64} {
  func.func private @main(%arg0: i32) attributes {dimension_semantics = [#tpu.dimension_semantics<core_parallel>], iteration_bounds = array<i64: 2>, tpu.core_type = #tpu.core_type<sc_scalar_subcore>, window_params = []} {
    return
  }
}

module attributes {stable_mosaic.version = 11 : i64} {
  func.func @kernel(%arg0: memref<128x4xf32, #tpu.memory_space<vmem>>, %arg1: memref<128x128xbf16, #tpu.memory_space<vmem>>, %arg2: memref<128x128xbf16, #tpu.memory_space<vmem>>, %arg3: memref<128x128xbf16, #tpu.memory_space<vmem>>, %arg4: memref<128x128xf32, #tpu.memory_space<vmem>>, %arg5: memref<4x32xbf16, #tpu.memory_space<vmem>>, %arg6: memref<4x32xbf16, #tpu.memory_space<vmem>>, %arg7: memref<4x32xbf16, #tpu.memory_space<vmem>>, %arg8: memref<1x32xf32, #tpu.memory_space<vmem>>, %arg9: memref<1x32xf32, #tpu.memory_space<vmem>>, %arg10: memref<1x32xf32, #tpu.memory_space<vmem>>, %arg11: memref<32x384xbf16, #tpu.memory_space<vmem>>, %arg12: memref<1x384xf32, #tpu.memory_space<vmem>>, %arg13: memref<128x32xbf16, #tpu.memory_space<vmem>>, %arg14: memref<1x32xf32, #tpu.memory_space<vmem>>, %arg15: memref<32x32xbf16, #tpu.memory_space<vmem>>, %arg16: memref<32x32xbf16, #tpu.memory_space<vmem>>, %arg17: memref<32x32xbf16, #tpu.memory_space<vmem>>, %arg18: memref<1x32xf32, #tpu.memory_space<vmem>>, %arg19: memref<1x32xf32, #tpu.memory_space<vmem>>, %arg20: memref<1x32xf32, #tpu.memory_space<vmem>>, %arg21: memref<32x384xbf16, #tpu.memory_space<vmem>>, %arg22: memref<1x384xf32, #tpu.memory_space<vmem>>, %arg23: memref<128x32xbf16, #tpu.memory_space<vmem>>, %arg24: memref<1x32xf32, #tpu.memory_space<vmem>>, %arg25: memref<32x8xf32, #tpu.memory_space<vmem>>, %arg26: memref<1x8xf32, #tpu.memory_space<vmem>>, %arg27: memref<16x8xf32, #tpu.memory_space<vmem>>) attributes {dimension_semantics = [], scalar_prefetch = 0 : i64, scratch_operands = 0 : i64, tpu.core_type = #tpu.core_type<tc>} {
    %c0 = arith.constant 0 : index
    %c0_0 = arith.constant 0 : index
    %0 = vector.load %arg1[%c0, %c0_0] : memref<128x128xbf16, #tpu.memory_space<vmem>>, vector<128x128xbf16>
    %c0_1 = arith.constant 0 : index
    %c0_2 = arith.constant 0 : index
    %1 = vector.load %arg2[%c0_1, %c0_2] : memref<128x128xbf16, #tpu.memory_space<vmem>>, vector<128x128xbf16>
    %c0_3 = arith.constant 0 : index
    %c0_4 = arith.constant 0 : index
    %2 = vector.load %arg3[%c0_3, %c0_4] : memref<128x128xbf16, #tpu.memory_space<vmem>>, vector<128x128xbf16>
    %c0_5 = arith.constant 0 : index
    %c0_6 = arith.constant 0 : index
    %3 = vector.load %arg4[%c0_5, %c0_6] : memref<128x128xf32, #tpu.memory_space<vmem>>, vector<128x128xf32>
    %c0_7 = arith.constant 0 : index
    %c0_8 = arith.constant 0 : index
    %4 = vector.load %arg0[%c0_7, %c0_8] : memref<128x4xf32, #tpu.memory_space<vmem>>, vector<128x4xf32>
    %c0_9 = arith.constant 0 : index
    %c0_10 = arith.constant 0 : index
    %5 = vector.load %arg5[%c0_9, %c0_10] : memref<4x32xbf16, #tpu.memory_space<vmem>>, vector<4x32xbf16>
    %c0_11 = arith.constant 0 : index
    %c0_12 = arith.constant 0 : index
    %6 = vector.load %arg6[%c0_11, %c0_12] : memref<4x32xbf16, #tpu.memory_space<vmem>>, vector<4x32xbf16>
    %c0_13 = arith.constant 0 : index
    %c0_14 = arith.constant 0 : index
    %7 = vector.load %arg7[%c0_13, %c0_14] : memref<4x32xbf16, #tpu.memory_space<vmem>>, vector<4x32xbf16>
    %c0_15 = arith.constant 0 : index
    %c0_16 = arith.constant 0 : index
    %8 = vector.load %arg8[%c0_15, %c0_16] : memref<1x32xf32, #tpu.memory_space<vmem>>, vector<1x32xf32>
    %c0_17 = arith.constant 0 : index
    %c0_18 = arith.constant 0 : index
    %9 = vector.load %arg9[%c0_17, %c0_18] : memref<1x32xf32, #tpu.memory_space<vmem>>, vector<1x32xf32>
    %c0_19 = arith.constant 0 : index
    %c0_20 = arith.constant 0 : index
    %10 = vector.load %arg10[%c0_19, %c0_20] : memref<1x32xf32, #tpu.memory_space<vmem>>, vector<1x32xf32>
    %c0_21 = arith.constant 0 : index
    %c0_22 = arith.constant 0 : index
    %11 = vector.load %arg11[%c0_21, %c0_22] : memref<32x384xbf16, #tpu.memory_space<vmem>>, vector<32x384xbf16>
    %c0_23 = arith.constant 0 : index
    %c0_24 = arith.constant 0 : index
    %12 = vector.load %arg12[%c0_23, %c0_24] : memref<1x384xf32, #tpu.memory_space<vmem>>, vector<1x384xf32>
    %c0_25 = arith.constant 0 : index
    %c0_26 = arith.constant 0 : index
    %13 = vector.load %arg13[%c0_25, %c0_26] : memref<128x32xbf16, #tpu.memory_space<vmem>>, vector<128x32xbf16>
    %c0_27 = arith.constant 0 : index
    %c0_28 = arith.constant 0 : index
    %14 = vector.load %arg14[%c0_27, %c0_28] : memref<1x32xf32, #tpu.memory_space<vmem>>, vector<1x32xf32>
    %15 = arith.truncf %4 : vector<128x4xf32> to vector<128x4xbf16>
    %cst = arith.constant dense<0.000000e+00> : vector<128x4xf32>
    %16 = tpu.matmul %1, %15, %cst {dimension_numbers = #tpu.dot_dimension_numbers<[1], [0], [0], [1], [0, 0, 1, 1], [], []>} : vector<128x128xbf16>, vector<128x4xbf16>, vector<128x4xf32> -> vector<128x4xf32>
    %17 = arith.truncf %4 : vector<128x4xf32> to vector<128x4xbf16>
    %cst_29 = arith.constant dense<0.000000e+00> : vector<128x4xf32>
    %18 = tpu.matmul %2, %17, %cst_29 {dimension_numbers = #tpu.dot_dimension_numbers<[1], [0], [0], [1], [0, 0, 1, 1], [], []>} : vector<128x128xbf16>, vector<128x4xbf16>, vector<128x4xf32> -> vector<128x4xf32>
    %19 = arith.truncf %16 : vector<128x4xf32> to vector<128x4xbf16>
    %cst_30 = arith.constant dense<0.000000e+00> : vector<128x32xf32>
    %20 = tpu.matmul %19, %5, %cst_30 {dimension_numbers = #tpu.dot_dimension_numbers<[1], [0], [0], [1], [0, 0, 1, 1], [], []>} : vector<128x4xbf16>, vector<4x32xbf16>, vector<128x32xf32> -> vector<128x32xf32>
    %21 = arith.truncf %4 : vector<128x4xf32> to vector<128x4xbf16>
    %cst_31 = arith.constant dense<0.000000e+00> : vector<128x32xf32>
    %22 = tpu.matmul %21, %6, %cst_31 {dimension_numbers = #tpu.dot_dimension_numbers<[1], [0], [0], [1], [0, 0, 1, 1], [], []>} : vector<128x4xbf16>, vector<4x32xbf16>, vector<128x32xf32> -> vector<128x32xf32>
    %23 = arith.addf %20, %22 : vector<128x32xf32>
    %24 = arith.truncf %18 : vector<128x4xf32> to vector<128x4xbf16>
    %cst_32 = arith.constant dense<0.000000e+00> : vector<128x32xf32>
    %25 = tpu.matmul %24, %7, %cst_32 {dimension_numbers = #tpu.dot_dimension_numbers<[1], [0], [0], [1], [0, 0, 1, 1], [], []>} : vector<128x4xbf16>, vector<4x32xbf16>, vector<128x32xf32> -> vector<128x32xf32>
    %26 = arith.addf %23, %25 : vector<128x32xf32>
    %27 = vector.broadcast %8 : vector<1x32xf32> to vector<128x32xf32>
    %28 = arith.addf %26, %27 : vector<128x32xf32>
    %cst_33 = arith.constant dense<0.000000e+00> : vector<128xf32>
    %29 = vector.multi_reduction <add>, %28, %cst_33 [1] : vector<128x32xf32> to vector<128xf32>
    %30 = vector.shape_cast %29 : vector<128xf32> to vector<128x1xf32>
    %cst_34 = arith.constant 3.125000e-02 : f32
    %31 = vector.broadcast %cst_34 : f32 to vector<128x1xf32>
    %32 = arith.mulf %30, %31 : vector<128x1xf32>
    %33 = arith.mulf %28, %28 : vector<128x32xf32>
    %cst_35 = arith.constant dense<0.000000e+00> : vector<128xf32>
    %34 = vector.multi_reduction <add>, %33, %cst_35 [1] : vector<128x32xf32> to vector<128xf32>
    %35 = vector.shape_cast %34 : vector<128xf32> to vector<128x1xf32>
    %cst_36 = arith.constant 3.125000e-02 : f32
    %36 = vector.broadcast %cst_36 : f32 to vector<128x1xf32>
    %37 = arith.mulf %35, %36 : vector<128x1xf32>
    %38 = vector.broadcast %32 : vector<128x1xf32> to vector<128x32xf32>
    %39 = arith.subf %28, %38 : vector<128x32xf32>
    %40 = arith.mulf %32, %32 : vector<128x1xf32>
    %41 = arith.subf %37, %40 : vector<128x1xf32>
    %cst_37 = arith.constant 9.99999974E-6 : f32
    %42 = vector.broadcast %cst_37 : f32 to vector<128x1xf32>
    %43 = arith.addf %41, %42 : vector<128x1xf32>
    %44 = math.rsqrt %43 : vector<128x1xf32>
    %45 = vector.broadcast %44 : vector<128x1xf32> to vector<128x32xf32>
    %46 = arith.mulf %39, %45 : vector<128x32xf32>
    %47 = vector.broadcast %9 : vector<1x32xf32> to vector<128x32xf32>
    %48 = arith.mulf %46, %47 : vector<128x32xf32>
    %49 = vector.broadcast %10 : vector<1x32xf32> to vector<128x32xf32>
    %50 = arith.addf %48, %49 : vector<128x32xf32>
    %51 = arith.truncf %50 : vector<128x32xf32> to vector<128x32xbf16>
    %cst_38 = arith.constant dense<0.000000e+00> : vector<128x384xf32>
    %52 = tpu.matmul %51, %11, %cst_38 {dimension_numbers = #tpu.dot_dimension_numbers<[1], [0], [0], [1], [0, 0, 1, 1], [], []>} : vector<128x32xbf16>, vector<32x384xbf16>, vector<128x384xf32> -> vector<128x384xf32>
    %53 = vector.broadcast %12 : vector<1x384xf32> to vector<128x384xf32>
    %54 = arith.addf %52, %53 : vector<128x384xf32>
    %55 = vector.extract_strided_slice %54 {offsets = [0, 0], sizes = [128, 128], strides = [1, 1]} : vector<128x384xf32> to vector<128x128xf32>
    %56 = vector.extract_strided_slice %54 {offsets = [0, 128], sizes = [128, 128], strides = [1, 1]} : vector<128x384xf32> to vector<128x128xf32>
    %57 = vector.extract_strided_slice %54 {offsets = [0, 256], sizes = [128, 128], strides = [1, 1]} : vector<128x384xf32> to vector<128x128xf32>
    %58 = arith.truncf %55 : vector<128x128xf32> to vector<128x128xbf16>
    %59 = arith.truncf %56 : vector<128x128xf32> to vector<128x128xbf16>
    %cst_39 = arith.constant dense<0.000000e+00> : vector<128x128xf32>
    %60 = tpu.matmul %58, %59, %cst_39 {dimension_numbers = #tpu.dot_dimension_numbers<[1], [1], [0], [0], [0, 0, 1, 0], [], []>} : vector<128x128xbf16>, vector<128x128xbf16>, vector<128x128xf32> -> vector<128x128xf32>
    %cst_40 = arith.constant 0.176776692 : f32
    %61 = vector.broadcast %cst_40 : f32 to vector<128x128xf32>
    %62 = arith.mulf %60, %61 : vector<128x128xf32>
    %63 = arith.addf %62, %3 : vector<128x128xf32>
    %cst_41 = arith.constant dense<0xFF800000> : vector<128xf32>
    %64 = vector.multi_reduction <maximumf>, %63, %cst_41 [1] : vector<128x128xf32> to vector<128xf32>
    %65 = vector.shape_cast %64 : vector<128xf32> to vector<128x1xf32>
    %66 = vector.broadcast %65 : vector<128x1xf32> to vector<128x128xf32>
    %67 = arith.subf %63, %66 : vector<128x128xf32>
    %68 = math.exp %67 : vector<128x128xf32>
    %cst_42 = arith.constant dense<0.000000e+00> : vector<128xf32>
    %69 = vector.multi_reduction <add>, %68, %cst_42 [1] : vector<128x128xf32> to vector<128xf32>
    %70 = vector.shape_cast %69 : vector<128xf32> to vector<128x1xf32>
    %71 = tpu.reciprocal %70 {approx = true} : vector<128x1xf32> -> vector<128x1xf32>
    %72 = vector.broadcast %71 : vector<128x1xf32> to vector<128x128xf32>
    %73 = arith.mulf %68, %72 : vector<128x128xf32>
    %74 = arith.truncf %73 : vector<128x128xf32> to vector<128x128xbf16>
    %75 = arith.truncf %57 : vector<128x128xf32> to vector<128x128xbf16>
    %cst_43 = arith.constant dense<0.000000e+00> : vector<128x128xf32>
    %76 = tpu.matmul %74, %75, %cst_43 {dimension_numbers = #tpu.dot_dimension_numbers<[1], [0], [0], [1], [0, 0, 1, 1], [], []>} : vector<128x128xbf16>, vector<128x128xbf16>, vector<128x128xf32> -> vector<128x128xf32>
    %cst_44 = arith.constant 0.000000e+00 : f32
    %77 = vector.broadcast %cst_44 : f32 to vector<128x128xf32>
    %78 = arith.maximumf %76, %77 : vector<128x128xf32>
    %79 = arith.truncf %78 : vector<128x128xf32> to vector<128x128xbf16>
    %cst_45 = arith.constant dense<0.000000e+00> : vector<128x32xf32>
    %80 = tpu.matmul %79, %13, %cst_45 {dimension_numbers = #tpu.dot_dimension_numbers<[1], [0], [0], [1], [0, 0, 1, 1], [], []>} : vector<128x128xbf16>, vector<128x32xbf16>, vector<128x32xf32> -> vector<128x32xf32>
    %81 = arith.truncf %80 : vector<128x32xf32> to vector<128x32xbf16>
    %cst_46 = arith.constant dense<0.000000e+00> : vector<128x32xf32>
    %82 = tpu.matmul %0, %81, %cst_46 {dimension_numbers = #tpu.dot_dimension_numbers<[1], [0], [0], [1], [0, 0, 1, 1], [], []>} : vector<128x128xbf16>, vector<128x32xbf16>, vector<128x32xf32> -> vector<128x32xf32>
    %83 = vector.broadcast %14 : vector<1x32xf32> to vector<128x32xf32>
    %84 = arith.addf %82, %83 : vector<128x32xf32>
    %cst_47 = arith.constant 0.000000e+00 : f32
    %85 = vector.broadcast %cst_47 : f32 to vector<128x32xf32>
    %86 = arith.maximumf %84, %85 : vector<128x32xf32>
    %c0_48 = arith.constant 0 : index
    %c0_49 = arith.constant 0 : index
    %87 = vector.load %arg15[%c0_48, %c0_49] : memref<32x32xbf16, #tpu.memory_space<vmem>>, vector<32x32xbf16>
    %c0_50 = arith.constant 0 : index
    %c0_51 = arith.constant 0 : index
    %88 = vector.load %arg16[%c0_50, %c0_51] : memref<32x32xbf16, #tpu.memory_space<vmem>>, vector<32x32xbf16>
    %c0_52 = arith.constant 0 : index
    %c0_53 = arith.constant 0 : index
    %89 = vector.load %arg17[%c0_52, %c0_53] : memref<32x32xbf16, #tpu.memory_space<vmem>>, vector<32x32xbf16>
    %c0_54 = arith.constant 0 : index
    %c0_55 = arith.constant 0 : index
    %90 = vector.load %arg18[%c0_54, %c0_55] : memref<1x32xf32, #tpu.memory_space<vmem>>, vector<1x32xf32>
    %c0_56 = arith.constant 0 : index
    %c0_57 = arith.constant 0 : index
    %91 = vector.load %arg19[%c0_56, %c0_57] : memref<1x32xf32, #tpu.memory_space<vmem>>, vector<1x32xf32>
    %c0_58 = arith.constant 0 : index
    %c0_59 = arith.constant 0 : index
    %92 = vector.load %arg20[%c0_58, %c0_59] : memref<1x32xf32, #tpu.memory_space<vmem>>, vector<1x32xf32>
    %c0_60 = arith.constant 0 : index
    %c0_61 = arith.constant 0 : index
    %93 = vector.load %arg21[%c0_60, %c0_61] : memref<32x384xbf16, #tpu.memory_space<vmem>>, vector<32x384xbf16>
    %c0_62 = arith.constant 0 : index
    %c0_63 = arith.constant 0 : index
    %94 = vector.load %arg22[%c0_62, %c0_63] : memref<1x384xf32, #tpu.memory_space<vmem>>, vector<1x384xf32>
    %c0_64 = arith.constant 0 : index
    %c0_65 = arith.constant 0 : index
    %95 = vector.load %arg23[%c0_64, %c0_65] : memref<128x32xbf16, #tpu.memory_space<vmem>>, vector<128x32xbf16>
    %c0_66 = arith.constant 0 : index
    %c0_67 = arith.constant 0 : index
    %96 = vector.load %arg24[%c0_66, %c0_67] : memref<1x32xf32, #tpu.memory_space<vmem>>, vector<1x32xf32>
    %97 = arith.truncf %86 : vector<128x32xf32> to vector<128x32xbf16>
    %cst_68 = arith.constant dense<0.000000e+00> : vector<128x32xf32>
    %98 = tpu.matmul %1, %97, %cst_68 {dimension_numbers = #tpu.dot_dimension_numbers<[1], [0], [0], [1], [0, 0, 1, 1], [], []>} : vector<128x128xbf16>, vector<128x32xbf16>, vector<128x32xf32> -> vector<128x32xf32>
    %99 = arith.truncf %86 : vector<128x32xf32> to vector<128x32xbf16>
    %cst_69 = arith.constant dense<0.000000e+00> : vector<128x32xf32>
    %100 = tpu.matmul %2, %99, %cst_69 {dimension_numbers = #tpu.dot_dimension_numbers<[1], [0], [0], [1], [0, 0, 1, 1], [], []>} : vector<128x128xbf16>, vector<128x32xbf16>, vector<128x32xf32> -> vector<128x32xf32>
    %101 = arith.truncf %98 : vector<128x32xf32> to vector<128x32xbf16>
    %cst_70 = arith.constant dense<0.000000e+00> : vector<128x32xf32>
    %102 = tpu.matmul %101, %87, %cst_70 {dimension_numbers = #tpu.dot_dimension_numbers<[1], [0], [0], [1], [0, 0, 1, 1], [], []>} : vector<128x32xbf16>, vector<32x32xbf16>, vector<128x32xf32> -> vector<128x32xf32>
    %103 = arith.truncf %86 : vector<128x32xf32> to vector<128x32xbf16>
    %cst_71 = arith.constant dense<0.000000e+00> : vector<128x32xf32>
    %104 = tpu.matmul %103, %88, %cst_71 {dimension_numbers = #tpu.dot_dimension_numbers<[1], [0], [0], [1], [0, 0, 1, 1], [], []>} : vector<128x32xbf16>, vector<32x32xbf16>, vector<128x32xf32> -> vector<128x32xf32>
    %105 = arith.addf %102, %104 : vector<128x32xf32>
    %106 = arith.truncf %100 : vector<128x32xf32> to vector<128x32xbf16>
    %cst_72 = arith.constant dense<0.000000e+00> : vector<128x32xf32>
    %107 = tpu.matmul %106, %89, %cst_72 {dimension_numbers = #tpu.dot_dimension_numbers<[1], [0], [0], [1], [0, 0, 1, 1], [], []>} : vector<128x32xbf16>, vector<32x32xbf16>, vector<128x32xf32> -> vector<128x32xf32>
    %108 = arith.addf %105, %107 : vector<128x32xf32>
    %109 = vector.broadcast %90 : vector<1x32xf32> to vector<128x32xf32>
    %110 = arith.addf %108, %109 : vector<128x32xf32>
    %cst_73 = arith.constant dense<0.000000e+00> : vector<128xf32>
    %111 = vector.multi_reduction <add>, %110, %cst_73 [1] : vector<128x32xf32> to vector<128xf32>
    %112 = vector.shape_cast %111 : vector<128xf32> to vector<128x1xf32>
    %cst_74 = arith.constant 3.125000e-02 : f32
    %113 = vector.broadcast %cst_74 : f32 to vector<128x1xf32>
    %114 = arith.mulf %112, %113 : vector<128x1xf32>
    %115 = arith.mulf %110, %110 : vector<128x32xf32>
    %cst_75 = arith.constant dense<0.000000e+00> : vector<128xf32>
    %116 = vector.multi_reduction <add>, %115, %cst_75 [1] : vector<128x32xf32> to vector<128xf32>
    %117 = vector.shape_cast %116 : vector<128xf32> to vector<128x1xf32>
    %cst_76 = arith.constant 3.125000e-02 : f32
    %118 = vector.broadcast %cst_76 : f32 to vector<128x1xf32>
    %119 = arith.mulf %117, %118 : vector<128x1xf32>
    %120 = vector.broadcast %114 : vector<128x1xf32> to vector<128x32xf32>
    %121 = arith.subf %110, %120 : vector<128x32xf32>
    %122 = arith.mulf %114, %114 : vector<128x1xf32>
    %123 = arith.subf %119, %122 : vector<128x1xf32>
    %cst_77 = arith.constant 9.99999974E-6 : f32
    %124 = vector.broadcast %cst_77 : f32 to vector<128x1xf32>
    %125 = arith.addf %123, %124 : vector<128x1xf32>
    %126 = math.rsqrt %125 : vector<128x1xf32>
    %127 = vector.broadcast %126 : vector<128x1xf32> to vector<128x32xf32>
    %128 = arith.mulf %121, %127 : vector<128x32xf32>
    %129 = vector.broadcast %91 : vector<1x32xf32> to vector<128x32xf32>
    %130 = arith.mulf %128, %129 : vector<128x32xf32>
    %131 = vector.broadcast %92 : vector<1x32xf32> to vector<128x32xf32>
    %132 = arith.addf %130, %131 : vector<128x32xf32>
    %133 = arith.truncf %132 : vector<128x32xf32> to vector<128x32xbf16>
    %cst_78 = arith.constant dense<0.000000e+00> : vector<128x384xf32>
    %134 = tpu.matmul %133, %93, %cst_78 {dimension_numbers = #tpu.dot_dimension_numbers<[1], [0], [0], [1], [0, 0, 1, 1], [], []>} : vector<128x32xbf16>, vector<32x384xbf16>, vector<128x384xf32> -> vector<128x384xf32>
    %135 = vector.broadcast %94 : vector<1x384xf32> to vector<128x384xf32>
    %136 = arith.addf %134, %135 : vector<128x384xf32>
    %137 = vector.extract_strided_slice %136 {offsets = [0, 0], sizes = [128, 128], strides = [1, 1]} : vector<128x384xf32> to vector<128x128xf32>
    %138 = vector.extract_strided_slice %136 {offsets = [0, 128], sizes = [128, 128], strides = [1, 1]} : vector<128x384xf32> to vector<128x128xf32>
    %139 = vector.extract_strided_slice %136 {offsets = [0, 256], sizes = [128, 128], strides = [1, 1]} : vector<128x384xf32> to vector<128x128xf32>
    %140 = arith.truncf %137 : vector<128x128xf32> to vector<128x128xbf16>
    %141 = arith.truncf %138 : vector<128x128xf32> to vector<128x128xbf16>
    %cst_79 = arith.constant dense<0.000000e+00> : vector<128x128xf32>
    %142 = tpu.matmul %140, %141, %cst_79 {dimension_numbers = #tpu.dot_dimension_numbers<[1], [1], [0], [0], [0, 0, 1, 0], [], []>} : vector<128x128xbf16>, vector<128x128xbf16>, vector<128x128xf32> -> vector<128x128xf32>
    %cst_80 = arith.constant 0.176776692 : f32
    %143 = vector.broadcast %cst_80 : f32 to vector<128x128xf32>
    %144 = arith.mulf %142, %143 : vector<128x128xf32>
    %145 = arith.addf %144, %3 : vector<128x128xf32>
    %cst_81 = arith.constant dense<0xFF800000> : vector<128xf32>
    %146 = vector.multi_reduction <maximumf>, %145, %cst_81 [1] : vector<128x128xf32> to vector<128xf32>
    %147 = vector.shape_cast %146 : vector<128xf32> to vector<128x1xf32>
    %148 = vector.broadcast %147 : vector<128x1xf32> to vector<128x128xf32>
    %149 = arith.subf %145, %148 : vector<128x128xf32>
    %150 = math.exp %149 : vector<128x128xf32>
    %cst_82 = arith.constant dense<0.000000e+00> : vector<128xf32>
    %151 = vector.multi_reduction <add>, %150, %cst_82 [1] : vector<128x128xf32> to vector<128xf32>
    %152 = vector.shape_cast %151 : vector<128xf32> to vector<128x1xf32>
    %153 = tpu.reciprocal %152 {approx = true} : vector<128x1xf32> -> vector<128x1xf32>
    %154 = vector.broadcast %153 : vector<128x1xf32> to vector<128x128xf32>
    %155 = arith.mulf %150, %154 : vector<128x128xf32>
    %156 = arith.truncf %155 : vector<128x128xf32> to vector<128x128xbf16>
    %157 = arith.truncf %139 : vector<128x128xf32> to vector<128x128xbf16>
    %cst_83 = arith.constant dense<0.000000e+00> : vector<128x128xf32>
    %158 = tpu.matmul %156, %157, %cst_83 {dimension_numbers = #tpu.dot_dimension_numbers<[1], [0], [0], [1], [0, 0, 1, 1], [], []>} : vector<128x128xbf16>, vector<128x128xbf16>, vector<128x128xf32> -> vector<128x128xf32>
    %cst_84 = arith.constant 0.000000e+00 : f32
    %159 = vector.broadcast %cst_84 : f32 to vector<128x128xf32>
    %160 = arith.maximumf %158, %159 : vector<128x128xf32>
    %161 = arith.truncf %160 : vector<128x128xf32> to vector<128x128xbf16>
    %cst_85 = arith.constant dense<0.000000e+00> : vector<128x32xf32>
    %162 = tpu.matmul %161, %95, %cst_85 {dimension_numbers = #tpu.dot_dimension_numbers<[1], [0], [0], [1], [0, 0, 1, 1], [], []>} : vector<128x128xbf16>, vector<128x32xbf16>, vector<128x32xf32> -> vector<128x32xf32>
    %163 = arith.truncf %162 : vector<128x32xf32> to vector<128x32xbf16>
    %cst_86 = arith.constant dense<0.000000e+00> : vector<128x32xf32>
    %164 = tpu.matmul %0, %163, %cst_86 {dimension_numbers = #tpu.dot_dimension_numbers<[1], [0], [0], [1], [0, 0, 1, 1], [], []>} : vector<128x128xbf16>, vector<128x32xbf16>, vector<128x32xf32> -> vector<128x32xf32>
    %165 = vector.broadcast %96 : vector<1x32xf32> to vector<128x32xf32>
    %166 = arith.addf %164, %165 : vector<128x32xf32>
    %cst_87 = arith.constant 0.000000e+00 : f32
    %167 = vector.broadcast %cst_87 : f32 to vector<128x32xf32>
    %168 = arith.maximumf %166, %167 : vector<128x32xf32>
    %169 = vector.shape_cast %168 : vector<128x32xf32> to vector<16x8x32xf32>
    %cst_88 = arith.constant dense<0.000000e+00> : vector<16x32xf32>
    %170 = vector.multi_reduction <add>, %169, %cst_88 [1] : vector<16x8x32xf32> to vector<16x32xf32>
    %cst_89 = arith.constant 8.000000e+00 : f32
    %171 = vector.broadcast %cst_89 : f32 to vector<16x32xf32>
    %172 = arith.divf %170, %171 : vector<16x32xf32>
    %c0_90 = arith.constant 0 : index
    %c0_91 = arith.constant 0 : index
    %173 = vector.load %arg25[%c0_90, %c0_91] : memref<32x8xf32, #tpu.memory_space<vmem>>, vector<32x8xf32>
    %cst_92 = arith.constant dense<0.000000e+00> : vector<16x8xf32>
    %174 = tpu.matmul %172, %173, %cst_92 {dimension_numbers = #tpu.dot_dimension_numbers<[1], [0], [0], [1], [0, 0, 1, 1], [], []>} : vector<16x32xf32>, vector<32x8xf32>, vector<16x8xf32> -> vector<16x8xf32>
    %c0_93 = arith.constant 0 : index
    %c0_94 = arith.constant 0 : index
    %175 = vector.load %arg26[%c0_93, %c0_94] : memref<1x8xf32, #tpu.memory_space<vmem>>, vector<1x8xf32>
    %176 = vector.broadcast %175 : vector<1x8xf32> to vector<16x8xf32>
    %177 = arith.addf %174, %176 : vector<16x8xf32>
    %c0_95 = arith.constant 0 : index
    %c0_96 = arith.constant 0 : index
    %178 = vector.load %arg27[%c0_95, %c0_96] : memref<16x8xf32, #tpu.memory_space<vmem>>, vector<16x8xf32>
    tpu.vector_store %arg27[%c0_95, %c0_96], %177 {strides = array<i32>} : memref<16x8xf32, #tpu.memory_space<vmem>>, vector<16x8xf32>,
    return
  }
}

</mosaic_0001>

<bundles_post_ra>
// kernel: attention_stgcn_forward.1
= control target key start
LH: loop header
LB: loop body
LE: loop exit
PB: predicated region body
PF: predicated region fallthrough
CT: control target
= control target key end

     0   :  { %vm530_vm0 = vcmask 1041408   ;;  %vm505_vm1 = vcmask 31744   ;;  %vm925_vm2 = vcmask 261120   ;;  %vm4370_vm3 = vcmask 1041409   ;;  %s7673_s0 = inlined_call_operand.vmem [shape: f32[128,4], index: 0, kind: input, shape index: {}]   ;;  %s7674_s2 = inlined_call_operand.vmem [shape: bf16[128,128], index: 2, kind: input, shape index: {}]   ;;  %s7675_s3 = inlined_call_operand.vmem [shape: bf16[128,128], index: 3, kind: input, shape index: {}]   ;;  %s7676_s6 = inlined_call_operand.vmem [shape: bf16[4,32], index: 6, kind: input, shape index: {}]   ;;  %s7677_s5 = inlined_call_operand.vmem [shape: bf16[4,32], index: 5, kind: input, shape index: {}]   ;;  %s7678_s7 = inlined_call_operand.vmem [shape: bf16[4,32], index: 7, kind: input, shape index: {}]   ;;  %s7679_s11 = inlined_call_operand.vmem [shape: bf16[32,384], index: 11, kind: input, shape index: {}]   ;;  %s7680_s8 = inlined_call_operand.vmem [shape: f32[1,32], index: 8, kind: input, shape index: {}]   ;;  %s7681_s9 = inlined_call_operand.vmem [shape: f32[1,32], index: 9, kind: input, shape index: {}]   ;;  %s7682_s10 = inlined_call_operand.vmem [shape: f32[1,32], index: 10, kind: input, shape index: {}]   ;;  %s7683_s12 = inlined_call_operand.vmem [shape: f32[1,384], index: 12, kind: input, shape index: {}]   ;;  %s7684_s4 = inlined_call_operand.vmem [shape: f32[128,128], index: 4, kind: input, shape index: {}]   ;;  %s7685_s13 = inlined_call_operand.vmem [shape: bf16[128,32], index: 13, kind: input, shape index: {}]   ;;  %s7686_s1 = inlined_call_operand.vmem [shape: bf16[128,128], index: 1, kind: input, shape index: {}]   ;;  %s7687_s16 = inlined_call_operand.vmem [shape: bf16[32,32], index: 16, kind: input, shape index: {}]   ;;  %s7688_s15 = inlined_call_operand.vmem [shape: bf16[32,32], index: 15, kind: input, shape index: {}]   ;;  %s7689_s14 = inlined_call_operand.vmem [shape: f32[1,32], index: 14, kind: input, shape index: {}]   ;;  %s7690_s17 = inlined_call_operand.vmem [shape: bf16[32,32], index: 17, kind: input, shape index: {}]   ;;  %s7691_s21 = inlined_call_operand.vmem [shape: bf16[32,384], index: 21, kind: input, shape index: {}]   ;;  %s7692_s18 = inlined_call_operand.vmem [shape: f32[1,32], index: 18, kind: input, shape index: {}]   ;;  %s7693_s19 = inlined_call_operand.vmem [shape: f32[1,32], index: 19, kind: input, shape index: {}]   ;;  %s7694_s20 = inlined_call_operand.vmem [shape: f32[1,32], index: 20, kind: input, shape index: {}]   ;;  %s7695_s22 = inlined_call_operand.vmem [shape: f32[1,384], index: 22, kind: input, shape index: {}]   ;;  %s7696_s23 = inlined_call_operand.vmem [shape: bf16[128,32], index: 23, kind: input, shape index: {}]   ;;  %s7697_s25 = inlined_call_operand.vmem [shape: f32[32,8], index: 25, kind: input, shape index: {}]   ;;  %s7698_s24 = inlined_call_operand.vmem [shape: f32[1,32], index: 24, kind: input, shape index: {}]   ;;  %s7699_s26 = inlined_call_operand.vmem [shape: f32[1,8], index: 26, kind: input, shape index: {}]   ;;  %s7700_s27 = inlined_call_operand.vmem [shape: f32[16,8], index: 27, kind: output, shape index: {}]  }
   0x1   :  { %7706 = sst [smem:[#allocation2_spill]] %s7673_s0  ;;  %vm4372_vm4 = vcmask 1042434   ;;  %vm4374_vm5 = vcmask 1043459   ;;  %vm4376_vm6 = vcmask 1044484   ;;  %vm4378_vm7 = vcmask 1045509  }
   0x2   :  { %7707 = sst [smem:[#allocation3_spill]] %s7674_s2  ;;  %vm4380_vm8 = vcmask 1046534   ;;  %vm4382_vm9 = vcmask 1047559   ;;  %vm4470_vm10 = vcmask 64512  }
   0x3   :  { %7708 = sst [smem:[#allocation4_spill]] %s7675_s3 }
   0x4   :  { %7709 = sst [smem:[#allocation5_spill]] %s7676_s6 }
   0x5   :  { %7710 = sst [smem:[#allocation6_spill]] %s7677_s5  ;;  %s7720_s5 = sld [smem:[#allocation4_spill]] }
   0x6   :  { %7711 = sst [smem:[#allocation7_spill]] %s7678_s7  ;;  %s7719_s7 = sld [smem:[#allocation3_spill]] }
   0x7   :  { %7712 = sst [smem:[#allocation8_spill]] %s7679_s11  ;;  %s7721_s6 = sld [smem:[#allocation5_spill]] }
   0x8   :  { %7713 = sst [smem:[#allocation9_spill]] %s7680_s8  ;;  %s7723_s29 = sld [smem:[#allocation7_spill]] }
   0x9   :  { %7714 = sst [smem:[#allocation10_spill]] %s7681_s9  ;;  %s7725_s30 = sld [smem:[#allocation9_spill]] }
   0xa   :  { %7715 = sst [smem:[#allocation11_spill]] %s7682_s10  ;;  %s7718_s9 = sld [smem:[#allocation2_spill]] }
   0xb   :  { %7716 = sst [smem:[#allocation12_spill]] %s7683_s12  ;;  %v5534_v18 = vld [vmem:[%s7720_s5] sm:$0xff]   ;;  %v5535_v29 = vld [vmem:[%s7720_s5 + $0x8] sm:$0xff]   ;;  %v5536_v30 = vld [vmem:[%s7720_s5 + $0x10] sm:$0xff]  }
   0xc   :  { %7717 = sst [smem:[#allocation13_spill]] %s7684_s4  ;;  %v5526_v11 = vld [vmem:[%s7719_s7] sm:$0xff]   ;;  %4949 = vmatprep.mubr.bf16.mxu1 %v5534_v18  ;;  %v5527_v27 = vld [vmem:[%s7719_s7 + $0x8] sm:$0xff]   ;;  %v5528_v28 = vld [vmem:[%s7719_s7 + $0x10] sm:$0xff]   ;;  %s7722_s4 = sld [smem:[#allocation6_spill]] }
   0xd   :  { %4917 = vmatprep.mubr.bf16.mxu0 %v5526_v11  ;;  %v168_v26 = vld [vmem:[%s7721_s6] sm:$0x3]  ;;  %v5529_v33 = vld [vmem:[%s7719_s7 + $0x18] sm:$0xff]   ;;  %v5531_v37 = vld [vmem:[%s7719_s7 + $0x28] sm:$0xff]   ;;  %s7726_s6 = sld [smem:[#allocation10_spill]]  ;;  %s7728_s12 = sld [smem:[#allocation12_spill]] }
   0xe   :  { %v532_v31 = vsel %vm530_vm0, %v168_v26, 0  ;;  %v5530_v34 = vld [vmem:[%s7719_s7 + $0x20] sm:$0xff]   ;;  %v5537_v35 = vld [vmem:[%s7720_s5 + $0x18] sm:$0xff]   ;;  %v5532_v38 = vld [vmem:[%s7719_s7 + $0x30] sm:$0xff]   ;;  %s7729_s11 = sld [smem:[#allocation13_spill]] }
   0xf   :  { %v5538_v36 = vld [vmem:[%s7720_s5 + $0x20] sm:$0xff]   ;;  %v5539_v39 = vld [vmem:[%s7720_s5 + $0x28] sm:$0xff]   ;;  %v5540_v40 = vld [vmem:[%s7720_s5 + $0x30] sm:$0xff]  }
  0x10   :  { %v151_v0 = vld [vmem:[%s7718_s9] sm:$0xff]  ;;  %v152_v1 = vld [vmem:[%s7718_s9 + $0x8] sm:$0xff]  ;;  %v153_v2 = vld [vmem:[%s7718_s9 + $0x10] sm:$0xff] }
  0x11   :  { %v5970_v3 = vpack.c.bf16 %v152_v1, %v151_v0  ;;  %v154_v4 = vld [vmem:[%s7718_s9 + $0x18] sm:$0xff]  ;;  %v155_v6 = vld [vmem:[%s7718_s9 + $0x20] sm:$0xff]  ;;  %v156_v7 = vld [vmem:[%s7718_s9 + $0x28] sm:$0xff] }
  0x12   :  { %v5975_v5 = vpack.c.bf16 %v154_v4, %v153_v2  ;;  %v157_v8 = vld [vmem:[%s7718_s9 + $0x30] sm:$0xff]  ;;  %v5991_v9 = vpack.c.bf16 %v156_v7, %v155_v6  ;;  %v158_v10 = vld [vmem:[%s7718_s9 + $0x38] sm:$0xff]  ;;  %v159_v13 = vld [vmem:[%s7718_s9 + $0x40] sm:$0xff] }
  0x13   :  { %4901 = vmatprep.subr.bf16.mxu0 %v5970_v3  ;;  %4933 = vmatprep.subr.bf16.mxu1 %v5970_v3  ;;  %v6002_v12 = vpack.c.bf16 %v158_v10, %v157_v8  ;;  %v160_v14 = vld [vmem:[%s7718_s9 + $0x48] sm:$0xff]  ;;  %v161_v15 = vld [vmem:[%s7718_s9 + $0x50] sm:$0xff]  ;;  %v162_v17 = vld [vmem:[%s7718_s9 + $0x58] sm:$0xff] }
  0x14   :  { %4902 = vmatpush3.bf16.msra.mxu0 %v5970_v3  ;;  %4934 = vmatpush3.bf16.msra.mxu1 %v5970_v3  ;;  %v6017_v16 = vpack.c.bf16 %v160_v14, %v159_v13  ;;  %v6029_v19 = vpack.c.bf16 %v162_v17, %v161_v15  ;;  %v163_v20 = vld [vmem:[%s7718_s9 + $0x60] sm:$0xff]  ;;  %v164_v21 = vld [vmem:[%s7718_s9 + $0x68] sm:$0xff]  ;;  %v165_v23 = vld [vmem:[%s7718_s9 + $0x70] sm:$0xff] }
  0x15   :  { %4903 = vmatprep.subr.bf16.mxu0 %v5975_v5  ;;  %4935 = vmatprep.subr.bf16.mxu1 %v5975_v5  ;;  %v205_v22 = vpack.c.bf16 %v164_v21, %v163_v20  ;;  %v166_v24 = vld [vmem:[%s7718_s9 + $0x78] sm:$0xff]  ;;  %v167_v32 = vld [vmem:[%s7722_s4] sm:$0x3]  ;;  %s7724_s4 = sld [smem:[#allocation8_spill]] }
  0x16   :  { %v206_v25 = vpack.c.bf16 %v166_v24, %v165_v23  ;;  %v5533_v41 = vld [vmem:[%s7719_s7 + $0x38] sm:$0xff]   ;;  %v656_v43 = vsel %vm530_vm0, %v167_v32, 0  ;;  %v169_v44 = vld [vmem:[%s7723_s29] sm:$0x3] }
  0x17   :  { %v5541_v42 = vld [vmem:[%s7720_s5 + $0x38] sm:$0xff]   ;;  %v788_v56 = vsel %vm530_vm0, %v169_v44, 0 }
  0x18   :  { %4904 = vmatpush3.bf16.msra.mxu0 %v5975_v5  ;;  %4936 = vmatpush3.bf16.msra.mxu1 %v5975_v5 }
  0x19   :  { %4905 = vmatprep.subr.bf16.mxu0 %v5991_v9  ;;  %4937 = vmatprep.subr.bf16.mxu1 %v5991_v9 }
  0x1c   :  { %4906 = vmatpush3.bf16.msra.mxu0 %v5991_v9  ;;  %4938 = vmatpush3.bf16.msra.mxu1 %v5991_v9 }
  0x1d   :  { %4907 = vmatprep.subr.bf16.mxu0 %v6002_v12  ;;  %4939 = vmatprep.subr.bf16.mxu1 %v6002_v12 }
  0x20   :  { %4908 = vmatpush3.bf16.msra.mxu0 %v6002_v12  ;;  %4940 = vmatpush3.bf16.msra.mxu1 %v6002_v12 }
  0x21   :  { %4909 = vmatprep.subr.bf16.mxu0 %v6017_v16  ;;  %4941 = vmatprep.subr.bf16.mxu1 %v6017_v16 }
  0x24   :  { %4910 = vmatpush3.bf16.msra.mxu0 %v6017_v16  ;;  %4942 = vmatpush3.bf16.msra.mxu1 %v6017_v16 }
  0x25   :  { %4911 = vmatprep.subr.bf16.mxu0 %v6029_v19  ;;  %4943 = vmatprep.subr.bf16.mxu1 %v6029_v19 }
  0x28   :  { %4912 = vmatpush3.bf16.msra.mxu0 %v6029_v19  ;;  %4944 = vmatpush3.bf16.msra.mxu1 %v6029_v19 }
  0x29   :  { %4913 = vmatprep.subr.bf16.mxu0 %v205_v22  ;;  %4945 = vmatprep.subr.bf16.mxu1 %v205_v22 }
  0x2c   :  { %4914 = vmatpush3.bf16.msra.mxu0 %v205_v22  ;;  %4946 = vmatpush3.bf16.msra.mxu1 %v205_v22 }
  0x2d   :  { %4915 = vmatprep.subr.bf16.mxu0 %v206_v25  ;;  %4947 = vmatprep.subr.bf16.mxu1 %v206_v25 }
  0x30   :  { %4916 = vmatpush3.bf16.msra.mxu0 %v206_v25  ;;  %4948 = vmatpush3.bf16.msra.mxu1 %v206_v25 }
  0x31   :  { %5522 = vmatprep.subr.msk.bf16.mxu0 %vm530_vm0, %v168_v26 }
  0x33   :  { %4918 = vmatmul.mubr.bf16.vlgmr.msra.gmra.mrb[0].mxu0 %v5527_v27  ;;  %4950 = vmatmul.mubr.bf16.vlgmr.msra.gmra.mrb[0].mxu1 %v5535_v29 }
  0x34   :  { %4921 = vmatprep.mubr.bf16.mxu0 %v5528_v28  ;;  %4953 = vmatprep.mubr.bf16.mxu1 %v5536_v30  ;;  %v5542_v30 = vld [vmem:[%s7724_s4] ss:$12 sps:$4 sm:$0xff]  }
  0x35   :  { %4966 = vmatpush3.bf16.msra.mxu0 %v532_v31  ;;  %v5544_v31 = vld [vmem:[%s7724_s4 + $0x4] ss:$12 sps:$4 sm:$0xff]  }
  0x36   :  { %5523 = vmatprep.subr.msk.bf16.mxu0 %vm530_vm0, %v167_v32  ;;  %1290 = vmatprep.subr.bf16.mxu1 %v5544_v31  ;;  %v6147_v32 = vld [vmem:[%s7725_s30] ss:$0 sm:$0xff]  ;;  %s7727_s30 = sld [smem:[#allocation11_spill]] }
  0x37   :  { %1291 = vmatpush1.bf16.msra.mxu1 %v5542_v30  ;;  %v5547_v30 = vld [vmem:[%s7724_s4 + $0x1c] ss:$12 sps:$4 sm:$0xff]  }
  0x38   :  { %1292 = vmatprep.subr.bf16.mxu1 %v5547_v30 }
  0x3b   :  { %4922 = vmatmul.mubr.bf16.gmra.mrb[4].mxu0 %v5529_v33  ;;  %4954 = vmatmul.mubr.bf16.gmra.mrb[4].mxu1 %v5537_v35 }
  0x3c   :  { %4925 = vmatprep.mubr.bf16.mxu0 %v5530_v34  ;;  %4957 = vmatprep.mubr.bf16.mxu1 %v5538_v36 }
  0x43   :  { %4926 = vmatmul.mubr.bf16.gmra.mrb[8].mxu0 %v5531_v37  ;;  %4958 = vmatmul.mubr.bf16.gmra.mrb[8].mxu1 %v5539_v39 }
  0x44   :  { %4929 = vmatprep.mubr.bf16.mxu0 %v5532_v38  ;;  %4961 = vmatprep.mubr.bf16.mxu1 %v5540_v40 }
  0x4b   :  { %4930 = vmatmul.mubr.bf16.gmra.mrb[12].mxu0 %v5533_v41  ;;  %4962 = vmatmul.mubr.bf16.gmra.mrb[12].mxu1 %v5541_v42 }
  0x4c   :  { %4967 = vmatprep.mubr.msk.bf16.mxu0 %vm505_vm1, %v5970_v3 }
  0x53   :  { %4968 = vmatmul.mubr.msk.bf16.vlgmr.msra.gmra.mrb[16].mxu0 %vm505_vm1, %v5975_v5 }
  0x54   :  { %4984 = vmatpush3.bf16.msra.mxu0 %v656_v43  ;;  %4971 = vmatprep.mubr.msk.bf16.mxu0 %vm505_vm1, %v5991_v9 }
  0x55   :  { %5524 = vmatprep.subr.msk.bf16.mxu0 %vm530_vm0, %v169_v44 }
  0x5b   :  { %4972 = vmatmul.mubr.msk.bf16.gmra.mrb[20].mxu0 %vm505_vm1, %v6002_v12 }
  0x5c   :  { %4975 = vmatprep.mubr.msk.bf16.mxu0 %vm505_vm1, %v6017_v16 }
  0x63   :  { %4976 = vmatmul.mubr.msk.bf16.gmra.mrb[24].mxu0 %vm505_vm1, %v6029_v19 }
  0x64   :  { %4979 = vmatprep.mubr.msk.bf16.mxu0 %vm505_vm1, %v205_v22 }
  0x6b   :  { %4980 = vmatmul.mubr.msk.bf16.gmra.mrb[28].mxu0 %vm505_vm1, %v206_v25 }
 0x106   :  { %v4919_v45 = vpop.f32.mrb[0].mxu0  ;;  %v4951_v47 = vpop.f32.mrb[0].mxu1 }
 0x107   :  { %v289_v46 = vpop.f32.mrb[1].mxu0  ;;  %v434_v49 = vpop.f32.mrb[1].mxu1 }
 0x108   :  { %v4920_v48 = vpop.f32.mrb[2].mxu0  ;;  %v4952_v52 = vpop.f32.mrb[2].mxu1 }
 0x109   :  { %v498_v50 = vpack.c.bf16 %v4920_v48, %v4919_v45  ;;  %v292_v51 = vpop.f32.mrb[3].mxu0  ;;  %v756_v54 = vpack.c.bf16 %v4952_v52, %v4951_v47  ;;  %v437_v55 = vpop.f32.mrb[3].mxu1 }
 0x10a   :  { %v497_v53 = vpack.c.bf16 %v292_v51, %v289_v46  ;;  %v755_v57 = vpack.c.bf16 %v437_v55, %v434_v49 }
 0x10c   :  { %4985 = vmatprep.mubr.msk.bf16.mxu0 %vm505_vm1, %v497_v53 }
 0x10d   :  { %4986 = vmatmul.mubr.msk.bf16.vlgmr.msra.gmra.mrb[16].mxu0 %vm505_vm1, %v498_v50 }
 0x10e   :  { %v4923_v58 = vpop.f32.mrb[4].mxu0  ;;  %5002 = vmatpush3.bf16.msra.mxu0 %v788_v56  ;;  %v4955_v60 = vpop.f32.mrb[4].mxu1 }
 0x10f   :  { %v305_v59 = vpop.f32.mrb[5].mxu0  ;;  %v450_v62 = vpop.f32.mrb[5].mxu1 }
 0x110   :  { %v4924_v61 = vpop.f32.mrb[6].mxu0  ;;  %v4956_v1 = vpop.f32.mrb[6].mxu1 }
 0x111   :  { %v500_v63 = vpack.c.bf16 %v4924_v61, %v4923_v58  ;;  %v308_v0 = vpop.f32.mrb[7].mxu0  ;;  %v758_v3 = vpack.c.bf16 %v4956_v1, %v4955_v60  ;;  %v453_v4 = vpop.f32.mrb[7].mxu1 }
 0x112   :  { %v499_v2 = vpack.c.bf16 %v308_v0, %v305_v59  ;;  %v757_v5 = vpack.c.bf16 %v453_v4, %v450_v62 }
 0x114   :  { %4989 = vmatprep.mubr.msk.bf16.mxu0 %vm505_vm1, %v499_v2 }
 0x115   :  { %4990 = vmatmul.mubr.msk.bf16.gmra.mrb[20].mxu0 %vm505_vm1, %v500_v63 }
 0x116   :  { %v4927_v6 = vpop.f32.mrb[8].mxu0  ;;  %v4959_v8 = vpop.f32.mrb[8].mxu1 }
 0x117   :  { %v321_v7 = vpop.f32.mrb[9].mxu0  ;;  %v466_v10 = vpop.f32.mrb[9].mxu1 }
 0x118   :  { %v4928_v9 = vpop.f32.mrb[10].mxu0  ;;  %v4960_v13 = vpop.f32.mrb[10].mxu1 }
 0x119   :  { %v502_v11 = vpack.c.bf16 %v4928_v9, %v4927_v6  ;;  %v324_v12 = vpop.f32.mrb[11].mxu0  ;;  %v760_v15 = vpack.c.bf16 %v4960_v13, %v4959_v8  ;;  %v469_v16 = vpop.f32.mrb[11].mxu1 }
 0x11a   :  { %v501_v14 = vpack.c.bf16 %v324_v12, %v321_v7  ;;  %v759_v17 = vpack.c.bf16 %v469_v16, %v466_v10 }
 0x11c   :  { %4993 = vmatprep.mubr.msk.bf16.mxu0 %vm505_vm1, %v501_v14 }
 0x11d   :  { %4994 = vmatmul.mubr.msk.bf16.gmra.mrb[24].mxu0 %vm505_vm1, %v502_v11 }
 0x11e   :  { %v4931_v18 = vpop.f32.mrb[12].mxu0  ;;  %v4963_v20 = vpop.f32.mrb[12].mxu1 }
 0x11f   :  { %v337_v19 = vpop.f32.mrb[13].mxu0  ;;  %v482_v22 = vpop.f32.mrb[13].mxu1 }
 0x120   :  { %v4932_v21 = vpop.f32.mrb[14].mxu0  ;;  %v4964_v25 = vpop.f32.mrb[14].mxu1 }
 0x121   :  { %v504_v23 = vpack.c.bf16 %v4932_v21, %v4931_v18  ;;  %v340_v24 = vpop.f32.mrb[15].mxu0  ;;  %v762_v27 = vpack.c.bf16 %v4964_v25, %v4963_v20  ;;  %v485_v28 = vpop.f32.mrb[15].mxu1 }
 0x122   :  { %v503_v26 = vpack.c.bf16 %v340_v24, %v337_v19  ;;  %v761_v29 = vpack.c.bf16 %v485_v28, %v482_v22 }
 0x124   :  { %4997 = vmatprep.mubr.msk.bf16.mxu0 %vm505_vm1, %v503_v26 }
 0x125   :  { %4998 = vmatmul.mubr.msk.bf16.gmra.mrb[28].mxu0 %vm505_vm1, %v504_v23 }
 0x126   :  { %5003 = vmatprep.mubr.msk.bf16.mxu0 %vm505_vm1, %v755_v57 }
 0x12d   :  { %5004 = vmatmul.mubr.msk.bf16.vlgmr.msra.gmra.mrb[16].mxu0 %vm505_vm1, %v756_v54 }
 0x12e   :  { %5007 = vmatprep.mubr.msk.bf16.mxu0 %vm505_vm1, %v757_v5 }
 0x135   :  { %5008 = vmatmul.mubr.msk.bf16.gmra.mrb[20].mxu0 %vm505_vm1, %v758_v3 }
 0x136   :  { %5011 = vmatprep.mubr.msk.bf16.mxu0 %vm505_vm1, %v759_v17 }
 0x13d   :  { %5012 = vmatmul.mubr.msk.bf16.gmra.mrb[24].mxu0 %vm505_vm1, %v760_v15 }
 0x13e   :  { %5015 = vmatprep.mubr.msk.bf16.mxu0 %vm505_vm1, %v761_v29  ;;  %v5545_v29 = vld [vmem:[%s7724_s4 + $0x18] ss:$12 sps:$4 sm:$0xff]  }
 0x13f   :  { %1293 = vmatpush1.bf16.msra.mxu1 %v5545_v29 }
 0x145   :  { %5016 = vmatmul.mubr.msk.bf16.gmra.mrb[28].mxu0 %vm505_vm1, %v762_v27 }
 0x200   :  { %v5005_v33 = vpop.f32.mrb[16].mxu0 }
 0x201   :  { %v824_v34 = vpop.f32.mrb[17].mxu0  ;;  %v6163_v43 = vadd.f32 %v5005_v33, %v6147_v32 }
 0x202   :  { %v6150_v35 = vadd.f32 %v6147_v32, %v824_v34  ;;  %v5006_v36 = vpop.f32.mrb[18].mxu0 }
 0x203   :  { %v827_v37 = vpop.f32.mrb[19].mxu0  ;;  %v6168_v47 = vadd.f32 %v5006_v36, %v6147_v32  ;;  %v932_v51 = vsel %vm925_vm2, %v6163_v43, 0.0  ;;  %v992_v52 = vmul.f32 %v6163_v43, %v6163_v43 }
 0x204   :  { %v6153_v38 = vadd.f32 %v6147_v32, %v827_v37  ;;  %v926_v39 = vsel %vm925_vm2, %v6150_v35, 0.0  ;;  %v990_v40 = vmul.f32 %v6150_v35, %v6150_v35 }
 0x205   :  { %927 = vadd.xlane.f32.xlu0 %v926_v39  ;;  %v935_v53 = vsel %vm925_vm2, %v6168_v47, 0.0  ;;  %v993_v54 = vmul.f32 %v6168_v47, %v6168_v47  ;;  %v1012_v57 = vsel %vm925_vm2, %v992_v52, 0.0 }
 0x206   :  { %v1006_v41 = vsel %vm925_vm2, %v990_v40, 0.0  ;;  %v991_v42 = vmul.f32 %v6153_v38, %v6153_v38  ;;  %v929_v45 = vsel %vm925_vm2, %v6153_v38, 0.0  ;;  %v5820_v40 = vmov 0  }
 0x207   :  { %1007 = vadd.xlane.f32.xlu1 %v1006_v41  ;;  %v1015_v61 = vsel %vm925_vm2, %v993_v54, 0.0  ;;  %1322 = vmatprep.mubr.bf16.mxu1 %v5820_v40 }
 0x208   :  { %v5009_v44 = vpop.f32.mrb[20].mxu0  ;;  %v1009_v49 = vsel %vm925_vm2, %v991_v42, 0.0 }
 0x209   :  { %930 = vadd.xlane.f32.xlu0 %v929_v45  ;;  %v840_v46 = vpop.f32.mrb[21].mxu0  ;;  %v6196_v3 = vadd.f32 %v5009_v44, %v6147_v32 }
 0x20a   :  { %v5010_v48 = vpop.f32.mrb[22].mxu0  ;;  %v6180_v55 = vadd.f32 %v6147_v32, %v840_v46 }
 0x20b   :  { %1010 = vadd.xlane.f32.xlu1 %v1009_v49  ;;  %v843_v50 = vpop.f32.mrb[23].mxu0  ;;  %v6200_v7 = vadd.f32 %v5010_v48, %v6147_v32  ;;  %v944_v11 = vsel %vm925_vm2, %v6196_v3, 0.0  ;;  %v996_v12 = vmul.f32 %v6196_v3, %v6196_v3 }
 0x20c   :  { %v6184_v59 = vadd.f32 %v6147_v32, %v843_v50  ;;  %v938_v63 = vsel %vm925_vm2, %v6180_v55, 0.0  ;;  %v994_v0 = vmul.f32 %v6180_v55, %v6180_v55 }
 0x20d   :  { %933 = vadd.xlane.f32.xlu0 %v932_v51  ;;  %v947_v13 = vsel %vm925_vm2, %v6200_v7, 0.0  ;;  %v997_v14 = vmul.f32 %v6200_v7, %v6200_v7  ;;  %v1024_v16 = vsel %vm925_vm2, %v996_v12, 0.0 }
 0x20e   :  { %v941_v1 = vsel %vm925_vm2, %v6184_v59, 0.0  ;;  %v995_v2 = vmul.f32 %v6184_v59, %v6184_v59  ;;  %v1018_v5 = vsel %vm925_vm2, %v994_v0, 0.0 }
 0x20f   :  { %936 = vadd.xlane.f32.xlu1 %v935_v53  ;;  %v1027_v18 = vsel %vm925_vm2, %v997_v14, 0.0 }
 0x210   :  { %v5013_v56 = vpop.f32.mrb[24].mxu0  ;;  %v1021_v9 = vsel %vm925_vm2, %v995_v2, 0.0 }
 0x211   :  { %1013 = vadd.xlane.f32.xlu0 %v1012_v57  ;;  %v856_v58 = vpop.f32.mrb[25].mxu0  ;;  %v6228_v23 = vadd.f32 %v5013_v56, %v6147_v32  ;;  %v6287_v57 = vld [vmem:[%s7724_s4 + $0x8] ss:$12 sps:$4 sm:$0xff]  }
 0x212   :  { %v5014_v60 = vpop.f32.mrb[26].mxu0  ;;  %v6212_v15 = vadd.f32 %v6147_v32, %v856_v58  ;;  %5019 = vmatprep.subr.bf16.mxu1 %v6287_v57 }
 0x213   :  { %1016 = vadd.xlane.f32.xlu1 %v1015_v61  ;;  %v859_v62 = vpop.f32.mrb[27].mxu0  ;;  %v6232_v25 = vadd.f32 %v5014_v60, %v6147_v32  ;;  %v956_v27 = vsel %vm925_vm2, %v6228_v23, 0.0  ;;  %v1000_v28 = vmul.f32 %v6228_v23, %v6228_v23 }
 0x214   :  { %v6216_v17 = vadd.f32 %v6147_v32, %v859_v62  ;;  %v950_v19 = vsel %vm925_vm2, %v6212_v15, 0.0  ;;  %v998_v20 = vmul.f32 %v6212_v15, %v6212_v15 }
 0x215   :  { %939 = vadd.xlane.f32.xlu0 %v938_v63  ;;  %v959_v31 = vsel %vm925_vm2, %v6232_v25, 0.0  ;;  %v1001_v33 = vmul.f32 %v6232_v25, %v6232_v25  ;;  %v1036_v36 = vsel %vm925_vm2, %v1000_v28, 0.0 }
 0x216   :  { %v953_v21 = vsel %vm925_vm2, %v6216_v17, 0.0  ;;  %v999_v22 = vmul.f32 %v6216_v17, %v6216_v17  ;;  %v1030_v24 = vsel %vm925_vm2, %v998_v20, 0.0 }
 0x217   :  { %942 = vadd.xlane.f32.xlu1 %v941_v1  ;;  %v1039_v39 = vsel %vm925_vm2, %v1001_v33, 0.0 }
 0x218   :  { %v5017_v4 = vpop.f32.mrb[28].mxu0  ;;  %v1033_v26 = vsel %vm925_vm2, %v999_v22, 0.0 }
 0x219   :  { %1019 = vadd.xlane.f32.xlu0 %v1018_v5  ;;  %v872_v6 = vpop.f32.mrb[29].mxu0  ;;  %v6267_v46 = vadd.f32 %v5017_v4, %v6147_v32 }
 0x21a   :  { %v5018_v8 = vpop.f32.mrb[30].mxu0  ;;  %v6250_v34 = vadd.f32 %v6147_v32, %v872_v6 }
 0x21b   :  { %1022 = vadd.xlane.f32.xlu1 %v1021_v9  ;;  %v875_v10 = vpop.f32.mrb[31].mxu0  ;;  %v6271_v49 = vadd.f32 %v5018_v8, %v6147_v32  ;;  %v968_v51 = vsel %vm925_vm2, %v6267_v46, 0.0  ;;  %v1004_v52 = vmul.f32 %v6267_v46, %v6267_v46 }
 0x21c   :  { %v6254_v37 = vadd.f32 %v6147_v32, %v875_v10  ;;  %v962_v41 = vsel %vm925_vm2, %v6250_v34, 0.0  ;;  %v1002_v42 = vmul.f32 %v6250_v34, %v6250_v34 }
 0x21d   :  { %945 = vadd.xlane.f32.xlu0 %v944_v11  ;;  %v971_v53 = vsel %vm925_vm2, %v6271_v49, 0.0  ;;  %v1005_v54 = vmul.f32 %v6271_v49, %v6271_v49  ;;  %v1048_v32 = vsel %vm925_vm2, %v1004_v52, 0.0 }
 0x21e   :  { %v965_v44 = vsel %vm925_vm2, %v6254_v37, 0.0  ;;  %v1003_v45 = vmul.f32 %v6254_v37, %v6254_v37  ;;  %v1042_v48 = vsel %vm925_vm2, %v1002_v42, 0.0 }
 0x21f   :  { %948 = vadd.xlane.f32.xlu1 %v947_v13  ;;  %v1051_v56 = vsel %vm925_vm2, %v1005_v54, 0.0 }
 0x220   :  { %v1045_v50 = vsel %vm925_vm2, %v1003_v45, 0.0 }
 0x221   :  { %1025 = vadd.xlane.f32.xlu0 %v1024_v16 }
 0x223   :  { %1028 = vadd.xlane.f32.xlu1 %v1027_v18 }
 0x225   :  { %951 = vadd.xlane.f32.xlu0 %v950_v19 }
 0x227   :  { %954 = vadd.xlane.f32.xlu1 %v953_v21 }
 0x229   :  { %1031 = vadd.xlane.f32.xlu0 %v1030_v24 }
 0x22b   :  { %1034 = vadd.xlane.f32.xlu1 %v1033_v26 }
 0x22d   :  { %957 = vadd.xlane.f32.xlu0 %v956_v27 }
 0x22f   :  { %960 = vadd.xlane.f32.xlu1 %v959_v31 }
 0x231   :  { %1037 = vadd.xlane.f32.xlu0 %v1036_v36 }
 0x233   :  { %1040 = vadd.xlane.f32.xlu1 %v1039_v39 }
 0x235   :  { %963 = vadd.xlane.f32.xlu0 %v962_v41 }
 0x237   :  { %966 = vadd.xlane.f32.xlu1 %v965_v44  ;;  %v6302_v44 = vld [vmem:[%s7726_s6] ss:$0 sm:$0xff] }
 0x239   :  { %1043 = vadd.xlane.f32.xlu0 %v1042_v48 }
 0x23b   :  { %1046 = vadd.xlane.f32.xlu1 %v1045_v50 }
 0x23d   :  { %969 = vadd.xlane.f32.xlu0 %v968_v51 }
 0x23f   :  { %972 = vadd.xlane.f32.xlu1 %v971_v53 }
 0x241   :  { %1049 = vadd.xlane.f32.xlu0 %v1048_v32 }
 0x243   :  { %1052 = vadd.xlane.f32.xlu1 %v1051_v56 }
 0x292   :  { %v928_v58 = vpop.xlane.xlu0 %927 }
 0x293   :  { %v974_v60 = vmul.f32 0.03125, %v928_v58 }
 0x294   :  { %v1008_v61 = vpop.xlane.xlu1 %1007 }
 0x295   :  { %v1086_v62 = vmul.f32 %v974_v60, %v974_v60  ;;  %v1054_v63 = vmul.f32 0.03125, %v1008_v61  ;;  %v1070_v30 = vsub.f32 %v6150_v35, %v974_v60 }
 0x296   :  { %v931_v0 = vpop.xlane.xlu0 %930 }
 0x297   :  { %v1102_v1 = vsub.f32 %v1054_v63, %v1086_v62  ;;  %v975_v2 = vmul.f32 0.03125, %v931_v0  ;;  %v6315_v63 = vld [vmem:[%s7727_s30] ss:$0 sm:$0xff] }
 0x298   :  { %v1011_v4 = vpop.xlane.xlu1 %1010 }
 0x299   :  { %v1118_v5 = vadd.f32 1e-05, %v1102_v1  ;;  %v1087_v6 = vmul.f32 %v975_v2, %v975_v2  ;;  %v1055_v8 = vmul.f32 0.03125, %v1011_v4  ;;  %v1071_v35 = vsub.f32 %v6153_v38, %v975_v2 }
 0x29a   :  { %v934_v9 = vpop.xlane.xlu0 %933 }
 0x29b   :  { %5588 = vrsqrt.f32 %v1118_v5  ;;  %v1103_v10 = vsub.f32 %v1055_v8, %v1087_v6  ;;  %v976_v11 = vmul.f32 0.03125, %v934_v9 }
 0x29c   :  { %v937_v12 = vpop.xlane.xlu1 %936 }
 0x29d   :  { %v1119_v13 = vadd.f32 1e-05, %v1103_v10  ;;  %v6290_v14 = vmul.f32 0.03125, %v937_v12  ;;  %v1088_v18 = vmul.f32 %v976_v11, %v976_v11  ;;  %v1072_v2 = vsub.f32 %v6163_v43, %v976_v11  ;;  %v5549_v11 = vld [vmem:[%s7724_s4 + $0x20] ss:$12 sps:$4 sm:$0xff]  }
 0x29e   :  { %v1014_v16 = vpop.xlane.xlu0 %1013 }
 0x29f   :  { %5590 = vrsqrt.f32 %v1119_v13  ;;  %v1056_v19 = vmul.f32 0.03125, %v1014_v16  ;;  %v1089_v21 = vmul.f32 %v6290_v14, %v6290_v14  ;;  %v1073_v13 = vsub.f32 %v6168_v47, %v6290_v14 }
 0x2a0   :  { %v1017_v20 = vpop.xlane.xlu1 %1016 }
 0x2a1   :  { %v1104_v22 = vsub.f32 %v1056_v19, %v1088_v18  ;;  %v1057_v24 = vmul.f32 0.03125, %v1017_v20 }
 0x2a2   :  { %v940_v26 = vpop.xlane.xlu0 %939 }
 0x2a3   :  { %v1120_v27 = vadd.f32 1e-05, %v1104_v22  ;;  %v1105_v28 = vsub.f32 %v1057_v24, %v1089_v21  ;;  %v6294_v29 = vmul.f32 0.03125, %v940_v26 }
 0x2a4   :  { %v943_v31 = vpop.xlane.xlu1 %942 }
 0x2a5   :  { %v5589_v33 = vpop.eup %5588  ;;  %5592 = vrsqrt.f32 %v1120_v27  ;;  %v1121_v36 = vadd.f32 1e-05, %v1105_v28  ;;  %v6297_v41 = vmul.f32 0.03125, %v943_v31  ;;  %v1090_v45 = vmul.f32 %v6294_v29, %v6294_v29 }
 0x2a6   :  { %v1150_v39 = vmul.f32 %v5589_v33, %v1070_v30  ;;  %v1020_v42 = vpop.xlane.xlu0 %1019 }
 0x2a7   :  { %5594 = vrsqrt.f32 %v1121_v36  ;;  %v1058_v48 = vmul.f32 0.03125, %v1020_v42  ;;  %v1091_v52 = vmul.f32 %v6297_v41, %v6297_v41  ;;  %v1074_v36 = vsub.f32 %v6180_v55, %v6294_v29 }
 0x2a8   :  { %v1023_v50 = vpop.xlane.xlu1 %1022  ;;  %v1172_v32 = vmul.f32 %v6302_v44, %v1150_v39 }
 0x2a9   :  { %v5591_v51 = vpop.eup %5590  ;;  %v1106_v53 = vsub.f32 %v1058_v48, %v1090_v45  ;;  %v1059_v54 = vmul.f32 0.03125, %v1023_v50 }
 0x2aa   :  { %v1151_v56 = vmul.f32 %v5591_v51, %v1071_v35  ;;  %v946_v58 = vpop.xlane.xlu0 %945  ;;  %v1194_v6 = vadd.f32 %v6315_v63, %v1172_v32  ;;  %v1075_v51 = vsub.f32 %v6184_v59, %v6297_v41 }
 0x2ab   :  { %v1122_v60 = vadd.f32 1e-05, %v1106_v53  ;;  %v1107_v61 = vsub.f32 %v1059_v54, %v1091_v52  ;;  %v6310_v62 = vmul.f32 0.03125, %v946_v58 }
 0x2ac   :  { %v1173_v38 = vmul.f32 %v6302_v44, %v1151_v56  ;;  %v949_v0 = vpop.xlane.xlu1 %948 }
 0x2ad   :  { %5596 = vrsqrt.f32 %v1122_v60  ;;  %v1123_v1 = vadd.f32 1e-05, %v1107_v61  ;;  %v6319_v4 = vmul.f32 0.03125, %v949_v0  ;;  %v1092_v10 = vmul.f32 %v6310_v62, %v6310_v62 }
 0x2ae   :  { %v1026_v5 = vpop.xlane.xlu0 %1025  ;;  %v1195_v8 = vadd.f32 %v6315_v63, %v1173_v38 }
 0x2af   :  { %v5593_v9 = vpop.eup %5592  ;;  %5598 = vrsqrt.f32 %v1123_v1  ;;  %v1060_v12 = vmul.f32 0.03125, %v1026_v5  ;;  %v1093_v20 = vmul.f32 %v6319_v4, %v6319_v4  ;;  %v1076_v5 = vsub.f32 %v6196_v3, %v6310_v62 }
 0x2b0   :  { %v1029_v16 = vpop.xlane.xlu1 %1028  ;;  %v6327_v18 = vpack.c.bf16 %v1195_v8, %v1194_v6  ;;  %v1152_v43 = vmul.f32 %v5593_v9, %v1072_v2 }
 0x2b1   :  { %v5595_v19 = vpop.eup %5594  ;;  %v1108_v21 = vsub.f32 %v1060_v12, %v1092_v10  ;;  %v1061_v22 = vmul.f32 0.03125, %v1029_v16 }
 0x2b2   :  { %4526 = vmatmul.mubr.msk.bf16.vlgmr.msra.gmra.mrb[16].mxu1 %vm925_vm2, %v6327_v18  ;;  %v952_v24 = vpop.xlane.xlu0 %951  ;;  %v1153_v26 = vmul.f32 %v5595_v19, %v1073_v13  ;;  %v1174_v47 = vmul.f32 %v6302_v44, %v1152_v43  ;;  %v1077_v43 = vsub.f32 %v6200_v7, %v6319_v4 }
 0x2b3   :  { %v1124_v14 = vadd.f32 1e-05, %v1108_v21  ;;  %v1109_v27 = vsub.f32 %v1061_v22, %v1093_v20  ;;  %v6337_v28 = vmul.f32 0.03125, %v952_v24  ;;  %1332 = vmatprep.mubr.bf16.mxu1 %v5820_v40  ;;  %5020 = vmatpush3.bf16.msra.mxu1 %v6287_v57 }
 0x2b4   :  { %v955_v30 = vpop.xlane.xlu1 %954  ;;  %v1175_v31 = vmul.f32 %v6302_v44, %v1153_v26  ;;  %5021 = vmatprep.subr.bf16.mxu1 %v5549_v11  ;;  %v1196_v45 = vadd.f32 %v6315_v63, %v1174_v47 }
 0x2b5   :  { %5600 = vrsqrt.f32 %v1124_v14  ;;  %v1125_v33 = vadd.f32 1e-05, %v1109_v27  ;;  %v6344_v39 = vmul.f32 0.03125, %v955_v30  ;;  %v1094_v57 = vmul.f32 %v6337_v28, %v6337_v28 }
 0x2b6   :  { %v1032_v42 = vpop.xlane.xlu0 %1031  ;;  %v1197_v48 = vadd.f32 %v6315_v63, %v1175_v31 }
 0x2b7   :  { %v5597_v35 = vpop.eup %5596  ;;  %5602 = vrsqrt.f32 %v1125_v33  ;;  %v1062_v50 = vmul.f32 0.03125, %v1032_v42  ;;  %5022 = vmatpush3.bf16.msra.mxu1 %v5549_v11  ;;  %v1095_v54 = vmul.f32 %v6344_v39, %v6344_v39  ;;  %v1078_v33 = vsub.f32 %v6212_v15, %v6337_v28 }
 0x2b8   :  { %v1035_v52 = vpop.xlane.xlu1 %1034  ;;  %v6352_v53 = vpack.c.bf16 %v1197_v48, %v1196_v45  ;;  %v1154_v55 = vmul.f32 %v5597_v35, %v1074_v36 }
 0x2b9   :  { %v5599_v29 = vpop.eup %5598  ;;  %v1110_v32 = vsub.f32 %v1062_v50, %v1094_v57  ;;  %v1063_v56 = vmul.f32 0.03125, %v1035_v52 }
 0x2ba   :  { %4527 = vmatmul.mubr.msk.bf16.gmra.mrb[20].mxu1 %vm925_vm2, %v6352_v53  ;;  %v958_v58 = vpop.xlane.xlu0 %957  ;;  %v1155_v60 = vmul.f32 %v5599_v29, %v1075_v51  ;;  %v1176_v61 = vmul.f32 %v6302_v44, %v1154_v55  ;;  %v1079_v51 = vsub.f32 %v6216_v17, %v6344_v39 }
 0x2bb   :  { %v1126_v38 = vadd.f32 1e-05, %v1110_v32  ;;  %v1111_v0 = vsub.f32 %v1063_v56, %v1095_v54  ;;  %v6359_v59 = vmul.f32 0.03125, %v958_v58  ;;  %1342 = vmatprep.mubr.bf16.mxu1 %v5820_v40 }
 0x2bc   :  { %v961_v41 = vpop.xlane.xlu1 %960  ;;  %v1177_v1 = vmul.f32 %v6302_v44, %v1155_v60  ;;  %v1198_v9 = vadd.f32 %v6315_v63, %v1176_v61 }
 0x2bd   :  { %5604 = vrsqrt.f32 %v1126_v38  ;;  %v1127_v2 = vadd.f32 1e-05, %v1111_v0  ;;  %v6365_v6 = vmul.f32 0.03125, %v961_v41  ;;  %v1096_v13 = vmul.f32 %v6359_v59, %v6359_v59 }
 0x2be   :  { %v1038_v8 = vpop.xlane.xlu0 %1037  ;;  %v1199_v10 = vadd.f32 %v6315_v63, %v1177_v1  ;;  %v1080_v1 = vsub.f32 %v6228_v23, %v6359_v59 }
 0x2bf   :  { %v5601_v12 = vpop.eup %5600  ;;  %5606 = vrsqrt.f32 %v1127_v2  ;;  %v1064_v16 = vmul.f32 0.03125, %v1038_v8  ;;  %v1097_v20 = vmul.f32 %v6365_v6, %v6365_v6 }
 0x2c0   :  { %v1041_v11 = vpop.xlane.xlu1 %1040  ;;  %v6373_v19 = vpack.c.bf16 %v1199_v10, %v1198_v9  ;;  %v1156_v3 = vmul.f32 %v5601_v12, %v1076_v5 }
 0x2c1   :  { %v5603_v62 = vpop.eup %5602  ;;  %v1112_v21 = vsub.f32 %v1064_v16, %v1096_v13  ;;  %v1065_v22 = vmul.f32 0.03125, %v1041_v11  ;;  %v1081_v16 = vsub.f32 %v6232_v25, %v6365_v6 }
 0x2c2   :  { %4528 = vmatmul.mubr.msk.bf16.gmra.mrb[24].mxu1 %vm925_vm2, %v6373_v19  ;;  %v964_v24 = vpop.xlane.xlu0 %963  ;;  %v1157_v26 = vmul.f32 %v5603_v62, %v1077_v43  ;;  %v1178_v47 = vmul.f32 %v6302_v44, %v1156_v3 }
 0x2c3   :  { %v1128_v14 = vadd.f32 1e-05, %v1112_v21  ;;  %v1113_v27 = vsub.f32 %v1065_v22, %v1097_v20  ;;  %v6380_v7 = vmul.f32 0.03125, %v964_v24  ;;  %1352 = vmatprep.mubr.bf16.mxu1 %v5820_v40 }
 0x2c4   :  { %v967_v4 = vpop.xlane.xlu1 %966  ;;  %v1179_v30 = vmul.f32 %v6302_v44, %v1157_v26  ;;  %v1200_v45 = vadd.f32 %v6315_v63, %v1178_v47 }
 0x2c5   :  { %5608 = vrsqrt.f32 %v1128_v14  ;;  %v1129_v31 = vadd.f32 1e-05, %v1113_v27  ;;  %v6386_v36 = vmul.f32 0.03125, %v967_v4  ;;  %v1098_v57 = vmul.f32 %v6380_v7, %v6380_v7 }
 0x2c6   :  { %v1044_v42 = vpop.xlane.xlu0 %1043  ;;  %v1201_v48 = vadd.f32 %v6315_v63, %v1179_v30  ;;  %v1082_v6 = vsub.f32 %v6250_v34, %v6380_v7 }
 0x2c7   :  { %v5605_v35 = vpop.eup %5604  ;;  %5610 = vrsqrt.f32 %v1129_v31  ;;  %v1066_v50 = vmul.f32 0.03125, %v1044_v42  ;;  %v1099_v29 = vmul.f32 %v6386_v36, %v6386_v36  ;;  %v1083_v30 = vsub.f32 %v6254_v37, %v6386_v36 }
 0x2c8   :  { %v1047_v52 = vpop.xlane.xlu1 %1046  ;;  %v6394_v55 = vpack.c.bf16 %v1201_v48, %v1200_v45  ;;  %v1158_v15 = vmul.f32 %v5605_v35, %v1078_v33 }
 0x2c9   :  { %v5607_v28 = vpop.eup %5606  ;;  %v1114_v54 = vsub.f32 %v1066_v50, %v1098_v57  ;;  %v1067_v32 = vmul.f32 0.03125, %v1047_v52 }
 0x2ca   :  { %4529 = vmatmul.mubr.msk.bf16.gmra.mrb[28].mxu1 %vm925_vm2, %v6394_v55  ;;  %v970_v56 = vpop.xlane.xlu0 %969  ;;  %v1159_v58 = vmul.f32 %v5607_v28, %v1079_v51  ;;  %v1180_v60 = vmul.f32 %v6302_v44, %v1158_v15 }
 0x2cb   :  { %v1130_v61 = vadd.f32 1e-05, %v1114_v54  ;;  %v1115_v38 = vsub.f32 %v1067_v32, %v1099_v29  ;;  %v988_v17 = vmul.f32 0.03125, %v970_v56  ;;  %1362 = vmatprep.mubr.bf16.mxu1 %v5820_v40 }
 0x2cc   :  { %v973_v39 = vpop.xlane.xlu1 %972  ;;  %v1181_v0 = vmul.f32 %v6302_v44, %v1159_v58  ;;  %v1202_v8 = vadd.f32 %v6315_v63, %v1180_v60 }
 0x2cd   :  { %5612 = vrsqrt.f32 %v1130_v61  ;;  %v1131_v41 = vadd.f32 1e-05, %v1115_v38  ;;  %v989_v2 = vmul.f32 0.03125, %v973_v39  ;;  %v1100_v12 = vmul.f32 %v988_v17, %v988_v17 }
 0x2ce   :  { %v1050_v5 = vpop.xlane.xlu0 %1049  ;;  %v1203_v9 = vadd.f32 %v6315_v63, %v1181_v0  ;;  %v1084_v7 = vsub.f32 %v6267_v46, %v988_v17 }
 0x2cf   :  { %v5609_v10 = vpop.eup %5608  ;;  %5614 = vrsqrt.f32 %v1131_v41  ;;  %v1068_v13 = vmul.f32 0.03125, %v1050_v5  ;;  %v1101_v20 = vmul.f32 %v989_v2, %v989_v2  ;;  %v1085_v37 = vsub.f32 %v6271_v49, %v989_v2 }
 0x2d0   :  { %v1053_v43 = vpop.xlane.xlu1 %1052  ;;  %v1214_v11 = vpack.c.bf16 %v1203_v9, %v1202_v8  ;;  %v1160_v3 = vmul.f32 %v5609_v10, %v1080_v1  ;;  %v1219_v49 = vlaneseq }
 0x2d1   :  { %v5611_v62 = vpop.eup %5610  ;;  %v1116_v21 = vsub.f32 %v1068_v13, %v1100_v12  ;;  %v1069_v23 = vmul.f32 0.03125, %v1053_v43 }
 0x2d2   :  { %4530 = vmatmul.mubr.msk.bf16.gmra.mrb[32].mxu1 %vm925_vm2, %v1214_v11  ;;  %v1161_v59 = vmul.f32 %v5611_v62, %v1081_v16  ;;  %v1182_v22 = vmul.f32 %v6302_v44, %v1160_v3 }
 0x2d3   :  { %v1132_v24 = vadd.f32 1e-05, %v1116_v21  ;;  %v1117_v26 = vsub.f32 %v1069_v23, %v1101_v20  ;;  %1372 = vmatprep.mubr.bf16.mxu1 %v5820_v40 }
 0x2d4   :  { %v1183_v47 = vmul.f32 %v6302_v44, %v1161_v59  ;;  %v1204_v14 = vadd.f32 %v6315_v63, %v1182_v22 }
 0x2d5   :  { %5616 = vrsqrt.f32 %v1132_v24  ;;  %v1133_v25 = vadd.f32 1e-05, %v1117_v26 }
 0x2d6   :  { %v1205_v27 = vadd.f32 %v6315_v63, %v1183_v47 }
 0x2d7   :  { %v5613_v4 = vpop.eup %5612  ;;  %5618 = vrsqrt.f32 %v1133_v25 }
 0x2d8   :  { %v1215_v31 = vpack.c.bf16 %v1205_v27, %v1204_v14  ;;  %v1162_v33 = vmul.f32 %v5613_v4, %v1082_v6 }
 0x2d9   :  { %v5615_v42 = vpop.eup %5614 }
 0x2da   :  { %4531 = vmatmul.mubr.msk.bf16.gmra.mrb[36].mxu1 %vm925_vm2, %v1215_v31  ;;  %v1163_v45 = vmul.f32 %v5615_v42, %v1083_v30  ;;  %v1184_v48 = vmul.f32 %v6302_v44, %v1162_v33 }
 0x2db   :  { %1382 = vmatprep.mubr.bf16.mxu1 %v5820_v40 }
 0x2dc   :  { %v1185_v34 = vmul.f32 %v6302_v44, %v1163_v45  ;;  %v1206_v35 = vadd.f32 %v6315_v63, %v1184_v48 }
 0x2de   :  { %v1207_v57 = vadd.f32 %v6315_v63, %v1185_v34 }
 0x2df   :  { %v5617_v50 = vpop.eup %5616 }
 0x2e0   :  { %v1216_v36 = vpack.c.bf16 %v1207_v57, %v1206_v35  ;;  %v1164_v51 = vmul.f32 %v5617_v50, %v1084_v7 }
 0x2e1   :  { %v5619_v52 = vpop.eup %5618 }
 0x2e2   :  { %4532 = vmatmul.mubr.msk.bf16.gmra.mrb[40].mxu1 %vm925_vm2, %v1216_v36  ;;  %v1165_v15 = vmul.f32 %v5619_v52, %v1085_v37  ;;  %v1186_v28 = vmul.f32 %v6302_v44, %v1164_v51 }
 0x2e3   :  { %1392 = vmatprep.mubr.bf16.mxu1 %v5820_v40 }
 0x2e4   :  { %v1187_v29 = vmul.f32 %v6302_v44, %v1165_v15  ;;  %v1208_v46 = vadd.f32 %v6315_v63, %v1186_v28  ;;  %v6446_v44 = vshrl.u32 %v1219_v49, 7 }
 0x2e6   :  { %v1209_v54 = vadd.f32 %v6315_v63, %v1187_v29  ;;  %v1221_v63 = vsub.s32 0, %v6446_v44 }
 0x2e8   :  { %v1217_v32 = vpack.c.bf16 %v1209_v54, %v1208_v46 }
 0x2ea   :  { %4533 = vmatmul.mubr.msk.bf16.gmra.mrb[44].mxu1 %vm925_vm2, %v1217_v32 }
 0x2eb   :  { %5023 = vmatprep.mubr.msk.bf16.mxu1 %vm925_vm2, %v6327_v18  ;;  %v6452_v18 = vld [vmem:[%s7728_s12] sm:$0x7] }
 0x2f2   :  { %5024 = vmatmul.mubr.msk.bf16.vlgmr.msra.gmra.mrb[48].mxu1 %vm925_vm2, %v6352_v53  ;;  %v1225_v53 = vsub.s32 1, %v6446_v44 }
 0x2f3   :  { %5027 = vmatprep.mubr.msk.bf16.mxu1 %vm925_vm2, %v6373_v19  ;;  %v6458_v19 = vrot.slane %v6452_v18, %v1221_v63 }
 0x2f4   :  { %v6463_v56 = vrot.slane %v6452_v18, %v1225_v53 }
 0x2fa   :  { %5028 = vmatmul.mubr.msk.bf16.gmra.mrb[52].mxu1 %vm925_vm2, %v6394_v55 }
 0x2fb   :  { %5031 = vmatprep.mubr.msk.bf16.mxu1 %vm925_vm2, %v1214_v11 }
 0x302   :  { %5032 = vmatmul.mubr.msk.bf16.gmra.mrb[56].mxu1 %vm925_vm2, %v1215_v31 }
 0x303   :  { %5035 = vmatprep.mubr.msk.bf16.mxu1 %vm925_vm2, %v1216_v36 }
 0x30a   :  { %5036 = vmatmul.mubr.msk.bf16.gmra.mrb[60].mxu1 %vm925_vm2, %v1217_v32 }
 0x385   :  { %v1324_v55 = vpop.f32.mrb[16].mxu1 }
 0x386   :  { %v1326_v58 = vpop.f32.mrb[17].mxu1  ;;  %v1325_v61 = vadd.f32 %v1324_v55, %v6458_v19 }
 0x387   :  { %v1328_v60 = vpop.f32.mrb[18].mxu1  ;;  %v1327_v39 = vadd.f32 %v1326_v58, %v6463_v56 }
 0x388   :  { %v1329_v38 = vadd.f32 %v1328_v60, %v6458_v19  ;;  %v1330_v17 = vpop.f32.mrb[19].mxu1 }
 0x389   :  { %v1331_v0 = vadd.f32 %v1330_v17, %v6463_v56 }
 0x38a   :  { %v1500_v41 = vpack.c.bf16 %v1329_v38, %v1325_v61 }
 0x38b   :  { %v1508_v1 = vpack.c.bf16 %v1331_v0, %v1327_v39 }
 0x38c   :  { %5055 = vmatprep.mubr.bf16.mxu0 %v1500_v41 }
 0x38d   :  { %v1334_v2 = vpop.f32.mrb[20].mxu1  ;;  %5039 = vmatprep.subr.bf16.mxu0 %v1508_v1 }
 0x38e   :  { %v6470_v5 = vadd.f32 %v1334_v2, %v6458_v19  ;;  %v1336_v8 = vpop.f32.mrb[21].mxu1  ;;  %5040 = vmatpush3.bf16.xpose.msra.mxu0 %v1508_v1 }
 0x38f   :  { %v1338_v9 = vpop.f32.mrb[22].mxu1  ;;  %v1337_v13 = vadd.f32 %v1336_v8, %v6463_v56 }
 0x390   :  { %v6473_v10 = vadd.f32 %v1338_v9, %v6458_v19  ;;  %v1340_v12 = vpop.f32.mrb[23].mxu1 }
 0x391   :  { %v1341_v16 = vadd.f32 %v1340_v12, %v6463_v56 }
 0x392   :  { %v1501_v43 = vpack.c.bf16 %v6473_v10, %v6470_v5 }
 0x393   :  { %v1509_v11 = vpack.c.bf16 %v1341_v16, %v1337_v13 }
 0x395   :  { %v1344_v3 = vpop.f32.mrb[24].mxu1  ;;  %5041 = vmatprep.subr.bf16.mxu0 %v1509_v11 }
 0x396   :  { %v6480_v62 = vadd.f32 %v1344_v3, %v6458_v19  ;;  %v1346_v20 = vpop.f32.mrb[25].mxu1  ;;  %5042 = vmatpush3.bf16.xpose.msra.mxu0 %v1509_v11 }
 0x397   :  { %v1348_v21 = vpop.f32.mrb[26].mxu1  ;;  %v1347_v22 = vadd.f32 %v1346_v20, %v6463_v56 }
 0x398   :  { %v6483_v23 = vadd.f32 %v1348_v21, %v6458_v19  ;;  %v1350_v59 = vpop.f32.mrb[27].mxu1  ;;  %v1229_v21 = vsub.s32 2, %v6446_v44 }
 0x399   :  { %v1351_v24 = vadd.f32 %v1350_v59, %v6463_v56 }
 0x39a   :  { %v1502_v26 = vpack.c.bf16 %v6483_v23, %v6480_v62 }
 0x39b   :  { %v1510_v47 = vpack.c.bf16 %v1351_v24, %v1347_v22 }
 0x39d   :  { %v1354_v25 = vpop.f32.mrb[28].mxu1  ;;  %5043 = vmatprep.subr.bf16.mxu0 %v1510_v47 }
 0x39e   :  { %v6490_v6 = vadd.f32 %v1354_v25, %v6458_v19  ;;  %v1356_v14 = vpop.f32.mrb[29].mxu1  ;;  %5044 = vmatpush3.bf16.xpose.msra.mxu0 %v1510_v47  ;;  %v1230_v25 = vrot.slane %v6452_v18, %v1229_v21 }
 0x39f   :  { %v1358_v27 = vpop.f32.mrb[30].mxu1  ;;  %v1357_v31 = vadd.f32 %v1356_v14, %v6463_v56 }
 0x3a0   :  { %v6493_v4 = vadd.f32 %v1358_v27, %v6458_v19  ;;  %v1360_v30 = vpop.f32.mrb[31].mxu1 }
 0x3a1   :  { %v1361_v33 = vadd.f32 %v1360_v30, %v6463_v56 }
 0x3a2   :  { %v1503_v42 = vpack.c.bf16 %v6493_v4, %v6490_v6 }
 0x3a3   :  { %v1511_v45 = vpack.c.bf16 %v1361_v33, %v1357_v31 }
 0x3a5   :  { %v1364_v48 = vpop.f32.mrb[32].mxu1  ;;  %5045 = vmatprep.subr.bf16.mxu0 %v1511_v45 }
 0x3a6   :  { %v6500_v34 = vadd.f32 %v1364_v48, %v6458_v19  ;;  %v1366_v7 = vpop.f32.mrb[33].mxu1  ;;  %5046 = vmatpush3.bf16.xpose.msra.mxu0 %v1511_v45 }
 0x3a7   :  { %v1368_v35 = vpop.f32.mrb[34].mxu1  ;;  %v1367_v37 = vadd.f32 %v1366_v7, %v6463_v56 }
 0x3a8   :  { %v6503_v57 = vadd.f32 %v1368_v35, %v6458_v19  ;;  %v1370_v50 = vpop.f32.mrb[35].mxu1 }
 0x3a9   :  { %v1371_v36 = vadd.f32 %v1370_v50, %v6463_v56 }
 0x3aa   :  { %v1504_v51 = vpack.c.bf16 %v6503_v57, %v6500_v34 }
 0x3ab   :  { %v1512_v52 = vpack.c.bf16 %v1371_v36, %v1367_v37 }
 0x3ad   :  { %v1374_v15 = vpop.f32.mrb[36].mxu1  ;;  %5047 = vmatprep.subr.bf16.mxu0 %v1512_v52 }
 0x3ae   :  { %v6510_v28 = vadd.f32 %v1374_v15, %v6458_v19  ;;  %v1376_v29 = vpop.f32.mrb[37].mxu1  ;;  %5048 = vmatpush3.bf16.xpose.msra.mxu0 %v1512_v52 }
 0x3af   :  { %v1378_v46 = vpop.f32.mrb[38].mxu1  ;;  %v1377_v49 = vadd.f32 %v1376_v29, %v6463_v56 }
 0x3b0   :  { %v6513_v54 = vadd.f32 %v1378_v46, %v6458_v19  ;;  %v1380_v32 = vpop.f32.mrb[39].mxu1 }
 0x3b1   :  { %v1381_v55 = vadd.f32 %v1380_v32, %v6463_v56 }
 0x3b2   :  { %v1505_v58 = vpack.c.bf16 %v6513_v54, %v6510_v28 }
 0x3b3   :  { %v1513_v60 = vpack.c.bf16 %v1381_v55, %v1377_v49 }
 0x3b5   :  { %v1384_v61 = vpop.f32.mrb[40].mxu1  ;;  %5049 = vmatprep.subr.bf16.mxu0 %v1513_v60 }
 0x3b6   :  { %v6520_v38 = vadd.f32 %v1384_v61, %v6458_v19  ;;  %v1386_v17 = vpop.f32.mrb[41].mxu1  ;;  %5050 = vmatpush3.bf16.xpose.msra.mxu0 %v1513_v60 }
 0x3b7   :  { %v1388_v39 = vpop.f32.mrb[42].mxu1  ;;  %v1387_v1 = vadd.f32 %v1386_v17, %v6463_v56 }
 0x3b8   :  { %v6523_v0 = vadd.f32 %v1388_v39, %v6458_v19  ;;  %v1390_v41 = vpop.f32.mrb[43].mxu1 }
 0x3b9   :  { %v1391_v2 = vadd.f32 %v1390_v41, %v6463_v56 }
 0x3ba   :  { %v1506_v8 = vpack.c.bf16 %v6523_v0, %v6520_v38 }
 0x3bb   :  { %v1514_v9 = vpack.c.bf16 %v1391_v2, %v1387_v1 }
 0x3bd   :  { %v1394_v12 = vpop.f32.mrb[44].mxu1  ;;  %5051 = vmatprep.subr.bf16.mxu0 %v1514_v9 }
 0x3be   :  { %v6530_v13 = vadd.f32 %v1394_v12, %v6458_v19  ;;  %v1396_v16 = vpop.f32.mrb[45].mxu1  ;;  %5052 = vmatpush3.bf16.xpose.msra.mxu0 %v1514_v9 }
 0x3bf   :  { %v1398_v11 = vpop.f32.mrb[46].mxu1  ;;  %v1397_v59 = vadd.f32 %v1396_v16, %v6463_v56  ;;  %v137_v16 = vld [vmem:[%s7729_s11 + $0x10] sm:$0xff] }
 0x3c0   :  { %v6533_v3 = vadd.f32 %v1398_v11, %v6458_v19  ;;  %v1400_v20 = vpop.f32.mrb[47].mxu1 }
 0x3c1   :  { %v1401_v22 = vadd.f32 %v1400_v20, %v6463_v56  ;;  %v138_v20 = vld [vmem:[%s7729_s11 + $0x18] sm:$0xff] }
 0x3c2   :  { %v1507_v24 = vpack.c.bf16 %v6533_v3, %v6530_v13 }
 0x3c3   :  { %v1515_v47 = vpack.c.bf16 %v1401_v22, %v1397_v59 }
 0x3c5   :  { %v5025_v14 = vpop.f32.mrb[48].mxu1  ;;  %5053 = vmatprep.subr.bf16.mxu0 %v1515_v47 }
 0x3c6   :  { %v1437_v27 = vpop.f32.mrb[49].mxu1  ;;  %5054 = vmatpush3.bf16.xpose.msra.mxu0 %v1515_v47  ;;  %v1446_v30 = vadd.f32 %v5025_v14, %v1230_v25  ;;  %v139_v47 = vld [vmem:[%s7729_s11 + $0x20] sm:$0xff] }
 0x3c7   :  { %v5026_v19 = vpop.f32.mrb[50].mxu1  ;;  %v1438_v45 = vadd.f32 %v1437_v27, %v1230_v25 }
 0x3c8   :  { %v1449_v31 = vadd.f32 %v5026_v19, %v1230_v25  ;;  %v1440_v33 = vpop.f32.mrb[51].mxu1 }
 0x3c9   :  { %v1441_v48 = vadd.f32 %v1440_v33, %v1230_v25 }
 0x3ca   :  { %v1798_v7 = vpack.c.bf16 %v1449_v31, %v1446_v30  ;;  %v140_v30 = vld [vmem:[%s7729_s11 + $0x28] sm:$0xff] }
 0x3cb   :  { %v1797_v56 = vpack.c.bf16 %v1441_v48, %v1438_v45  ;;  %v141_v48 = vld [vmem:[%s7729_s11 + $0x30] sm:$0xff] }
 0x3cd   :  { %v5029_v35 = vpop.f32.mrb[52].mxu1  ;;  %5056 = vmatmul.mubr.bf16.vlgmr.msra.gmra.mrb[32].mxu0 %v1501_v43  ;;  %5071 = vmatprep.subr.bf16.mxu1 %v1797_v56 }
 0x3ce   :  { %v1453_v50 = vpop.f32.mrb[53].mxu1  ;;  %5059 = vmatprep.mubr.bf16.mxu0 %v1502_v26  ;;  %5072 = vmatpush3.bf16.msra.mxu1 %v1797_v56  ;;  %v1462_v37 = vadd.f32 %v5029_v35, %v1230_v25  ;;  %v142_v35 = vld [vmem:[%s7729_s11 + $0x38] sm:$0xff] }
 0x3cf   :  { %v5030_v18 = vpop.f32.mrb[54].mxu1  ;;  %5073 = vmatprep.subr.bf16.mxu1 %v1798_v7  ;;  %v1454_v15 = vadd.f32 %v1453_v50, %v1230_v25 }
 0x3d0   :  { %v1465_v36 = vadd.f32 %v5030_v18, %v1230_v25  ;;  %v1456_v52 = vpop.f32.mrb[55].mxu1 }
 0x3d1   :  { %v1457_v29 = vadd.f32 %v1456_v52, %v1230_v25 }
 0x3d2   :  { %v1800_v46 = vpack.c.bf16 %v1465_v36, %v1462_v37  ;;  %5074 = vmatpush3.bf16.msra.mxu1 %v1798_v7  ;;  %v143_v36 = vld [vmem:[%s7729_s11 + $0x40] sm:$0xff] }
 0x3d3   :  { %v1799_v32 = vpack.c.bf16 %v1457_v29, %v1454_v15 }
 0x3d5   :  { %v5033_v49 = vpop.f32.mrb[56].mxu1  ;;  %5060 = vmatmul.mubr.bf16.gmra.mrb[36].mxu0 %v1503_v42  ;;  %5075 = vmatprep.subr.bf16.mxu1 %v1799_v32 }
 0x3d6   :  { %v1469_v5 = vpop.f32.mrb[57].mxu1  ;;  %5063 = vmatprep.mubr.bf16.mxu0 %v1504_v51  ;;  %5076 = vmatpush3.bf16.msra.mxu1 %v1799_v32  ;;  %v1478_v43 = vadd.f32 %v5033_v49, %v1230_v25  ;;  %v144_v32 = vld [vmem:[%s7729_s11 + $0x48] sm:$0xff] }
 0x3d7   :  { %v5034_v10 = vpop.f32.mrb[58].mxu1  ;;  %5077 = vmatprep.subr.bf16.mxu1 %v1800_v46  ;;  %v1470_v26 = vadd.f32 %v1469_v5, %v1230_v25 }
 0x3d8   :  { %v1481_v62 = vadd.f32 %v5034_v10, %v1230_v25  ;;  %v1472_v23 = vpop.f32.mrb[59].mxu1 }
 0x3d9   :  { %v1473_v55 = vadd.f32 %v1472_v23, %v1230_v25 }
 0x3da   :  { %v1802_v60 = vpack.c.bf16 %v1481_v62, %v1478_v43  ;;  %5078 = vmatpush3.bf16.msra.mxu1 %v1800_v46  ;;  %v145_v43 = vld [vmem:[%s7729_s11 + $0x50] sm:$0xff] }
 0x3db   :  { %v1801_v61 = vpack.c.bf16 %v1473_v55, %v1470_v26  ;;  %v146_v26 = vld [vmem:[%s7729_s11 + $0x58] sm:$0xff] }
 0x3dd   :  { %v5037_v17 = vpop.f32.mrb[60].mxu1  ;;  %5064 = vmatmul.mubr.bf16.gmra.mrb[40].mxu0 %v1505_v58  ;;  %5079 = vmatprep.subr.bf16.mxu1 %v1801_v61  ;;  %v135_v58 = vld [vmem:[%s7729_s11] sm:$0xff] }
 0x3de   :  { %v1485_v6 = vpop.f32.mrb[61].mxu1  ;;  %5067 = vmatprep.mubr.bf16.mxu0 %v1506_v8  ;;  %5080 = vmatpush3.bf16.msra.mxu1 %v1801_v61  ;;  %v1494_v42 = vadd.f32 %v5037_v17, %v1230_v25  ;;  %v136_v8 = vld [vmem:[%s7729_s11 + $0x8] sm:$0xff]  ;;  %v147_v17 = vld [vmem:[%s7729_s11 + $0x60] sm:$0xff] }
 0x3df   :  { %v5038_v4 = vpop.f32.mrb[62].mxu1  ;;  %5081 = vmatprep.subr.bf16.mxu1 %v1802_v60  ;;  %v1486_v51 = vadd.f32 %v1485_v6, %v1230_v25 }
 0x3e0   :  { %v1497_v34 = vadd.f32 %v5038_v4, %v1230_v25  ;;  %v1488_v57 = vpop.f32.mrb[63].mxu1 }
 0x3e1   :  { %v1489_v39 = vadd.f32 %v1488_v57, %v1230_v25  ;;  %v148_v57 = vld [vmem:[%s7729_s11 + $0x68] sm:$0xff] }
 0x3e2   :  { %v1804_v41 = vpack.c.bf16 %v1497_v34, %v1494_v42  ;;  %5082 = vmatpush3.bf16.msra.mxu1 %v1802_v60 }
 0x3e3   :  { %v1803_v1 = vpack.c.bf16 %v1489_v39, %v1486_v51 }
 0x3e5   :  { %5068 = vmatmul.mubr.bf16.gmra.mrb[44].mxu0 %v1507_v24  ;;  %5083 = vmatprep.subr.bf16.mxu1 %v1803_v1 }
 0x3e6   :  { %5084 = vmatpush3.bf16.msra.mxu1 %v1803_v1  ;;  %v149_v1 = vld [vmem:[%s7729_s11 + $0x70] sm:$0xff] }
 0x3e7   :  { %5085 = vmatprep.subr.bf16.mxu1 %v1804_v41 }
 0x3ea   :  { %5086 = vmatpush3.bf16.msra.mxu1 %v1804_v41 }
 0x4a0   :  { %v5057_v28 = vpop.f32.mrb[32].mxu0 }
 0x4a1   :  { %v1550_v54 = vpop.f32.mrb[33].mxu0  ;;  %v1615_v9 = vmul.f32 0.17677669, %v5057_v28 }
 0x4a2   :  { %v1613_v38 = vmul.f32 0.17677669, %v1550_v54  ;;  %v5058_v0 = vpop.f32.mrb[34].mxu0 }
 0x4a3   :  { %v1553_v2 = vpop.f32.mrb[35].mxu0  ;;  %v1616_v11 = vmul.f32 0.17677669, %v5058_v0  ;;  %v6582_v22 = vadd.f32 %v1615_v9, %v137_v16 }
 0x4a4   :  { %v1614_v12 = vmul.f32 0.17677669, %v1553_v2  ;;  %v6570_v13 = vadd.f32 %v1613_v38, %v135_v58  ;;  %v150_v58 = vld [vmem:[%s7729_s11 + $0x78] sm:$0xff] }
 0x4a5   :  { %v6588_v27 = vadd.f32 %v1616_v11, %v138_v20 }
 0x4a6   :  { %1645 = vmax.xlane.f32.xlu0 %v6570_v13  ;;  %v6576_v3 = vadd.f32 %v1614_v12, %v136_v8 }
 0x4a8   :  { %1647 = vmax.xlane.f32.xlu1 %v6576_v3  ;;  %v5061_v59 = vpop.f32.mrb[36].mxu0 }
 0x4a9   :  { %v1566_v24 = vpop.f32.mrb[37].mxu0  ;;  %v1619_v31 = vmul.f32 0.17677669, %v5061_v59 }
 0x4aa   :  { %v1617_v25 = vmul.f32 0.17677669, %v1566_v24  ;;  %1649 = vmax.xlane.f32.xlu0 %v6582_v22  ;;  %v5062_v14 = vpop.f32.mrb[38].mxu0 }
 0x4ab   :  { %v1569_v19 = vpop.f32.mrb[39].mxu0  ;;  %v1620_v7 = vmul.f32 0.17677669, %v5062_v14  ;;  %v6606_v18 = vadd.f32 %v1619_v31, %v141_v48 }
 0x4ac   :  { %v1618_v33 = vmul.f32 0.17677669, %v1569_v19  ;;  %1651 = vmax.xlane.f32.xlu1 %v6588_v27  ;;  %v6594_v45 = vadd.f32 %v1617_v25, %v139_v47 }
 0x4ad   :  { %v6612_v29 = vadd.f32 %v1620_v7, %v142_v35 }
 0x4ae   :  { %1653 = vmax.xlane.f32.xlu0 %v6594_v45  ;;  %v6600_v56 = vadd.f32 %v1618_v33, %v140_v30 }
 0x4b0   :  { %1655 = vmax.xlane.f32.xlu1 %v6600_v56  ;;  %v5065_v50 = vpop.f32.mrb[40].mxu0 }
 0x4b1   :  { %v1582_v37 = vpop.f32.mrb[41].mxu0  ;;  %v1623_v49 = vmul.f32 0.17677669, %v5065_v50 }
 0x4b2   :  { %v1621_v52 = vmul.f32 0.17677669, %v1582_v37  ;;  %1657 = vmax.xlane.f32.xlu0 %v6606_v18  ;;  %v5066_v15 = vpop.f32.mrb[42].mxu0 }
 0x4b3   :  { %v1585_v46 = vpop.f32.mrb[43].mxu0  ;;  %v1624_v62 = vmul.f32 0.17677669, %v5066_v15  ;;  %v6630_v60 = vadd.f32 %v1623_v49, %v145_v43 }
 0x4b4   :  { %v1622_v5 = vmul.f32 0.17677669, %v1585_v46  ;;  %1659 = vmax.xlane.f32.xlu1 %v6612_v29  ;;  %v6618_v10 = vadd.f32 %v1621_v52, %v143_v36 }
 0x4b5   :  { %v6636_v42 = vadd.f32 %v1624_v62, %v146_v26 }
 0x4b6   :  { %1661 = vmax.xlane.f32.xlu0 %v6618_v10  ;;  %v6624_v23 = vadd.f32 %v1622_v5, %v144_v32 }
 0x4b8   :  { %1663 = vmax.xlane.f32.xlu1 %v6624_v23  ;;  %v5069_v55 = vpop.f32.mrb[44].mxu0 }
 0x4b9   :  { %v1598_v61 = vpop.f32.mrb[45].mxu0  ;;  %v1627_v51 = vmul.f32 0.17677669, %v5069_v55 }
 0x4ba   :  { %v1625_v6 = vmul.f32 0.17677669, %v1598_v61  ;;  %1665 = vmax.xlane.f32.xlu0 %v6630_v60  ;;  %v5070_v4 = vpop.f32.mrb[46].mxu0 }
 0x4bb   :  { %v1601_v34 = vpop.f32.mrb[47].mxu0  ;;  %v1628_v28 = vmul.f32 0.17677669, %v5070_v4  ;;  %v6654_v38 = vadd.f32 %v1627_v51, %v149_v1 }
 0x4bc   :  { %v1626_v39 = vmul.f32 0.17677669, %v1601_v34  ;;  %1667 = vmax.xlane.f32.xlu1 %v6636_v42  ;;  %v6642_v41 = vadd.f32 %v1625_v6, %v147_v17 }
 0x4bd   :  { %v6657_v0 = vadd.f32 %v1628_v28, %v150_v58 }
 0x4be   :  { %1669 = vmax.xlane.f32.xlu0 %v6642_v41  ;;  %v6648_v54 = vadd.f32 %v1626_v39, %v148_v57 }
 0x4c0   :  { %1671 = vmax.xlane.f32.xlu1 %v6648_v54 }
 0x4c2   :  { %1673 = vmax.xlane.f32.xlu0 %v6654_v38 }
 0x4c4   :  { %1675 = vmax.xlane.f32.xlu1 %v6657_v0 }
 0x533   :  { %v1646_v2 = vpop.xlane.xlu0 %1645 }
 0x534   :  { %v1677_v8 = vsub.f32 %v6570_v13, %v1646_v2 }
 0x535   :  { %v1648_v9 = vpop.xlane.xlu1 %1647 }
 0x536   :  { %v1693_v12 = vmul.f32 1.442695, %v1677_v8  ;;  %v1678_v16 = vsub.f32 %v6576_v3, %v1648_v9 }
 0x537   :  { %v1650_v11 = vpop.xlane.xlu0 %1649 }
 0x538   :  { %5620 = vpow2.f32 %v1693_v12  ;;  %v1695_v20 = vmul.f32 1.442695, %v1678_v16  ;;  %v1679_v59 = vsub.f32 %v6582_v22, %v1650_v11  ;;  %v5550_v11 = vld [vmem:[%s7685_s13] sm:$0xff]  }
 0x539   :  { %v1652_v24 = vpop.xlane.xlu1 %1651  ;;  %5103 = vmatprep.subr.bf16.mxu1 %v5550_v11 }
 0x53a   :  { %5622 = vpow2.f32 %v1695_v20  ;;  %v1697_v47 = vmul.f32 1.442695, %v1679_v59  ;;  %v1680_v25 = vsub.f32 %v6588_v27, %v1652_v24 }
 0x53b   :  { %v1654_v14 = vpop.xlane.xlu0 %1653 }
 0x53c   :  { %5624 = vpow2.f32 %v1697_v47  ;;  %v1699_v19 = vmul.f32 1.442695, %v1680_v25  ;;  %v1681_v30 = vsub.f32 %v6594_v45, %v1654_v14 }
 0x53d   :  { %v1656_v13 = vpop.xlane.xlu1 %1655 }
 0x53e   :  { %5626 = vpow2.f32 %v1699_v19  ;;  %v1701_v31 = vmul.f32 1.442695, %v1681_v30  ;;  %v1682_v3 = vsub.f32 %v6600_v56, %v1656_v13 }
 0x53f   :  { %v1658_v33 = vpop.xlane.xlu0 %1657 }
 0x540   :  { %5628 = vpow2.f32 %v1701_v31  ;;  %v1703_v48 = vmul.f32 1.442695, %v1682_v3  ;;  %v1683_v22 = vsub.f32 %v6606_v18, %v1658_v33 }
 0x541   :  { %v1660_v7 = vpop.xlane.xlu1 %1659 }
 0x542   :  { %v6667_v35 = vpop.eup %5620  ;;  %5630 = vpow2.f32 %v1703_v48  ;;  %v1705_v27 = vmul.f32 1.442695, %v1683_v22  ;;  %v1684_v50 = vsub.f32 %v6612_v29, %v1660_v7 }
 0x543   :  { %v1662_v37 = vpop.xlane.xlu0 %1661  ;;  %1725 = vadd.xlane.f32.xlu0 %v6667_v35 }
 0x544   :  { %v6671_v45 = vpop.eup %5622  ;;  %5632 = vpow2.f32 %v1705_v27  ;;  %v1707_v36 = vmul.f32 1.442695, %v1684_v50  ;;  %v1685_v56 = vsub.f32 %v6618_v10, %v1662_v37 }
 0x545   :  { %v1664_v52 = vpop.xlane.xlu1 %1663  ;;  %1727 = vadd.xlane.f32.xlu1 %v6671_v45 }
 0x546   :  { %v6675_v18 = vpop.eup %5624  ;;  %5634 = vpow2.f32 %v1707_v36  ;;  %v1709_v15 = vmul.f32 1.442695, %v1685_v56  ;;  %v1686_v46 = vsub.f32 %v6624_v23, %v1664_v52 }
 0x547   :  { %v1666_v32 = vpop.xlane.xlu0 %1665  ;;  %1729 = vadd.xlane.f32.xlu0 %v6675_v18 }
 0x548   :  { %v6679_v29 = vpop.eup %5626  ;;  %5636 = vpow2.f32 %v1709_v15  ;;  %v1711_v49 = vmul.f32 1.442695, %v1686_v46  ;;  %v1687_v5 = vsub.f32 %v6630_v60, %v1666_v32 }
 0x549   :  { %v1668_v43 = vpop.xlane.xlu1 %1667  ;;  %1731 = vadd.xlane.f32.xlu1 %v6679_v29 }
 0x54a   :  { %v6683_v10 = vpop.eup %5628  ;;  %5638 = vpow2.f32 %v1711_v49  ;;  %v1713_v62 = vmul.f32 1.442695, %v1687_v5  ;;  %v1688_v26 = vsub.f32 %v6636_v42, %v1668_v43  ;;  %v5552_v43 = vld [vmem:[%s7685_s13 + $0x10] sm:$0xff]  }
 0x54b   :  { %1733 = vadd.xlane.f32.xlu0 %v6683_v10  ;;  %v1670_v23 = vpop.xlane.xlu0 %1669 }
 0x54c   :  { %v6687_v55 = vpop.eup %5630  ;;  %5640 = vpow2.f32 %v1713_v62  ;;  %v1715_v61 = vmul.f32 1.442695, %v1688_v26  ;;  %v1689_v17 = vsub.f32 %v6642_v41, %v1670_v23 }
 0x54d   :  { %1735 = vadd.xlane.f32.xlu1 %v6687_v55  ;;  %v1672_v60 = vpop.xlane.xlu1 %1671 }
 0x54e   :  { %v6691_v6 = vpop.eup %5632  ;;  %5642 = vpow2.f32 %v1715_v61  ;;  %v1717_v4 = vmul.f32 1.442695, %v1689_v17  ;;  %v1690_v34 = vsub.f32 %v6648_v54, %v1672_v60  ;;  %v5553_v60 = vld [vmem:[%s7685_s13 + $0x18] sm:$0xff]  }
 0x54f   :  { %1737 = vadd.xlane.f32.xlu0 %v6691_v6  ;;  %v1674_v42 = vpop.xlane.xlu0 %1673 }
 0x550   :  { %v6695_v57 = vpop.eup %5634  ;;  %5644 = vpow2.f32 %v1717_v4  ;;  %v1719_v51 = vmul.f32 1.442695, %v1690_v34  ;;  %v1691_v39 = vsub.f32 %v6654_v38, %v1674_v42 }
 0x551   :  { %1739 = vadd.xlane.f32.xlu1 %v6695_v57  ;;  %v1676_v41 = vpop.xlane.xlu1 %1675 }
 0x552   :  { %v6699_v1 = vpop.eup %5636  ;;  %5646 = vpow2.f32 %v1719_v51  ;;  %v1721_v28 = vmul.f32 1.442695, %v1691_v39  ;;  %v1692_v58 = vsub.f32 %v6657_v0, %v1676_v41  ;;  %v5554_v39 = vld [vmem:[%s7685_s13 + $0x20] sm:$0xff]  }
 0x553   :  { %1741 = vadd.xlane.f32.xlu0 %v6699_v1 }
 0x554   :  { %v6703_v54 = vpop.eup %5638  ;;  %5648 = vpow2.f32 %v1721_v28  ;;  %v1723_v2 = vmul.f32 1.442695, %v1692_v58 }
 0x555   :  { %1743 = vadd.xlane.f32.xlu1 %v6703_v54 }
 0x556   :  { %v6706_v8 = vpop.eup %5640  ;;  %5650 = vpow2.f32 %v1723_v2 }
 0x557   :  { %1745 = vadd.xlane.f32.xlu0 %v6706_v8 }
 0x558   :  { %v6709_v38 = vpop.eup %5642 }
 0x559   :  { %1747 = vadd.xlane.f32.xlu1 %v6709_v38 }
 0x55a   :  { %v6712_v9 = vpop.eup %5644 }
 0x55b   :  { %1749 = vadd.xlane.f32.xlu0 %v6712_v9 }
 0x55c   :  { %v6715_v0 = vpop.eup %5646 }
 0x55d   :  { %1751 = vadd.xlane.f32.xlu1 %v6715_v0 }
 0x55e   :  { %v6718_v12 = vpop.eup %5648 }
 0x55f   :  { %1753 = vadd.xlane.f32.xlu0 %v6718_v12 }
 0x560   :  { %v6721_v16 = vpop.eup %5650 }
 0x561   :  { %1755 = vadd.xlane.f32.xlu1 %v6721_v16 }
 0x5d0   :  { %v1726_v20 = vpop.xlane.xlu0 %1725 }
 0x5d1   :  { %5652 = vrcp.f32 %v1726_v20 }
 0x5d2   :  { %v1728_v59 = vpop.xlane.xlu1 %1727 }
 0x5d3   :  { %5654 = vrcp.f32 %v1728_v59 }
 0x5d4   :  { %v1730_v24 = vpop.xlane.xlu0 %1729 }
 0x5d5   :  { %5656 = vrcp.f32 %v1730_v24 }
 0x5d6   :  { %v1732_v47 = vpop.xlane.xlu1 %1731 }
 0x5d7   :  { %5658 = vrcp.f32 %v1732_v47 }
 0x5d8   :  { %v1734_v25 = vpop.xlane.xlu0 %1733 }
 0x5d9   :  { %5660 = vrcp.f32 %v1734_v25 }
 0x5da   :  { %v1736_v14 = vpop.xlane.xlu1 %1735 }
 0x5db   :  { %v5653_v19 = vpop.eup %5652  ;;  %5662 = vrcp.f32 %v1736_v14 }
 0x5dc   :  { %v1738_v30 = vpop.xlane.xlu0 %1737  ;;  %v1773_v3 = vmul.f32 %v5653_v19, %v6667_v35  ;;  %v5551_v35 = vld [vmem:[%s7685_s13 + $0x8] sm:$0xff]   ;;  %v5556_v19 = vld [vmem:[%s7685_s13 + $0x30] sm:$0xff]  }
 0x5dd   :  { %v5655_v13 = vpop.eup %5654  ;;  %5664 = vrcp.f32 %v1738_v30 }
 0x5de   :  { %v1740_v31 = vpop.xlane.xlu1 %1739  ;;  %v1774_v33 = vmul.f32 %v5655_v13, %v6671_v45 }
 0x5df   :  { %v5657_v48 = vpop.eup %5656  ;;  %5666 = vrcp.f32 %v1740_v31 }
 0x5e0   :  { %v1742_v22 = vpop.xlane.xlu0 %1741  ;;  %v1789_v7 = vpack.c.bf16 %v1774_v33, %v1773_v3  ;;  %v1775_v50 = vmul.f32 %v5657_v48, %v6675_v18 }
 0x5e1   :  { %v5659_v27 = vpop.eup %5658  ;;  %5668 = vrcp.f32 %v1742_v22 }
 0x5e2   :  { %v1776_v37 = vmul.f32 %v5659_v27, %v6679_v29  ;;  %5087 = vmatprep.mubr.bf16.mxu1 %v1789_v7  ;;  %v1744_v36 = vpop.xlane.xlu1 %1743 }
 0x5e3   :  { %v5661_v56 = vpop.eup %5660  ;;  %5670 = vrcp.f32 %v1744_v36 }
 0x5e4   :  { %v1746_v52 = vpop.xlane.xlu0 %1745  ;;  %v1790_v15 = vpack.c.bf16 %v1776_v37, %v1775_v50  ;;  %v1777_v32 = vmul.f32 %v5661_v56, %v6683_v10 }
 0x5e5   :  { %v5663_v45 = vpop.eup %5662  ;;  %5672 = vrcp.f32 %v1746_v52 }
 0x5e6   :  { %5088 = vmatmul.mubr.bf16.vlgmr.msra.gmra.mrb[64].mxu1 %v1790_v15  ;;  %v1748_v46 = vpop.xlane.xlu1 %1747  ;;  %v1778_v18 = vmul.f32 %v5663_v45, %v6687_v55 }
 0x5e7   :  { %v5665_v49 = vpop.eup %5664  ;;  %5674 = vrcp.f32 %v1748_v46  ;;  %5104 = vmatpush3.bf16.msra.mxu1 %v5550_v11 }
 0x5e8   :  { %v1750_v29 = vpop.xlane.xlu0 %1749  ;;  %v1791_v5 = vpack.c.bf16 %v1778_v18, %v1777_v32  ;;  %5105 = vmatprep.subr.bf16.mxu1 %v5551_v35  ;;  %v1779_v23 = vmul.f32 %v5665_v49, %v6691_v6 }
 0x5e9   :  { %v5667_v62 = vpop.eup %5666  ;;  %5676 = vrcp.f32 %v1750_v29 }
 0x5ea   :  { %5091 = vmatprep.mubr.bf16.mxu1 %v1791_v5  ;;  %v1752_v26 = vpop.xlane.xlu1 %1751  ;;  %v1780_v10 = vmul.f32 %v5667_v62, %v6695_v57 }
 0x5eb   :  { %v5669_v61 = vpop.eup %5668  ;;  %5678 = vrcp.f32 %v1752_v26  ;;  %5106 = vmatpush3.bf16.msra.mxu1 %v5551_v35 }
 0x5ec   :  { %v1754_v55 = vpop.xlane.xlu0 %1753  ;;  %v1792_v17 = vpack.c.bf16 %v1780_v10, %v1779_v23  ;;  %5107 = vmatprep.subr.bf16.mxu1 %v5552_v43  ;;  %v1781_v42 = vmul.f32 %v5669_v61, %v6699_v1 }
 0x5ed   :  { %v5671_v4 = vpop.eup %5670  ;;  %5680 = vrcp.f32 %v1754_v55 }
 0x5ee   :  { %5092 = vmatmul.mubr.bf16.gmra.mrb[68].mxu1 %v1792_v17  ;;  %v1756_v34 = vpop.xlane.xlu1 %1755  ;;  %v1782_v6 = vmul.f32 %v5671_v4, %v6703_v54  ;;  %v5555_v54 = vld [vmem:[%s7685_s13 + $0x28] sm:$0xff]  }
 0x5ef   :  { %v5673_v51 = vpop.eup %5672  ;;  %5682 = vrcp.f32 %v1756_v34  ;;  %5108 = vmatpush3.bf16.msra.mxu1 %v5552_v43 }
 0x5f0   :  { %v1793_v57 = vpack.c.bf16 %v1782_v6, %v1781_v42  ;;  %5109 = vmatprep.subr.bf16.mxu1 %v5553_v60  ;;  %v1783_v28 = vmul.f32 %v5673_v51, %v6706_v8 }
 0x5f1   :  { %v5675_v41 = vpop.eup %5674 }
 0x5f2   :  { %5095 = vmatprep.mubr.bf16.mxu1 %v1793_v57  ;;  %v1784_v58 = vmul.f32 %v5675_v41, %v6709_v38  ;;  %v5780_v57 = vld [vmem:[%s7719_s7] sm:$0xff]  }
 0x5f3   :  { %v5677_v2 = vpop.eup %5676  ;;  %5110 = vmatpush3.bf16.msra.mxu1 %v5553_v60 }
 0x5f4   :  { %v1794_v1 = vpack.c.bf16 %v1784_v58, %v1783_v28  ;;  %5111 = vmatprep.subr.bf16.mxu1 %v5554_v39  ;;  %v1785_v20 = vmul.f32 %v5677_v2, %v6712_v9  ;;  %v5557_v9 = vld [vmem:[%s7685_s13 + $0x38] sm:$0xff]  }
 0x5f5   :  { %v5679_v11 = vpop.eup %5678 }
 0x5f6   :  { %5096 = vmatmul.mubr.bf16.gmra.mrb[72].mxu1 %v1794_v1  ;;  %v1786_v59 = vmul.f32 %v5679_v11, %v6715_v0 }
 0x5f7   :  { %v5681_v24 = vpop.eup %5680  ;;  %5112 = vmatpush3.bf16.msra.mxu1 %v5554_v39  ;;  %v5558_v39 = vld [vmem:[%s7686_s1] sm:$0xff]  }
 0x5f8   :  { %v1795_v47 = vpack.c.bf16 %v1786_v59, %v1785_v20  ;;  %5113 = vmatprep.subr.bf16.mxu1 %v5555_v54  ;;  %v1787_v38 = vmul.f32 %v5681_v24, %v6718_v12  ;;  %5151 = vmatprep.mubr.bf16.mxu0 %v5558_v39 }
 0x5f9   :  { %v5683_v8 = vpop.eup %5682 }
 0x5fa   :  { %5099 = vmatprep.mubr.bf16.mxu1 %v1795_v47  ;;  %v1788_v25 = vmul.f32 %v5683_v8, %v6721_v16 }
 0x5fb   :  { %5114 = vmatpush3.bf16.msra.mxu1 %v5555_v54 }
 0x5fc   :  { %v1796_v14 = vpack.c.bf16 %v1788_v25, %v1787_v38  ;;  %5115 = vmatprep.subr.bf16.mxu1 %v5556_v19 }
 0x5fe   :  { %5100 = vmatmul.mubr.bf16.gmra.mrb[76].mxu1 %v1796_v14 }
 0x5ff   :  { %5116 = vmatpush3.bf16.msra.mxu1 %v5556_v19 }
 0x600   :  { %5117 = vmatprep.subr.bf16.mxu1 %v5557_v9 }
 0x603   :  { %5118 = vmatpush3.bf16.msra.mxu1 %v5557_v9 }
 0x6b9   :  { %v5089_v0 = vpop.f32.mrb[64].mxu1 }
 0x6ba   :  { %v1839_v30 = vpop.f32.mrb[65].mxu1  ;;  %v1904_v13 = vmax.f32 %v5089_v0, 0.0 }
 0x6bb   :  { %v5090_v12 = vpop.f32.mrb[66].mxu1  ;;  %v1902_v3 = vmax.f32 %v1839_v30, 0.0 }
 0x6bc   :  { %v1905_v16 = vmax.f32 %v5090_v12, 0.0  ;;  %v1842_v31 = vpop.f32.mrb[67].mxu1 }
 0x6bd   :  { %v1903_v33 = vmax.f32 %v1842_v31, 0.0 }
 0x6be   :  { %v1919_v48 = vpack.c.bf16 %v1905_v16, %v1904_v13 }
 0x6bf   :  { %v1918_v22 = vpack.c.bf16 %v1903_v33, %v1902_v3  ;;  %v5559_v33 = vld [vmem:[%s7686_s1 + $0x8] sm:$0xff]  }
 0x6c1   :  { %v5093_v7 = vpop.f32.mrb[68].mxu1  ;;  %5119 = vmatprep.mubr.bf16.mxu1 %v1918_v22  ;;  %v5561_v22 = vld [vmem:[%s7686_s1 + $0x18] sm:$0xff]  }
 0x6c2   :  { %v1855_v27 = vpop.f32.mrb[69].mxu1  ;;  %5120 = vmatmul.mubr.bf16.vlgmr.msra.gmra.mrb[80].mxu1 %v1919_v48  ;;  %v1908_v37 = vmax.f32 %v5093_v7, 0.0  ;;  %v5560_v48 = vld [vmem:[%s7686_s1 + $0x10] sm:$0xff]   ;;  %v5562_v7 = vld [vmem:[%s7686_s1 + $0x20] sm:$0xff]  }
 0x6c3   :  { %v5094_v50 = vpop.f32.mrb[70].mxu1  ;;  %v1906_v52 = vmax.f32 %v1855_v27, 0.0  ;;  %v5563_v27 = vld [vmem:[%s7686_s1 + $0x28] sm:$0xff]  }
 0x6c4   :  { %v1909_v36 = vmax.f32 %v5094_v50, 0.0  ;;  %v1858_v56 = vpop.f32.mrb[71].mxu1  ;;  %v5564_v50 = vld [vmem:[%s7686_s1 + $0x30] sm:$0xff]  }
 0x6c5   :  { %v1907_v15 = vmax.f32 %v1858_v56, 0.0  ;;  %v6797_v56 = vld [vmem:[%s7689_s14] ss:$0 sm:$0xff] }
 0x6c6   :  { %v1921_v35 = vpack.c.bf16 %v1909_v36, %v1908_v37  ;;  %v5565_v37 = vld [vmem:[%s7686_s1 + $0x38] sm:$0xff]   ;;  %v5781_v36 = vld [vmem:[%s7720_s5] sm:$0xff]  }
 0x6c7   :  { %v1920_v45 = vpack.c.bf16 %v1907_v15, %v1906_v52 }
 0x6c9   :  { %v5097_v46 = vpop.f32.mrb[72].mxu1  ;;  %5123 = vmatprep.mubr.bf16.mxu1 %v1920_v45 }
 0x6ca   :  { %v1871_v32 = vpop.f32.mrb[73].mxu1  ;;  %5124 = vmatmul.mubr.bf16.gmra.mrb[84].mxu1 %v1921_v35  ;;  %v1912_v49 = vmax.f32 %v5097_v46, 0.0 }
 0x6cb   :  { %v5098_v18 = vpop.f32.mrb[74].mxu1  ;;  %v1910_v43 = vmax.f32 %v1871_v32, 0.0 }
 0x6cc   :  { %v1913_v29 = vmax.f32 %v5098_v18, 0.0  ;;  %v1874_v5 = vpop.f32.mrb[75].mxu1 }
 0x6cd   :  { %v1911_v62 = vmax.f32 %v1874_v5, 0.0 }
 0x6ce   :  { %v1923_v26 = vpack.c.bf16 %v1913_v29, %v1912_v49 }
 0x6cf   :  { %v1922_v23 = vpack.c.bf16 %v1911_v62, %v1910_v43 }
 0x6d1   :  { %v5101_v10 = vpop.f32.mrb[76].mxu1  ;;  %5127 = vmatprep.mubr.bf16.mxu1 %v1922_v23 }
 0x6d2   :  { %v1887_v61 = vpop.f32.mrb[77].mxu1  ;;  %5128 = vmatmul.mubr.bf16.gmra.mrb[88].mxu1 %v1923_v26  ;;  %v1916_v17 = vmax.f32 %v5101_v10, 0.0 }
 0x6d3   :  { %v5102_v55 = vpop.f32.mrb[78].mxu1  ;;  %v1914_v34 = vmax.f32 %v1887_v61, 0.0 }
 0x6d4   :  { %v1917_v60 = vmax.f32 %v5102_v55, 0.0  ;;  %v1890_v4 = vpop.f32.mrb[79].mxu1 }
 0x6d5   :  { %v1915_v42 = vmax.f32 %v1890_v4, 0.0 }
 0x6d6   :  { %v1925_v6 = vpack.c.bf16 %v1917_v60, %v1916_v17 }
 0x6d7   :  { %v1924_v51 = vpack.c.bf16 %v1915_v42, %v1914_v34 }
 0x6d9   :  { %5131 = vmatprep.mubr.bf16.mxu1 %v1924_v51 }
 0x6da   :  { %5132 = vmatmul.mubr.bf16.gmra.mrb[92].mxu1 %v1925_v6 }
 0x6db   :  { %5183 = vmatprep.mubr.bf16.mxu1 %v5780_v57 }
 0x795   :  { %v5121_v41 = vpop.f32.mrb[80].mxu1 }
 0x796   :  { %v2008_v28 = vpop.f32.mrb[81].mxu1 }
 0x797   :  { %v5122_v58 = vpop.f32.mrb[82].mxu1 }
 0x798   :  { %v2072_v2 = vpack.c.bf16 %v5122_v58, %v5121_v41  ;;  %v2011_v1 = vpop.f32.mrb[83].mxu1 }
 0x799   :  { %v2071_v54 = vpack.c.bf16 %v2011_v1, %v2008_v28 }
 0x79b   :  { %5135 = vmatprep.subr.bf16.mxu0 %v2071_v54 }
 0x79c   :  { %5136 = vmatpush3.bf16.msra.mxu0 %v2071_v54 }
 0x79d   :  { %v5125_v11 = vpop.f32.mrb[84].mxu1  ;;  %5137 = vmatprep.subr.bf16.mxu0 %v2072_v2 }
 0x79e   :  { %v2024_v20 = vpop.f32.mrb[85].mxu1 }
 0x79f   :  { %v5126_v59 = vpop.f32.mrb[86].mxu1 }
 0x7a0   :  { %v2074_v24 = vpack.c.bf16 %v5126_v59, %v5125_v11  ;;  %v2027_v47 = vpop.f32.mrb[87].mxu1  ;;  %5138 = vmatpush3.bf16.msra.mxu0 %v2072_v2 }
 0x7a1   :  { %v2073_v8 = vpack.c.bf16 %v2027_v47, %v2024_v20 }
 0x7a3   :  { %5139 = vmatprep.subr.bf16.mxu0 %v2073_v8 }
 0x7a4   :  { %5140 = vmatpush3.bf16.msra.mxu0 %v2073_v8 }
 0x7a5   :  { %v5129_v38 = vpop.f32.mrb[88].mxu1  ;;  %5141 = vmatprep.subr.bf16.mxu0 %v2074_v24 }
 0x7a6   :  { %v2040_v25 = vpop.f32.mrb[89].mxu1 }
 0x7a7   :  { %v5130_v14 = vpop.f32.mrb[90].mxu1 }
 0x7a8   :  { %v2076_v19 = vpack.c.bf16 %v5130_v14, %v5129_v38  ;;  %v2043_v9 = vpop.f32.mrb[91].mxu1  ;;  %5142 = vmatpush3.bf16.msra.mxu0 %v2074_v24 }
 0x7a9   :  { %v2075_v0 = vpack.c.bf16 %v2043_v9, %v2040_v25 }
 0x7ab   :  { %5143 = vmatprep.subr.bf16.mxu0 %v2075_v0 }
 0x7ac   :  { %5144 = vmatpush3.bf16.msra.mxu0 %v2075_v0 }
 0x7ad   :  { %v5133_v30 = vpop.f32.mrb[92].mxu1  ;;  %5145 = vmatprep.subr.bf16.mxu0 %v2076_v19 }
 0x7ae   :  { %v2056_v12 = vpop.f32.mrb[93].mxu1 }
 0x7af   :  { %v5134_v13 = vpop.f32.mrb[94].mxu1 }
 0x7b0   :  { %v2078_v16 = vpack.c.bf16 %v5134_v13, %v5133_v30  ;;  %v2059_v31 = vpop.f32.mrb[95].mxu1  ;;  %5146 = vmatpush3.bf16.msra.mxu0 %v2076_v19 }
 0x7b1   :  { %v2077_v3 = vpack.c.bf16 %v2059_v31, %v2056_v12 }
 0x7b3   :  { %5147 = vmatprep.subr.bf16.mxu0 %v2077_v3 }
 0x7b4   :  { %5148 = vmatpush3.bf16.msra.mxu0 %v2077_v3 }
 0x7b5   :  { %5149 = vmatprep.subr.bf16.mxu0 %v2078_v16 }
 0x7b8   :  { %5150 = vmatpush3.bf16.msra.mxu0 %v2078_v16 }
 0x7bb   :  { %5152 = vmatmul.mubr.bf16.vlgmr.msra.gmra.mrb[48].mxu0 %v5559_v33 }
 0x7bc   :  { %5155 = vmatprep.mubr.bf16.mxu0 %v5560_v48 }
 0x7c3   :  { %5156 = vmatmul.mubr.bf16.gmra.mrb[52].mxu0 %v5561_v22 }
 0x7c4   :  { %5159 = vmatprep.mubr.bf16.mxu0 %v5562_v7 }
 0x7cb   :  { %5160 = vmatmul.mubr.bf16.gmra.mrb[56].mxu0 %v5563_v27 }
 0x7cc   :  { %5163 = vmatprep.mubr.bf16.mxu0 %v5564_v50 }
 0x7d3   :  { %5164 = vmatmul.mubr.bf16.gmra.mrb[60].mxu0 %v5565_v37  ;;  %v5566_v37 = vld [vmem:[%s7687_s16] sm:$0xff]  }
 0x7d4   :  { %5215 = vmatprep.mubr.bf16.mxu0 %v5781_v36  ;;  %v5567_v36 = vld [vmem:[%s7687_s16 + $0x8] sm:$0xff]  }
 0x88e   :  { %v5153_v52 = vpop.f32.mrb[48].mxu0 }
 0x88f   :  { %v2176_v15 = vadd.f32 %v5153_v52, %v6797_v56  ;;  %v2167_v35 = vpop.f32.mrb[49].mxu0  ;;  %v5783_v52 = vld [vmem:[%s7720_s5 + $0x8] sm:$0xff]  }
 0x890   :  { %v2168_v45 = vadd.f32 %v6797_v56, %v2167_v35  ;;  %v5154_v46 = vpop.f32.mrb[50].mxu0  ;;  %v5785_v35 = vld [vmem:[%s7720_s5 + $0x10] sm:$0xff]  }
 0x891   :  { %v2179_v32 = vadd.f32 %v5154_v46, %v6797_v56  ;;  %v2170_v18 = vpop.f32.mrb[51].mxu0  ;;  %v2232_v29 = vmax.f32 %v2176_v15, 0.0  ;;  %v5784_v15 = vld [vmem:[%s7719_s7 + $0x10] sm:$0xff]   ;;  %v5786_v46 = vld [vmem:[%s7719_s7 + $0x18] sm:$0xff]  }
 0x892   :  { %v2171_v49 = vadd.f32 %v6797_v56, %v2170_v18  ;;  %v2230_v43 = vmax.f32 %v2168_v45, 0.0  ;;  %v5568_v45 = vld [vmem:[%s7688_s15] sm:$0xff]  }
 0x893   :  { %v2233_v5 = vmax.f32 %v2179_v32, 0.0  ;;  %v5787_v32 = vld [vmem:[%s7720_s5 + $0x18] sm:$0xff]   ;;  %v5788_v18 = vld [vmem:[%s7719_s7 + $0x20] sm:$0xff]  }
 0x894   :  { %v2231_v62 = vmax.f32 %v2171_v49, 0.0  ;;  %v5789_v49 = vld [vmem:[%s7720_s5 + $0x20] sm:$0xff]  }
 0x895   :  { %v6803_v26 = vpack.c.bf16 %v2233_v5, %v2232_v29  ;;  %v5790_v29 = vld [vmem:[%s7719_s7 + $0x28] sm:$0xff]  }
 0x896   :  { %v6805_v23 = vpack.c.bf16 %v2231_v62, %v2230_v43  ;;  %v5157_v10 = vpop.f32.mrb[52].mxu0  ;;  %v5791_v5 = vld [vmem:[%s7720_s5 + $0x28] sm:$0xff]   ;;  %v5792_v43 = vld [vmem:[%s7719_s7 + $0x30] sm:$0xff]  }
 0x897   :  { %v2192_v61 = vadd.f32 %v5157_v10, %v6797_v56  ;;  %v2183_v55 = vpop.f32.mrb[53].mxu0  ;;  %v5793_v62 = vld [vmem:[%s7720_s5 + $0x30] sm:$0xff]   ;;  %v5794_v10 = vld [vmem:[%s7719_s7 + $0x38] sm:$0xff]  }
 0x898   :  { %v2184_v17 = vadd.f32 %v6797_v56, %v2183_v55  ;;  %v5158_v60 = vpop.f32.mrb[54].mxu0  ;;  %5167 = vmatprep.subr.bf16.mxu1 %v6805_v23  ;;  %5199 = vmatprep.subr.bf16.mxu0 %v6805_v23  ;;  %v5569_v55 = vld [vmem:[%s7688_s15 + $0x8] sm:$0xff]  }
 0x899   :  { %v2195_v4 = vadd.f32 %v5158_v60, %v6797_v56  ;;  %v2186_v34 = vpop.f32.mrb[55].mxu0  ;;  %5168 = vmatpush3.bf16.msra.mxu1 %v6805_v23  ;;  %5200 = vmatpush3.bf16.msra.mxu0 %v6805_v23  ;;  %v2236_v6 = vmax.f32 %v2192_v61, 0.0  ;;  %v5795_v61 = vld [vmem:[%s7720_s5 + $0x38] sm:$0xff]  }
 0x89a   :  { %v2187_v42 = vadd.f32 %v6797_v56, %v2186_v34  ;;  %5169 = vmatprep.subr.bf16.mxu1 %v6803_v26  ;;  %5201 = vmatprep.subr.bf16.mxu0 %v6803_v26  ;;  %v2234_v57 = vmax.f32 %v2184_v17, 0.0 }
 0x89b   :  { %v2237_v51 = vmax.f32 %v2195_v4, 0.0 }
 0x89c   :  { %v2235_v39 = vmax.f32 %v2187_v42, 0.0 }
 0x89d   :  { %v6817_v41 = vpack.c.bf16 %v2237_v51, %v2236_v6  ;;  %5170 = vmatpush3.bf16.msra.mxu1 %v6803_v26  ;;  %5202 = vmatpush3.bf16.msra.mxu0 %v6803_v26 }
 0x89e   :  { %v6821_v28 = vpack.c.bf16 %v2235_v39, %v2234_v57  ;;  %v5161_v58 = vpop.f32.mrb[56].mxu0 }
 0x89f   :  { %v2208_v2 = vadd.f32 %v5161_v58, %v6797_v56  ;;  %v2199_v1 = vpop.f32.mrb[57].mxu0  ;;  %v5571_v58 = vld [vmem:[%s7690_s17 + $0x8] sm:$0xff]  }
 0x8a0   :  { %v2200_v54 = vadd.f32 %v6797_v56, %v2199_v1  ;;  %v5162_v11 = vpop.f32.mrb[58].mxu0  ;;  %5171 = vmatprep.subr.bf16.mxu1 %v6821_v28  ;;  %5203 = vmatprep.subr.bf16.mxu0 %v6821_v28 }
 0x8a1   :  { %v2211_v20 = vadd.f32 %v5162_v11, %v6797_v56  ;;  %v2202_v59 = vpop.f32.mrb[59].mxu0  ;;  %5172 = vmatpush3.bf16.msra.mxu1 %v6821_v28  ;;  %5204 = vmatpush3.bf16.msra.mxu0 %v6821_v28  ;;  %v2240_v47 = vmax.f32 %v2208_v2, 0.0 }
 0x8a2   :  { %v2203_v24 = vadd.f32 %v6797_v56, %v2202_v59  ;;  %5173 = vmatprep.subr.bf16.mxu1 %v6817_v41  ;;  %5205 = vmatprep.subr.bf16.mxu0 %v6817_v41  ;;  %v2238_v38 = vmax.f32 %v2200_v54, 0.0 }
 0x8a3   :  { %v2241_v8 = vmax.f32 %v2211_v20, 0.0 }
 0x8a4   :  { %v2239_v25 = vmax.f32 %v2203_v24, 0.0 }
 0x8a5   :  { %v6833_v14 = vpack.c.bf16 %v2241_v8, %v2240_v47  ;;  %5174 = vmatpush3.bf16.msra.mxu1 %v6817_v41  ;;  %5206 = vmatpush3.bf16.msra.mxu0 %v6817_v41 }
 0x8a6   :  { %v6837_v19 = vpack.c.bf16 %v2239_v25, %v2238_v38  ;;  %v5165_v9 = vpop.f32.mrb[60].mxu0 }
 0x8a7   :  { %v2224_v0 = vadd.f32 %v5165_v9, %v6797_v56  ;;  %v2215_v30 = vpop.f32.mrb[61].mxu0 }
 0x8a8   :  { %v2216_v12 = vadd.f32 %v6797_v56, %v2215_v30  ;;  %v5166_v13 = vpop.f32.mrb[62].mxu0  ;;  %5175 = vmatprep.subr.bf16.mxu1 %v6837_v19  ;;  %5207 = vmatprep.subr.bf16.mxu0 %v6837_v19 }
 0x8a9   :  { %v2227_v16 = vadd.f32 %v5166_v13, %v6797_v56  ;;  %v2218_v31 = vpop.f32.mrb[63].mxu0  ;;  %5176 = vmatpush3.bf16.msra.mxu1 %v6837_v19  ;;  %5208 = vmatpush3.bf16.msra.mxu0 %v6837_v19  ;;  %v2244_v33 = vmax.f32 %v2224_v0, 0.0 }
 0x8aa   :  { %v2219_v3 = vadd.f32 %v6797_v56, %v2218_v31  ;;  %5177 = vmatprep.subr.bf16.mxu1 %v6833_v14  ;;  %5209 = vmatprep.subr.bf16.mxu0 %v6833_v14  ;;  %v2242_v22 = vmax.f32 %v2216_v12, 0.0  ;;  %v5782_v56 = vld [vmem:[%s7719_s7 + $0x8] sm:$0xff]  }
 0x8ab   :  { %v2245_v48 = vmax.f32 %v2227_v16, 0.0 }
 0x8ac   :  { %v2243_v7 = vmax.f32 %v2219_v3, 0.0 }
 0x8ad   :  { %v2294_v27 = vpack.c.bf16 %v2245_v48, %v2244_v33  ;;  %5178 = vmatpush3.bf16.msra.mxu1 %v6833_v14  ;;  %5210 = vmatpush3.bf16.msra.mxu0 %v6833_v14 }
 0x8ae   :  { %v2293_v50 = vpack.c.bf16 %v2243_v7, %v2242_v22 }
 0x8b0   :  { %5179 = vmatprep.subr.bf16.mxu1 %v2293_v50  ;;  %5211 = vmatprep.subr.bf16.mxu0 %v2293_v50 }
 0x8b1   :  { %5180 = vmatpush3.bf16.msra.mxu1 %v2293_v50  ;;  %5212 = vmatpush3.bf16.msra.mxu0 %v2293_v50 }
 0x8b2   :  { %5181 = vmatprep.subr.bf16.mxu1 %v2294_v27  ;;  %5213 = vmatprep.subr.bf16.mxu0 %v2294_v27 }
 0x8b5   :  { %5182 = vmatpush3.bf16.msra.mxu1 %v2294_v27  ;;  %5214 = vmatpush3.bf16.msra.mxu0 %v2294_v27 }
 0x8b6   :  { %5231 = vmatprep.subr.bf16.mxu1 %v5566_v37 }
 0x8b8   :  { %5184 = vmatmul.mubr.bf16.vlgmr.msra.gmra.mrb[96].mxu1 %v5782_v56  ;;  %5216 = vmatmul.mubr.bf16.vlgmr.msra.gmra.mrb[64].mxu0 %v5783_v52 }
 0x8b9   :  { %5187 = vmatprep.mubr.bf16.mxu1 %v5784_v15  ;;  %5232 = vmatpush3.bf16.msra.mxu1 %v5566_v37 }
 0x8ba   :  { %5233 = vmatprep.subr.bf16.mxu1 %v5567_v36  ;;  %5219 = vmatprep.mubr.bf16.mxu0 %v5785_v35 }
 0x8bd   :  { %5234 = vmatpush3.bf16.msra.mxu1 %v5567_v36 }
 0x8be   :  { %5251 = vmatprep.subr.bf16.mxu1 %v5568_v45 }
 0x8c0   :  { %5188 = vmatmul.mubr.bf16.gmra.mrb[100].mxu1 %v5786_v46  ;;  %5220 = vmatmul.mubr.bf16.gmra.mrb[68].mxu0 %v5787_v32 }
 0x8c1   :  { %5191 = vmatprep.mubr.bf16.mxu1 %v5788_v18  ;;  %5223 = vmatprep.mubr.bf16.mxu0 %v5789_v49  ;;  %v5572_v18 = vld [vmem:[%s7691_s21] ss:$12 sps:$4 sm:$0xff]   ;;  %v5574_v49 = vld [vmem:[%s7691_s21 + $0x4] ss:$12 sps:$4 sm:$0xff]  }
 0x8c2   :  { %3306 = vmatprep.subr.bf16.mxu0 %v5574_v49 }
 0x8c3   :  { %3307 = vmatpush1.bf16.msra.mxu0 %v5572_v18 }
 0x8c8   :  { %5192 = vmatmul.mubr.bf16.gmra.mrb[104].mxu1 %v5790_v29  ;;  %5224 = vmatmul.mubr.bf16.gmra.mrb[72].mxu0 %v5791_v5  ;;  %v6951_v29 = vld [vmem:[%s7692_s18] ss:$0 sm:$0xff] }
 0x8c9   :  { %5195 = vmatprep.mubr.bf16.mxu1 %v5792_v43  ;;  %5227 = vmatprep.mubr.bf16.mxu0 %v5793_v62 }
 0x8d0   :  { %5196 = vmatmul.mubr.bf16.gmra.mrb[108].mxu1 %v5794_v10  ;;  %5228 = vmatmul.mubr.bf16.gmra.mrb[76].mxu0 %v5795_v61 }
 0x8d1   :  { %5235 = vmatprep.mubr.msk.bf16.mxu1 %vm925_vm2, %v6805_v23  ;;  %3338 = vmatprep.mubr.bf16.mxu0 %v5820_v40 }
 0x8d8   :  { %5236 = vmatmul.mubr.msk.bf16.vlgmr.msra.gmra.mrb[112].mxu1 %vm925_vm2, %v6803_v26  ;;  %v5570_v26 = vld [vmem:[%s7690_s17] sm:$0xff]  }
 0x8d9   :  { %5239 = vmatprep.mubr.msk.bf16.mxu1 %vm925_vm2, %v6821_v28  ;;  %5252 = vmatpush3.bf16.msra.mxu1 %v5568_v45 }
 0x8da   :  { %5253 = vmatprep.subr.bf16.mxu1 %v5569_v55 }
 0x8dd   :  { %5254 = vmatpush3.bf16.msra.mxu1 %v5569_v55 }
 0x8de   :  { %5271 = vmatprep.subr.bf16.mxu1 %v5570_v26 }
 0x8e0   :  { %5240 = vmatmul.mubr.msk.bf16.gmra.mrb[116].mxu1 %vm925_vm2, %v6817_v41 }
 0x8e1   :  { %5243 = vmatprep.mubr.msk.bf16.mxu1 %vm925_vm2, %v6837_v19 }
 0x8e8   :  { %5244 = vmatmul.mubr.msk.bf16.gmra.mrb[120].mxu1 %vm925_vm2, %v6833_v14 }
 0x8e9   :  { %5247 = vmatprep.mubr.msk.bf16.mxu1 %vm925_vm2, %v2293_v50 }
 0x8f0   :  { %5248 = vmatmul.mubr.msk.bf16.gmra.mrb[124].mxu1 %vm925_vm2, %v2294_v27 }
 0x98b   :  { %v5185_v23 = vpop.f32.mrb[96].mxu1  ;;  %v5217_v17 = vpop.f32.mrb[64].mxu0 }
 0x98c   :  { %v2329_v60 = vpop.f32.mrb[97].mxu1  ;;  %v2426_v4 = vpop.f32.mrb[65].mxu0 }
 0x98d   :  { %v5186_v34 = vpop.f32.mrb[98].mxu1  ;;  %v5218_v42 = vpop.f32.mrb[66].mxu0 }
 0x98e   :  { %v2490_v6 = vpack.c.bf16 %v5186_v34, %v5185_v23  ;;  %v2332_v51 = vpop.f32.mrb[99].mxu1  ;;  %v2764_v57 = vpack.c.bf16 %v5218_v42, %v5217_v17  ;;  %v2429_v39 = vpop.f32.mrb[67].mxu0 }
 0x98f   :  { %v2489_v41 = vpack.c.bf16 %v2332_v51, %v2329_v60  ;;  %v2763_v28 = vpack.c.bf16 %v2429_v39, %v2426_v4 }
 0x991   :  { %5255 = vmatprep.mubr.msk.bf16.mxu1 %vm925_vm2, %v2489_v41 }
 0x992   :  { %5256 = vmatmul.mubr.msk.bf16.vlgmr.msra.gmra.mrb[112].mxu1 %vm925_vm2, %v2490_v6 }
 0x993   :  { %v5189_v2 = vpop.f32.mrb[100].mxu1  ;;  %5272 = vmatpush3.bf16.msra.mxu1 %v5570_v26  ;;  %v5221_v1 = vpop.f32.mrb[68].mxu0 }
 0x994   :  { %v2345_v54 = vpop.f32.mrb[101].mxu1  ;;  %5273 = vmatprep.subr.bf16.mxu1 %v5571_v58  ;;  %v2442_v11 = vpop.f32.mrb[69].mxu0 }
 0x995   :  { %v5190_v20 = vpop.f32.mrb[102].mxu1  ;;  %v5222_v59 = vpop.f32.mrb[70].mxu0 }
 0x996   :  { %v2492_v24 = vpack.c.bf16 %v5190_v20, %v5189_v2  ;;  %v2348_v47 = vpop.f32.mrb[103].mxu1  ;;  %v2766_v8 = vpack.c.bf16 %v5222_v59, %v5221_v1  ;;  %v2445_v38 = vpop.f32.mrb[71].mxu0 }
 0x997   :  { %v2491_v25 = vpack.c.bf16 %v2348_v47, %v2345_v54  ;;  %5274 = vmatpush3.bf16.msra.mxu1 %v5571_v58  ;;  %v2765_v14 = vpack.c.bf16 %v2445_v38, %v2442_v11 }
 0x999   :  { %5259 = vmatprep.mubr.msk.bf16.mxu1 %vm925_vm2, %v2491_v25 }
 0x99a   :  { %5260 = vmatmul.mubr.msk.bf16.gmra.mrb[116].mxu1 %vm925_vm2, %v2492_v24 }
 0x99b   :  { %v5193_v19 = vpop.f32.mrb[104].mxu1  ;;  %v5225_v9 = vpop.f32.mrb[72].mxu0 }
 0x99c   :  { %v2361_v0 = vpop.f32.mrb[105].mxu1  ;;  %v2458_v30 = vpop.f32.mrb[73].mxu0 }
 0x99d   :  { %v5194_v12 = vpop.f32.mrb[106].mxu1  ;;  %v5226_v13 = vpop.f32.mrb[74].mxu0 }
 0x99e   :  { %v2494_v16 = vpack.c.bf16 %v5194_v12, %v5193_v19  ;;  %v2364_v31 = vpop.f32.mrb[107].mxu1  ;;  %v2768_v3 = vpack.c.bf16 %v5226_v13, %v5225_v9  ;;  %v2461_v33 = vpop.f32.mrb[75].mxu0 }
 0x99f   :  { %v2493_v48 = vpack.c.bf16 %v2364_v31, %v2361_v0  ;;  %v2767_v22 = vpack.c.bf16 %v2461_v33, %v2458_v30 }
 0x9a1   :  { %5263 = vmatprep.mubr.msk.bf16.mxu1 %vm925_vm2, %v2493_v48 }
 0x9a2   :  { %5264 = vmatmul.mubr.msk.bf16.gmra.mrb[120].mxu1 %vm925_vm2, %v2494_v16 }
 0x9a3   :  { %v5197_v7 = vpop.f32.mrb[108].mxu1  ;;  %v5229_v27 = vpop.f32.mrb[76].mxu0 }
 0x9a4   :  { %v2377_v50 = vpop.f32.mrb[109].mxu1  ;;  %v2474_v37 = vpop.f32.mrb[77].mxu0 }
 0x9a5   :  { %v5198_v36 = vpop.f32.mrb[110].mxu1  ;;  %v5230_v56 = vpop.f32.mrb[78].mxu0 }
 0x9a6   :  { %v2496_v52 = vpack.c.bf16 %v5198_v36, %v5197_v7  ;;  %v2380_v15 = vpop.f32.mrb[111].mxu1  ;;  %v2770_v35 = vpack.c.bf16 %v5230_v56, %v5229_v27  ;;  %v2477_v45 = vpop.f32.mrb[79].mxu0 }
 0x9a7   :  { %v2495_v46 = vpack.c.bf16 %v2380_v15, %v2377_v50  ;;  %v2769_v32 = vpack.c.bf16 %v2477_v45, %v2474_v37 }
 0x9a9   :  { %5267 = vmatprep.mubr.msk.bf16.mxu1 %vm925_vm2, %v2495_v46 }
 0x9aa   :  { %5268 = vmatmul.mubr.msk.bf16.gmra.mrb[124].mxu1 %vm925_vm2, %v2496_v52 }
 0x9ab   :  { %5275 = vmatprep.mubr.msk.bf16.mxu1 %vm925_vm2, %v2763_v28 }
 0x9b2   :  { %5276 = vmatmul.mubr.msk.bf16.vlgmr.msra.gmra.mrb[112].mxu1 %vm925_vm2, %v2764_v57 }
 0x9b3   :  { %5279 = vmatprep.mubr.msk.bf16.mxu1 %vm925_vm2, %v2765_v14 }
 0x9ba   :  { %5280 = vmatmul.mubr.msk.bf16.gmra.mrb[116].mxu1 %vm925_vm2, %v2766_v8 }
 0x9bb   :  { %5283 = vmatprep.mubr.msk.bf16.mxu1 %vm925_vm2, %v2767_v22 }
 0x9c2   :  { %5284 = vmatmul.mubr.msk.bf16.gmra.mrb[120].mxu1 %vm925_vm2, %v2768_v3 }
 0x9c3   :  { %5287 = vmatprep.mubr.msk.bf16.mxu1 %vm925_vm2, %v2769_v32 }
 0x9ca   :  { %5288 = vmatmul.mubr.msk.bf16.gmra.mrb[124].mxu1 %vm925_vm2, %v2770_v35 }
 0xa85   :  { %v5277_v5 = vpop.f32.mrb[112].mxu1 }
 0xa86   :  { %v2841_v43 = vpop.f32.mrb[113].mxu1  ;;  %v6968_v4 = vadd.f32 %v5277_v5, %v6951_v29 }
 0xa87   :  { %v6954_v62 = vadd.f32 %v6951_v29, %v2841_v43  ;;  %v5278_v10 = vpop.f32.mrb[114].mxu1 }
 0xa88   :  { %v2844_v61 = vpop.f32.mrb[115].mxu1  ;;  %v6972_v51 = vadd.f32 %v5278_v10, %v6951_v29  ;;  %v2948_v28 = vsel %vm925_vm2, %v6968_v4, 0.0  ;;  %v3008_v58 = vmul.f32 %v6968_v4, %v6968_v4  ;;  %v5577_v10 = vld [vmem:[%s7691_s21 + $0x1c] ss:$12 sps:$4 sm:$0xff]  }
 0xa89   :  { %v6957_v55 = vadd.f32 %v6951_v29, %v2844_v61  ;;  %v2942_v26 = vsel %vm925_vm2, %v6954_v62, 0.0  ;;  %v3006_v23 = vmul.f32 %v6954_v62, %v6954_v62  ;;  %3308 = vmatprep.subr.bf16.mxu0 %v5577_v10 }
 0xa8a   :  { %2943 = vadd.xlane.f32.xlu0 %v2942_v26  ;;  %v2951_v2 = vsel %vm925_vm2, %v6972_v51, 0.0  ;;  %v3009_v1 = vmul.f32 %v6972_v51, %v6972_v51  ;;  %v3028_v20 = vsel %vm925_vm2, %v3008_v58, 0.0 }
 0xa8b   :  { %v2945_v17 = vsel %vm925_vm2, %v6957_v55, 0.0  ;;  %v3007_v60 = vmul.f32 %v6957_v55, %v6957_v55  ;;  %v3022_v42 = vsel %vm925_vm2, %v3006_v23, 0.0  ;;  %v5575_v23 = vld [vmem:[%s7691_s21 + $0x18] ss:$12 sps:$4 sm:$0xff]  }
 0xa8c   :  { %2946 = vadd.xlane.f32.xlu1 %v2945_v17  ;;  %v3031_v8 = vsel %vm925_vm2, %v3009_v1, 0.0  ;;  %3309 = vmatpush1.bf16.msra.mxu0 %v5575_v23 }
 0xa8d   :  { %v5281_v34 = vpop.f32.mrb[116].mxu1  ;;  %v3025_v39 = vsel %vm925_vm2, %v3007_v60, 0.0 }
 0xa8e   :  { %3023 = vadd.xlane.f32.xlu0 %v3022_v42  ;;  %v2857_v6 = vpop.f32.mrb[117].mxu1  ;;  %v7000_v0 = vadd.f32 %v5281_v34, %v6951_v29 }
 0xa8f   :  { %v5282_v57 = vpop.f32.mrb[118].mxu1  ;;  %v6984_v54 = vadd.f32 %v6951_v29, %v2857_v6 }
 0xa90   :  { %3026 = vadd.xlane.f32.xlu1 %v3025_v39  ;;  %v2860_v41 = vpop.f32.mrb[119].mxu1  ;;  %v7004_v16 = vadd.f32 %v5282_v57, %v6951_v29  ;;  %v2960_v48 = vsel %vm925_vm2, %v7000_v0, 0.0  ;;  %v3012_v22 = vmul.f32 %v7000_v0, %v7000_v0 }
 0xa91   :  { %v6988_v24 = vadd.f32 %v6951_v29, %v2860_v41  ;;  %v2954_v25 = vsel %vm925_vm2, %v6984_v54, 0.0  ;;  %v3010_v14 = vmul.f32 %v6984_v54, %v6984_v54 }
 0xa92   :  { %2949 = vadd.xlane.f32.xlu0 %v2948_v28  ;;  %v2963_v7 = vsel %vm925_vm2, %v7004_v16, 0.0  ;;  %v3013_v27 = vmul.f32 %v7004_v16, %v7004_v16  ;;  %v3040_v37 = vsel %vm925_vm2, %v3012_v22, 0.0 }
 0xa93   :  { %v2957_v19 = vsel %vm925_vm2, %v6988_v24, 0.0  ;;  %v3011_v9 = vmul.f32 %v6988_v24, %v6988_v24  ;;  %v3034_v12 = vsel %vm925_vm2, %v3010_v14, 0.0 }
 0xa94   :  { %2952 = vadd.xlane.f32.xlu1 %v2951_v2  ;;  %v3043_v56 = vsel %vm925_vm2, %v3013_v27, 0.0 }
 0xa95   :  { %v5285_v11 = vpop.f32.mrb[120].mxu1  ;;  %v3037_v3 = vsel %vm925_vm2, %v3011_v9, 0.0 }
 0xa96   :  { %3029 = vadd.xlane.f32.xlu0 %v3028_v20  ;;  %v2873_v59 = vpop.f32.mrb[121].mxu1  ;;  %v7032_v46 = vadd.f32 %v5285_v11, %v6951_v29 }
 0xa97   :  { %v5286_v47 = vpop.f32.mrb[122].mxu1  ;;  %v7016_v50 = vadd.f32 %v6951_v29, %v2873_v59 }
 0xa98   :  { %3032 = vadd.xlane.f32.xlu1 %v3031_v8  ;;  %v2876_v38 = vpop.f32.mrb[123].mxu1  ;;  %v7036_v18 = vadd.f32 %v5286_v47, %v6951_v29  ;;  %v2972_v5 = vsel %vm925_vm2, %v7032_v46, 0.0  ;;  %v3016_v43 = vmul.f32 %v7032_v46, %v7032_v46 }
 0xa99   :  { %v7020_v36 = vadd.f32 %v6951_v29, %v2876_v38  ;;  %v2966_v52 = vsel %vm925_vm2, %v7016_v50, 0.0  ;;  %v3014_v15 = vmul.f32 %v7016_v50, %v7016_v50  ;;  %v7090_v38 = vld [vmem:[%s7691_s21 + $0x8] ss:$12 sps:$4 sm:$0xff]  }
 0xa9a   :  { %2955 = vadd.xlane.f32.xlu0 %v2954_v25  ;;  %v2975_v61 = vsel %vm925_vm2, %v7036_v18, 0.0  ;;  %v3017_v26 = vmul.f32 %v7036_v18, %v7036_v18  ;;  %v3052_v60 = vsel %vm925_vm2, %v3016_v43, 0.0  ;;  %5291 = vmatprep.subr.bf16.mxu0 %v7090_v38 }
 0xa9b   :  { %v2969_v35 = vsel %vm925_vm2, %v7020_v36, 0.0  ;;  %v3015_v45 = vmul.f32 %v7020_v36, %v7020_v36  ;;  %v3046_v32 = vsel %vm925_vm2, %v3014_v15, 0.0 }
 0xa9c   :  { %2958 = vadd.xlane.f32.xlu1 %v2957_v19  ;;  %v3055_v42 = vsel %vm925_vm2, %v3017_v26, 0.0 }
 0xa9d   :  { %v5289_v30 = vpop.f32.mrb[124].mxu1  ;;  %v3049_v49 = vsel %vm925_vm2, %v3015_v45, 0.0 }
 0xa9e   :  { %3035 = vadd.xlane.f32.xlu0 %v3034_v12  ;;  %v2889_v13 = vpop.f32.mrb[125].mxu1  ;;  %v7070_v28 = vadd.f32 %v5289_v30, %v6951_v29 }
 0xa9f   :  { %v5290_v31 = vpop.f32.mrb[126].mxu1  ;;  %v7054_v17 = vadd.f32 %v6951_v29, %v2889_v13 }
 0xaa0   :  { %3038 = vadd.xlane.f32.xlu1 %v3037_v3  ;;  %v2892_v33 = vpop.f32.mrb[127].mxu1  ;;  %v7074_v2 = vadd.f32 %v5290_v31, %v6951_v29  ;;  %v2984_v11 = vsel %vm925_vm2, %v7070_v28, 0.0  ;;  %v3020_v20 = vmul.f32 %v7070_v28, %v7070_v28 }
 0xaa1   :  { %v7058_v34 = vadd.f32 %v6951_v29, %v2892_v33  ;;  %v2978_v6 = vsel %vm925_vm2, %v7054_v17, 0.0  ;;  %v3018_v57 = vmul.f32 %v7054_v17, %v7054_v17 }
 0xaa2   :  { %2961 = vadd.xlane.f32.xlu0 %v2960_v48  ;;  %v2987_v59 = vsel %vm925_vm2, %v7074_v2, 0.0  ;;  %v3021_v47 = vmul.f32 %v7074_v2, %v7074_v2  ;;  %v3064_v29 = vsel %vm925_vm2, %v3020_v20, 0.0 }
 0xaa3   :  { %v2981_v39 = vsel %vm925_vm2, %v7058_v34, 0.0  ;;  %v3019_v41 = vmul.f32 %v7058_v34, %v7058_v34  ;;  %v3058_v58 = vsel %vm925_vm2, %v3018_v57, 0.0 }
 0xaa4   :  { %2964 = vadd.xlane.f32.xlu1 %v2963_v7  ;;  %v3067_v8 = vsel %vm925_vm2, %v3021_v47, 0.0 }
 0xaa5   :  { %v3061_v1 = vsel %vm925_vm2, %v3019_v41, 0.0 }
 0xaa6   :  { %3041 = vadd.xlane.f32.xlu0 %v3040_v37 }
 0xaa8   :  { %3044 = vadd.xlane.f32.xlu1 %v3043_v56 }
 0xaaa   :  { %2967 = vadd.xlane.f32.xlu0 %v2966_v52 }
 0xaac   :  { %2970 = vadd.xlane.f32.xlu1 %v2969_v35 }
 0xaae   :  { %3047 = vadd.xlane.f32.xlu0 %v3046_v32 }
 0xab0   :  { %3050 = vadd.xlane.f32.xlu1 %v3049_v49 }
 0xab2   :  { %2973 = vadd.xlane.f32.xlu0 %v2972_v5 }
 0xab4   :  { %2976 = vadd.xlane.f32.xlu1 %v2975_v61 }
 0xab6   :  { %3053 = vadd.xlane.f32.xlu0 %v3052_v60 }
 0xab8   :  { %3056 = vadd.xlane.f32.xlu1 %v3055_v42 }
 0xaba   :  { %2979 = vadd.xlane.f32.xlu0 %v2978_v6 }
 0xabc   :  { %2982 = vadd.xlane.f32.xlu1 %v2981_v39 }
 0xabe   :  { %3059 = vadd.xlane.f32.xlu0 %v3058_v58 }
 0xac0   :  { %3062 = vadd.xlane.f32.xlu1 %v3061_v1  ;;  %v7105_v1 = vld [vmem:[%s7693_s19] ss:$0 sm:$0xff] }
 0xac2   :  { %2985 = vadd.xlane.f32.xlu0 %v2984_v11 }
 0xac4   :  { %2988 = vadd.xlane.f32.xlu1 %v2987_v59 }
 0xac6   :  { %3065 = vadd.xlane.f32.xlu0 %v3064_v29 }
 0xac8   :  { %3068 = vadd.xlane.f32.xlu1 %v3067_v8 }
 0xb17   :  { %v2944_v25 = vpop.xlane.xlu0 %2943 }
 0xb18   :  { %v2990_v14 = vmul.f32 0.03125, %v2944_v25 }
 0xb19   :  { %v2947_v19 = vpop.xlane.xlu1 %2946 }
 0xb1a   :  { %v2991_v9 = vmul.f32 0.03125, %v2947_v19  ;;  %v3102_v12 = vmul.f32 %v2990_v14, %v2990_v14  ;;  %v3086_v57 = vsub.f32 %v6954_v62, %v2990_v14 }
 0xb1b   :  { %v3024_v30 = vpop.xlane.xlu0 %3023 }
 0xb1c   :  { %v3070_v13 = vmul.f32 0.03125, %v3024_v30  ;;  %v3103_v3 = vmul.f32 %v2991_v9, %v2991_v9  ;;  %v3087_v59 = vsub.f32 %v6957_v55, %v2991_v9 }
 0xb1d   :  { %v3027_v31 = vpop.xlane.xlu1 %3026 }
 0xb1e   :  { %v3118_v33 = vsub.f32 %v3070_v13, %v3102_v12  ;;  %v3071_v48 = vmul.f32 0.03125, %v3027_v31  ;;  %v7116_v13 = vld [vmem:[%s7694_s20] ss:$0 sm:$0xff] }
 0xb1f   :  { %v2950_v22 = vpop.xlane.xlu0 %2949 }
 0xb20   :  { %v3134_v7 = vadd.f32 1e-05, %v3118_v33  ;;  %v3119_v27 = vsub.f32 %v3071_v48, %v3103_v3  ;;  %v2992_v37 = vmul.f32 0.03125, %v2950_v22 }
 0xb21   :  { %v2953_v56 = vpop.xlane.xlu1 %2952 }
 0xb22   :  { %5684 = vrsqrt.f32 %v3134_v7  ;;  %v3135_v52 = vadd.f32 1e-05, %v3119_v27  ;;  %v7093_v15 = vmul.f32 0.03125, %v2953_v56  ;;  %v3104_v45 = vmul.f32 %v2992_v37, %v2992_v37 }
 0xb23   :  { %v3030_v35 = vpop.xlane.xlu0 %3029  ;;  %v3088_v27 = vsub.f32 %v6968_v4, %v2992_v37  ;;  %v5579_v4 = vld [vmem:[%s7691_s21 + $0x20] ss:$12 sps:$4 sm:$0xff]  }
 0xb24   :  { %5686 = vrsqrt.f32 %v3135_v52  ;;  %v3072_v32 = vmul.f32 0.03125, %v3030_v35  ;;  %v3105_v5 = vmul.f32 %v7093_v15, %v7093_v15 }
 0xb25   :  { %v3033_v49 = vpop.xlane.xlu1 %3032 }
 0xb26   :  { %v3120_v43 = vsub.f32 %v3072_v32, %v3104_v45  ;;  %v3073_v10 = vmul.f32 0.03125, %v3033_v49  ;;  %v3089_v49 = vsub.f32 %v6972_v51, %v7093_v15 }
 0xb27   :  { %v2956_v61 = vpop.xlane.xlu0 %2955 }
 0xb28   :  { %v3136_v26 = vadd.f32 1e-05, %v3120_v43  ;;  %v3121_v23 = vsub.f32 %v3073_v10, %v3105_v5  ;;  %v7097_v60 = vmul.f32 0.03125, %v2956_v61 }
 0xb29   :  { %v2959_v42 = vpop.xlane.xlu1 %2958 }
 0xb2a   :  { %5688 = vrsqrt.f32 %v3136_v26  ;;  %v3137_v6 = vadd.f32 1e-05, %v3121_v23  ;;  %v7100_v39 = vmul.f32 0.03125, %v2959_v42  ;;  %v3106_v11 = vmul.f32 %v7097_v60, %v7097_v60 }
 0xb2b   :  { %v3036_v41 = vpop.xlane.xlu0 %3035 }
 0xb2c   :  { %v5685_v58 = vpop.eup %5684  ;;  %5690 = vrsqrt.f32 %v3137_v6  ;;  %v3074_v20 = vmul.f32 0.03125, %v3036_v41  ;;  %v3107_v62 = vmul.f32 %v7100_v39, %v7100_v39 }
 0xb2d   :  { %v3166_v47 = vmul.f32 %v5685_v58, %v3086_v57  ;;  %v3039_v29 = vpop.xlane.xlu1 %3038 }
 0xb2e   :  { %v5687_v8 = vpop.eup %5686  ;;  %v3122_v25 = vsub.f32 %v3074_v20, %v3106_v11  ;;  %v3075_v14 = vmul.f32 0.03125, %v3039_v29 }
 0xb2f   :  { %v3188_v19 = vmul.f32 %v7105_v1, %v3166_v47  ;;  %v3167_v30 = vmul.f32 %v5687_v8, %v3087_v59  ;;  %v2962_v12 = vpop.xlane.xlu0 %2961  ;;  %v3090_v59 = vsub.f32 %v6984_v54, %v7097_v60 }
 0xb30   :  { %v3138_v31 = vadd.f32 1e-05, %v3122_v25  ;;  %v3123_v3 = vsub.f32 %v3075_v14, %v3107_v62  ;;  %v7118_v55 = vmul.f32 0.03125, %v2962_v12 }
 0xb31   :  { %v3189_v9 = vmul.f32 %v7105_v1, %v3167_v30  ;;  %v2965_v33 = vpop.xlane.xlu1 %2964  ;;  %v3210_v22 = vadd.f32 %v7116_v13, %v3188_v19  ;;  %v3091_v19 = vsub.f32 %v6988_v24, %v7100_v39 }
 0xb32   :  { %5692 = vrsqrt.f32 %v3138_v31  ;;  %v3139_v48 = vadd.f32 1e-05, %v3123_v3  ;;  %v7124_v56 = vmul.f32 0.03125, %v2965_v33  ;;  %v3108_v45 = vmul.f32 %v7118_v55, %v7118_v55 }
 0xb33   :  { %v3211_v7 = vadd.f32 %v7116_v13, %v3189_v9  ;;  %v3042_v52 = vpop.xlane.xlu0 %3041 }
 0xb34   :  { %v5689_v35 = vpop.eup %5688  ;;  %5694 = vrsqrt.f32 %v3139_v48  ;;  %v3076_v32 = vmul.f32 0.03125, %v3042_v52  ;;  %v3109_v61 = vmul.f32 %v7124_v56, %v7124_v56 }
 0xb35   :  { %v3045_v5 = vpop.xlane.xlu1 %3044  ;;  %v7130_v43 = vpack.c.bf16 %v3211_v7, %v3210_v22  ;;  %v3168_v10 = vmul.f32 %v5689_v35, %v3088_v27 }
 0xb36   :  { %v5691_v37 = vpop.eup %5690  ;;  %v3124_v26 = vsub.f32 %v3076_v32, %v3108_v45  ;;  %v3077_v23 = vmul.f32 0.03125, %v3045_v5  ;;  %v3092_v45 = vsub.f32 %v7000_v0, %v7118_v55 }
 0xb37   :  { %4598 = vmatmul.mubr.msk.bf16.vlgmr.msra.gmra.mrb[80].mxu0 %vm925_vm2, %v7130_v43  ;;  %v2968_v42 = vpop.xlane.xlu0 %2967  ;;  %v3169_v6 = vmul.f32 %v5691_v37, %v3089_v49  ;;  %v3190_v51 = vmul.f32 %v7105_v1, %v3168_v10 }
 0xb38   :  { %v3140_v15 = vadd.f32 1e-05, %v3124_v26  ;;  %v3125_v57 = vsub.f32 %v3077_v23, %v3109_v61  ;;  %v7140_v41 = vmul.f32 0.03125, %v2968_v42  ;;  %3348 = vmatprep.mubr.bf16.mxu0 %v5820_v40  ;;  %5292 = vmatpush3.bf16.msra.mxu0 %v7090_v38  ;;  %v3093_v26 = vsub.f32 %v7004_v16, %v7124_v56 }
 0xb39   :  { %v2971_v58 = vpop.xlane.xlu1 %2970  ;;  %v3191_v11 = vmul.f32 %v7105_v1, %v3169_v6  ;;  %5293 = vmatprep.subr.bf16.mxu0 %v5579_v4  ;;  %v3212_v8 = vadd.f32 %v7116_v13, %v3190_v51 }
 0xb3a   :  { %5696 = vrsqrt.f32 %v3140_v15  ;;  %v3141_v20 = vadd.f32 1e-05, %v3125_v57  ;;  %v7147_v47 = vmul.f32 0.03125, %v2971_v58  ;;  %v3110_v38 = vmul.f32 %v7140_v41, %v7140_v41 }
 0xb3b   :  { %v3048_v29 = vpop.xlane.xlu0 %3047  ;;  %v3213_v62 = vadd.f32 %v7116_v13, %v3191_v11 }
 0xb3c   :  { %v5693_v25 = vpop.eup %5692  ;;  %5698 = vrsqrt.f32 %v3141_v20  ;;  %v3078_v14 = vmul.f32 0.03125, %v3048_v29  ;;  %5294 = vmatpush3.bf16.msra.mxu0 %v5579_v4  ;;  %v3111_v31 = vmul.f32 %v7147_v47, %v7147_v47 }
 0xb3d   :  { %v3051_v30 = vpop.xlane.xlu1 %3050  ;;  %v7155_v12 = vpack.c.bf16 %v3213_v62, %v3212_v8  ;;  %v3170_v54 = vmul.f32 %v5693_v25, %v3090_v59  ;;  %v3094_v62 = vsub.f32 %v7016_v50, %v7140_v41 }
 0xb3e   :  { %v5695_v60 = vpop.eup %5694  ;;  %v3126_v3 = vsub.f32 %v3078_v14, %v3110_v38  ;;  %v3079_v9 = vmul.f32 0.03125, %v3051_v30 }
 0xb3f   :  { %4599 = vmatmul.mubr.msk.bf16.gmra.mrb[84].mxu0 %vm925_vm2, %v7155_v12  ;;  %v2974_v33 = vpop.xlane.xlu0 %2973  ;;  %v3171_v48 = vmul.f32 %v5695_v60, %v3091_v19  ;;  %v3192_v22 = vmul.f32 %v7105_v1, %v3170_v54 }
 0xb40   :  { %v3142_v7 = vadd.f32 1e-05, %v3126_v3  ;;  %v3127_v27 = vsub.f32 %v3079_v9, %v3111_v31  ;;  %v7162_v24 = vmul.f32 0.03125, %v2974_v33  ;;  %3358 = vmatprep.mubr.bf16.mxu0 %v5820_v40  ;;  %v3095_v31 = vsub.f32 %v7020_v36, %v7147_v47 }
 0xb41   :  { %v2977_v39 = vpop.xlane.xlu1 %2976  ;;  %v3193_v52 = vmul.f32 %v7105_v1, %v3171_v48  ;;  %v3214_v5 = vadd.f32 %v7116_v13, %v3192_v22 }
 0xb42   :  { %5700 = vrsqrt.f32 %v3142_v7  ;;  %v3143_v35 = vadd.f32 1e-05, %v3127_v27  ;;  %v7168_v32 = vmul.f32 0.03125, %v2977_v39  ;;  %v3112_v37 = vmul.f32 %v7162_v24, %v7162_v24 }
 0xb43   :  { %v3054_v49 = vpop.xlane.xlu0 %3053  ;;  %v3215_v10 = vadd.f32 %v7116_v13, %v3193_v52 }
 0xb44   :  { %v5697_v4 = vpop.eup %5696  ;;  %5702 = vrsqrt.f32 %v3143_v35  ;;  %v3080_v61 = vmul.f32 0.03125, %v3054_v49  ;;  %v3113_v6 = vmul.f32 %v7168_v32, %v7168_v32 }
 0xb45   :  { %v3057_v23 = vpop.xlane.xlu1 %3056  ;;  %v7176_v42 = vpack.c.bf16 %v3215_v10, %v3214_v5  ;;  %v3172_v0 = vmul.f32 %v5697_v4, %v3092_v45  ;;  %v3096_v5 = vsub.f32 %v7032_v46, %v7162_v24 }
 0xb46   :  { %v5699_v55 = vpop.eup %5698  ;;  %v3128_v51 = vsub.f32 %v3080_v61, %v3112_v37  ;;  %v3081_v15 = vmul.f32 0.03125, %v3057_v23 }
 0xb47   :  { %4600 = vmatmul.mubr.msk.bf16.gmra.mrb[88].mxu0 %vm925_vm2, %v7176_v42  ;;  %v2980_v57 = vpop.xlane.xlu0 %2979  ;;  %v3173_v58 = vmul.f32 %v5699_v55, %v3093_v26  ;;  %v3194_v11 = vmul.f32 %v7105_v1, %v3172_v0  ;;  %v3097_v55 = vsub.f32 %v7036_v18, %v7168_v32 }
 0xb48   :  { %v3144_v20 = vadd.f32 1e-05, %v3128_v51  ;;  %v3129_v59 = vsub.f32 %v3081_v15, %v3113_v6  ;;  %v7183_v16 = vmul.f32 0.03125, %v2980_v57  ;;  %3368 = vmatprep.mubr.bf16.mxu0 %v5820_v40 }
 0xb49   :  { %v2983_v56 = vpop.xlane.xlu1 %2982  ;;  %v3195_v29 = vmul.f32 %v7105_v1, %v3173_v58  ;;  %v3216_v14 = vadd.f32 %v7116_v13, %v3194_v11 }
 0xb4a   :  { %5704 = vrsqrt.f32 %v3144_v20  ;;  %v3145_v8 = vadd.f32 1e-05, %v3129_v59  ;;  %v7189_v25 = vmul.f32 0.03125, %v2983_v56  ;;  %v3114_v54 = vmul.f32 %v7183_v16, %v7183_v16 }
 0xb4b   :  { %v3060_v38 = vpop.xlane.xlu0 %3059  ;;  %v3217_v19 = vadd.f32 %v7116_v13, %v3195_v29  ;;  %v3098_v32 = vsub.f32 %v7054_v17, %v7183_v16 }
 0xb4c   :  { %v5701_v30 = vpop.eup %5700  ;;  %5706 = vrsqrt.f32 %v3145_v8  ;;  %v3082_v60 = vmul.f32 0.03125, %v3060_v38  ;;  %v3115_v33 = vmul.f32 %v7189_v25, %v7189_v25 }
 0xb4d   :  { %v3063_v3 = vpop.xlane.xlu1 %3062  ;;  %v7197_v9 = vpack.c.bf16 %v3217_v19, %v3216_v14  ;;  %v3174_v50 = vmul.f32 %v5701_v30, %v3094_v62  ;;  %v3099_v14 = vsub.f32 %v7058_v34, %v7189_v25 }
 0xb4e   :  { %v5703_v41 = vpop.eup %5702  ;;  %v3130_v48 = vsub.f32 %v3082_v60, %v3114_v54  ;;  %v3083_v22 = vmul.f32 0.03125, %v3063_v3 }
 0xb4f   :  { %4601 = vmatmul.mubr.msk.bf16.gmra.mrb[92].mxu0 %vm925_vm2, %v7197_v9  ;;  %v2986_v7 = vpop.xlane.xlu0 %2985  ;;  %v3175_v27 = vmul.f32 %v5703_v41, %v3095_v31  ;;  %v3196_v39 = vmul.f32 %v7105_v1, %v3174_v50 }
 0xb50   :  { %v3146_v52 = vadd.f32 1e-05, %v3130_v48  ;;  %v3131_v35 = vsub.f32 %v3083_v22, %v3115_v33  ;;  %v3004_v36 = vmul.f32 0.03125, %v2986_v7  ;;  %3378 = vmatprep.mubr.bf16.mxu0 %v5820_v40 }
 0xb51   :  { %v2989_v47 = vpop.xlane.xlu1 %2988  ;;  %v3197_v45 = vmul.f32 %v7105_v1, %v3175_v27  ;;  %v3218_v37 = vadd.f32 %v7116_v13, %v3196_v39 }
 0xb52   :  { %5708 = vrsqrt.f32 %v3146_v52  ;;  %v3147_v49 = vadd.f32 1e-05, %v3131_v35  ;;  %v3005_v10 = vmul.f32 0.03125, %v2989_v47  ;;  %v3116_v23 = vmul.f32 %v3004_v36, %v3004_v36 }
 0xb53   :  { %v3066_v4 = vpop.xlane.xlu0 %3065  ;;  %v3219_v61 = vadd.f32 %v7116_v13, %v3197_v45  ;;  %v3100_v16 = vsub.f32 %v7070_v28, %v3004_v36 }
 0xb54   :  { %v5705_v26 = vpop.eup %5704  ;;  %5710 = vrsqrt.f32 %v3147_v49  ;;  %v3084_v0 = vmul.f32 0.03125, %v3066_v4  ;;  %v3117_v58 = vmul.f32 %v3005_v10, %v3005_v10  ;;  %v3101_v34 = vsub.f32 %v7074_v2, %v3005_v10 }
 0xb55   :  { %v3069_v6 = vpop.xlane.xlu1 %3068  ;;  %v3230_v51 = vpack.c.bf16 %v3219_v61, %v3218_v37  ;;  %v3176_v15 = vmul.f32 %v5705_v26, %v3096_v5 }
 0xb56   :  { %v5707_v57 = vpop.eup %5706  ;;  %v3132_v11 = vsub.f32 %v3084_v0, %v3116_v23  ;;  %v3085_v46 = vmul.f32 0.03125, %v3069_v6 }
 0xb57   :  { %4602 = vmatmul.mubr.msk.bf16.gmra.mrb[96].mxu0 %vm925_vm2, %v3230_v51  ;;  %v3177_v24 = vmul.f32 %v5707_v57, %v3097_v55  ;;  %v3198_v20 = vmul.f32 %v7105_v1, %v3176_v15 }
 0xb58   :  { %v3148_v59 = vadd.f32 1e-05, %v3132_v11  ;;  %v3133_v56 = vsub.f32 %v3085_v46, %v3117_v58  ;;  %3388 = vmatprep.mubr.bf16.mxu0 %v5820_v40 }
 0xb59   :  { %v3199_v29 = vmul.f32 %v7105_v1, %v3177_v24  ;;  %v3220_v8 = vadd.f32 %v7116_v13, %v3198_v20 }
 0xb5a   :  { %5712 = vrsqrt.f32 %v3148_v59  ;;  %v3149_v18 = vadd.f32 1e-05, %v3133_v56 }
 0xb5b   :  { %v3221_v62 = vadd.f32 %v7116_v13, %v3199_v29 }
 0xb5c   :  { %v5709_v38 = vpop.eup %5708  ;;  %5714 = vrsqrt.f32 %v3149_v18 }
 0xb5d   :  { %v3231_v19 = vpack.c.bf16 %v3221_v62, %v3220_v8  ;;  %v3178_v30 = vmul.f32 %v5709_v38, %v3098_v32 }
 0xb5e   :  { %v5711_v54 = vpop.eup %5710 }
 0xb5f   :  { %4603 = vmatmul.mubr.msk.bf16.gmra.mrb[100].mxu0 %vm925_vm2, %v3231_v19  ;;  %v3179_v60 = vmul.f32 %v5711_v54, %v3099_v14  ;;  %v3200_v31 = vmul.f32 %v7105_v1, %v3178_v30 }
 0xb60   :  { %3398 = vmatprep.mubr.bf16.mxu0 %v5820_v40 }
 0xb61   :  { %v3201_v17 = vmul.f32 %v7105_v1, %v3179_v60  ;;  %v3222_v3 = vadd.f32 %v7116_v13, %v3200_v31 }
 0xb63   :  { %v3223_v50 = vadd.f32 %v7116_v13, %v3201_v17 }
 0xb64   :  { %v5713_v41 = vpop.eup %5712 }
 0xb65   :  { %v3232_v25 = vpack.c.bf16 %v3223_v50, %v3222_v3  ;;  %v3180_v33 = vmul.f32 %v5713_v41, %v3100_v16 }
 0xb66   :  { %v5715_v48 = vpop.eup %5714 }
 0xb67   :  { %4604 = vmatmul.mubr.msk.bf16.gmra.mrb[104].mxu0 %vm925_vm2, %v3232_v25  ;;  %v3181_v22 = vmul.f32 %v5715_v48, %v3101_v34  ;;  %v3202_v7 = vmul.f32 %v7105_v1, %v3180_v33 }
 0xb68   :  { %3408 = vmatprep.mubr.bf16.mxu0 %v5820_v40  ;;  %v7252_v40 = vld [vmem:[%s7695_s22] sm:$0x7] }
 0xb69   :  { %v3203_v27 = vmul.f32 %v7105_v1, %v3181_v22  ;;  %v3224_v28 = vadd.f32 %v7116_v13, %v3202_v7  ;;  %v7257_v2 = vrot.slane %v7252_v40, %v1221_v63 }
 0xb6b   :  { %v3225_v39 = vadd.f32 %v7116_v13, %v3203_v27  ;;  %v7262_v13 = vrot.slane %v7252_v40, %v1225_v53 }
 0xb6d   :  { %v3233_v52 = vpack.c.bf16 %v3225_v39, %v3224_v28 }
 0xb6f   :  { %4605 = vmatmul.mubr.msk.bf16.gmra.mrb[108].mxu0 %vm925_vm2, %v3233_v52 }
 0xb70   :  { %5295 = vmatprep.mubr.msk.bf16.mxu0 %vm925_vm2, %v7130_v43 }
 0xb77   :  { %5296 = vmatmul.mubr.msk.bf16.vlgmr.msra.gmra.mrb[112].mxu0 %vm925_vm2, %v7155_v12 }
 0xb78   :  { %5299 = vmatprep.mubr.msk.bf16.mxu0 %vm925_vm2, %v7176_v42 }
 0xb7f   :  { %5300 = vmatmul.mubr.msk.bf16.gmra.mrb[116].mxu0 %vm925_vm2, %v7197_v9 }
 0xb80   :  { %5303 = vmatprep.mubr.msk.bf16.mxu0 %vm925_vm2, %v3230_v51 }
 0xb87   :  { %5304 = vmatmul.mubr.msk.bf16.gmra.mrb[120].mxu0 %vm925_vm2, %v3231_v19 }
 0xb88   :  { %5307 = vmatprep.mubr.msk.bf16.mxu0 %vm925_vm2, %v3232_v25 }
 0xb8f   :  { %5308 = vmatmul.mubr.msk.bf16.gmra.mrb[124].mxu0 %vm925_vm2, %v3233_v52 }
 0xc0a   :  { %v3340_v1 = vpop.f32.mrb[80].mxu0 }
 0xc0b   :  { %v3342_v43 = vpop.f32.mrb[81].mxu0  ;;  %v3341_v42 = vadd.f32 %v3340_v1, %v7257_v2 }
 0xc0c   :  { %v3344_v12 = vpop.f32.mrb[82].mxu0  ;;  %v3343_v36 = vadd.f32 %v3342_v43, %v7262_v13 }
 0xc0d   :  { %v3345_v9 = vadd.f32 %v3344_v12, %v7257_v2  ;;  %v3346_v35 = vpop.f32.mrb[83].mxu0 }
 0xc0e   :  { %v3347_v47 = vadd.f32 %v3346_v35, %v7262_v13 }
 0xc0f   :  { %v3516_v45 = vpack.c.bf16 %v3345_v9, %v3341_v42 }
 0xc10   :  { %v3524_v63 = vpack.c.bf16 %v3347_v47, %v3343_v36 }
 0xc11   :  { %5327 = vmatprep.mubr.bf16.mxu1 %v3516_v45 }
 0xc12   :  { %v3350_v49 = vpop.f32.mrb[84].mxu0  ;;  %5311 = vmatprep.subr.bf16.mxu1 %v3524_v63 }
 0xc13   :  { %v7269_v5 = vadd.f32 %v3350_v49, %v7257_v2  ;;  %v3352_v53 = vpop.f32.mrb[85].mxu0  ;;  %5312 = vmatpush3.bf16.xpose.msra.mxu1 %v3524_v63 }
 0xc14   :  { %v3354_v10 = vpop.f32.mrb[86].mxu0  ;;  %v3353_v61 = vadd.f32 %v3352_v53, %v7262_v13 }
 0xc15   :  { %v7272_v4 = vadd.f32 %v3354_v10, %v7257_v2  ;;  %v3356_v37 = vpop.f32.mrb[87].mxu0 }
 0xc16   :  { %v3357_v26 = vadd.f32 %v3356_v37, %v7262_v13 }
 0xc17   :  { %v3517_v23 = vpack.c.bf16 %v7272_v4, %v7269_v5 }
 0xc18   :  { %v3525_v0 = vpack.c.bf16 %v3357_v26, %v3353_v61 }
 0xc1a   :  { %v3360_v55 = vpop.f32.mrb[88].mxu0  ;;  %5313 = vmatprep.subr.bf16.mxu1 %v3525_v0 }
 0xc1b   :  { %v7279_v6 = vadd.f32 %v3360_v55, %v7257_v2  ;;  %v3362_v51 = vpop.f32.mrb[89].mxu0  ;;  %5314 = vmatpush3.bf16.xpose.msra.mxu1 %v3525_v0 }
 0xc1c   :  { %v3364_v15 = vpop.f32.mrb[90].mxu0  ;;  %v3363_v11 = vadd.f32 %v3362_v51, %v7262_v13 }
 0xc1d   :  { %v7282_v57 = vadd.f32 %v3364_v15, %v7257_v2  ;;  %v3366_v58 = vpop.f32.mrb[91].mxu0 }
 0xc1e   :  { %v3367_v46 = vadd.f32 %v3366_v58, %v7262_v13 }
 0xc1f   :  { %v3518_v24 = vpack.c.bf16 %v7282_v57, %v7279_v6 }
 0xc20   :  { %v3526_v20 = vpack.c.bf16 %v3367_v46, %v3363_v11  ;;  %v3246_v11 = vrot.slane %v7252_v40, %v1229_v21 }
 0xc22   :  { %v3370_v59 = vpop.f32.mrb[92].mxu0  ;;  %5315 = vmatprep.subr.bf16.mxu1 %v3526_v20 }
 0xc23   :  { %v7289_v56 = vadd.f32 %v3370_v59, %v7257_v2  ;;  %v3372_v29 = vpop.f32.mrb[93].mxu0  ;;  %5316 = vmatpush3.bf16.xpose.msra.mxu1 %v3526_v20 }
 0xc24   :  { %v3374_v18 = vpop.f32.mrb[94].mxu0  ;;  %v3373_v62 = vadd.f32 %v3372_v29, %v7262_v13 }
 0xc25   :  { %v7292_v32 = vadd.f32 %v3374_v18, %v7257_v2  ;;  %v3376_v8 = vpop.f32.mrb[95].mxu0 }
 0xc26   :  { %v3377_v38 = vadd.f32 %v3376_v8, %v7262_v13 }
 0xc27   :  { %v3519_v14 = vpack.c.bf16 %v7292_v32, %v7289_v56 }
 0xc28   :  { %v3527_v19 = vpack.c.bf16 %v3377_v38, %v3373_v62 }
 0xc2a   :  { %v3380_v30 = vpop.f32.mrb[96].mxu0  ;;  %5317 = vmatprep.subr.bf16.mxu1 %v3527_v19 }
 0xc2b   :  { %v7299_v54 = vadd.f32 %v3380_v30, %v7257_v2  ;;  %v3382_v60 = vpop.f32.mrb[97].mxu0  ;;  %5318 = vmatpush3.bf16.xpose.msra.mxu1 %v3527_v19 }
 0xc2c   :  { %v3384_v31 = vpop.f32.mrb[98].mxu0  ;;  %v3383_v3 = vadd.f32 %v3382_v60, %v7262_v13 }
 0xc2d   :  { %v7302_v17 = vadd.f32 %v3384_v31, %v7257_v2  ;;  %v3386_v16 = vpop.f32.mrb[99].mxu0 }
 0xc2e   :  { %v3387_v50 = vadd.f32 %v3386_v16, %v7262_v13 }
 0xc2f   :  { %v3520_v41 = vpack.c.bf16 %v7302_v17, %v7299_v54 }
 0xc30   :  { %v3528_v34 = vpack.c.bf16 %v3387_v50, %v3383_v3 }
 0xc32   :  { %v3390_v25 = vpop.f32.mrb[100].mxu0  ;;  %5319 = vmatprep.subr.bf16.mxu1 %v3528_v34 }
 0xc33   :  { %v7309_v33 = vadd.f32 %v3390_v25, %v7257_v2  ;;  %v3392_v48 = vpop.f32.mrb[101].mxu0  ;;  %5320 = vmatpush3.bf16.xpose.msra.mxu1 %v3528_v34 }
 0xc34   :  { %v3394_v22 = vpop.f32.mrb[102].mxu0  ;;  %v3393_v28 = vadd.f32 %v3392_v48, %v7262_v13 }
 0xc35   :  { %v7312_v7 = vadd.f32 %v3394_v22, %v7257_v2  ;;  %v3396_v27 = vpop.f32.mrb[103].mxu0 }
 0xc36   :  { %v3397_v39 = vadd.f32 %v3396_v27, %v7262_v13 }
 0xc37   :  { %v3521_v52 = vpack.c.bf16 %v7312_v7, %v7309_v33  ;;  %v5796_v33 = vld [vmem:[%s7686_s1] sm:$0xff]  }
 0xc38   :  { %v3529_v1 = vpack.c.bf16 %v3397_v39, %v3393_v28 }
 0xc3a   :  { %v3400_v43 = vpop.f32.mrb[104].mxu0  ;;  %5321 = vmatprep.subr.bf16.mxu1 %v3529_v1 }
 0xc3b   :  { %v7319_v12 = vadd.f32 %v3400_v43, %v7257_v2  ;;  %v3402_v42 = vpop.f32.mrb[105].mxu0  ;;  %5322 = vmatpush3.bf16.xpose.msra.mxu1 %v3529_v1 }
 0xc3c   :  { %v3404_v9 = vpop.f32.mrb[106].mxu0  ;;  %v3403_v47 = vadd.f32 %v3402_v42, %v7262_v13 }
 0xc3d   :  { %v7322_v35 = vadd.f32 %v3404_v9, %v7257_v2  ;;  %v3406_v36 = vpop.f32.mrb[107].mxu0 }
 0xc3e   :  { %v3407_v45 = vadd.f32 %v3406_v36, %v7262_v13  ;;  %v5797_v36 = vld [vmem:[%s7729_s11] sm:$0xff] }
 0xc3f   :  { %v3522_v63 = vpack.c.bf16 %v7322_v35, %v7319_v12 }
 0xc40   :  { %v3530_v49 = vpack.c.bf16 %v3407_v45, %v3403_v47 }
 0xc42   :  { %v3410_v53 = vpop.f32.mrb[108].mxu0  ;;  %5323 = vmatprep.subr.bf16.mxu1 %v3530_v49 }
 0xc43   :  { %v7329_v10 = vadd.f32 %v3410_v53, %v7257_v2  ;;  %v3412_v37 = vpop.f32.mrb[109].mxu0  ;;  %5324 = vmatpush3.bf16.xpose.msra.mxu1 %v3530_v49  ;;  %v5799_v53 = vld [vmem:[%s7729_s11 + $0x10] sm:$0xff] }
 0xc44   :  { %v3414_v61 = vpop.f32.mrb[110].mxu0  ;;  %v3413_v55 = vadd.f32 %v3412_v37, %v7262_v13 }
 0xc45   :  { %v7332_v26 = vadd.f32 %v3414_v61, %v7257_v2  ;;  %v3416_v0 = vpop.f32.mrb[111].mxu0 }
 0xc46   :  { %v3417_v51 = vadd.f32 %v3416_v0, %v7262_v13 }
 0xc47   :  { %v3523_v15 = vpack.c.bf16 %v7332_v26, %v7329_v10  ;;  %v5800_v26 = vld [vmem:[%s7729_s11 + $0x18] sm:$0xff] }
 0xc48   :  { %v3531_v58 = vpack.c.bf16 %v3417_v51, %v3413_v55 }
 0xc4a   :  { %v5297_v46 = vpop.f32.mrb[112].mxu0  ;;  %5325 = vmatprep.subr.bf16.mxu1 %v3531_v58 }
 0xc4b   :  { %v3453_v20 = vpop.f32.mrb[113].mxu0  ;;  %5326 = vmatpush3.bf16.xpose.msra.mxu1 %v3531_v58  ;;  %v3462_v2 = vadd.f32 %v5297_v46, %v3246_v11 }
 0xc4c   :  { %v5298_v59 = vpop.f32.mrb[114].mxu0  ;;  %v3454_v8 = vadd.f32 %v3453_v20, %v3246_v11 }
 0xc4d   :  { %v3465_v29 = vadd.f32 %v5298_v59, %v3246_v11  ;;  %v3456_v18 = vpop.f32.mrb[115].mxu0 }
 0xc4e   :  { %v3457_v62 = vadd.f32 %v3456_v18, %v3246_v11  ;;  %v5803_v18 = vld [vmem:[%s7729_s11 + $0x30] sm:$0xff] }
 0xc4f   :  { %v3814_v38 = vpack.c.bf16 %v3465_v29, %v3462_v2  ;;  %v5802_v2 = vld [vmem:[%s7729_s11 + $0x28] sm:$0xff] }
 0xc50   :  { %v3813_v13 = vpack.c.bf16 %v3457_v62, %v3454_v8 }
 0xc52   :  { %v5301_v19 = vpop.f32.mrb[116].mxu0  ;;  %5328 = vmatmul.mubr.bf16.vlgmr.msra.gmra.mrb[128].mxu1 %v3517_v23  ;;  %5343 = vmatprep.subr.bf16.mxu0 %v3813_v13 }
 0xc53   :  { %v3469_v44 = vpop.f32.mrb[117].mxu0  ;;  %5331 = vmatprep.mubr.bf16.mxu1 %v3518_v24  ;;  %5344 = vmatpush3.bf16.msra.mxu0 %v3813_v13  ;;  %v3478_v40 = vadd.f32 %v5301_v19, %v3246_v11  ;;  %v5804_v13 = vld [vmem:[%s7729_s11 + $0x38] sm:$0xff] }
 0xc54   :  { %v5302_v21 = vpop.f32.mrb[118].mxu0  ;;  %5345 = vmatprep.subr.bf16.mxu0 %v3814_v38  ;;  %v3470_v31 = vadd.f32 %v3469_v44, %v3246_v11 }
 0xc55   :  { %v3481_v30 = vadd.f32 %v5302_v21, %v3246_v11  ;;  %v3472_v60 = vpop.f32.mrb[119].mxu0 }
 0xc56   :  { %v3473_v16 = vadd.f32 %v3472_v60, %v3246_v11  ;;  %v5805_v60 = vld [vmem:[%s7729_s11 + $0x40] sm:$0xff] }
 0xc57   :  { %v3816_v3 = vpack.c.bf16 %v3481_v30, %v3478_v40  ;;  %5346 = vmatpush3.bf16.msra.mxu0 %v3814_v38 }
 0xc58   :  { %v3815_v50 = vpack.c.bf16 %v3473_v16, %v3470_v31 }
 0xc5a   :  { %v5305_v34 = vpop.f32.mrb[120].mxu0  ;;  %5332 = vmatmul.mubr.bf16.gmra.mrb[132].mxu1 %v3519_v14  ;;  %5347 = vmatprep.subr.bf16.mxu0 %v3815_v50 }
 0xc5b   :  { %v3485_v5 = vpop.f32.mrb[121].mxu0  ;;  %5335 = vmatprep.mubr.bf16.mxu1 %v3520_v41  ;;  %5348 = vmatpush3.bf16.msra.mxu0 %v3815_v50  ;;  %v3494_v23 = vadd.f32 %v5305_v34, %v3246_v11  ;;  %v5806_v50 = vld [vmem:[%s7729_s11 + $0x48] sm:$0xff] }
 0xc5c   :  { %v5306_v4 = vpop.f32.mrb[122].mxu0  ;;  %5349 = vmatprep.subr.bf16.mxu0 %v3816_v3  ;;  %v3486_v24 = vadd.f32 %v3485_v5, %v3246_v11  ;;  %v5807_v5 = vld [vmem:[%s7729_s11 + $0x50] sm:$0xff] }
 0xc5d   :  { %v3497_v6 = vadd.f32 %v5306_v4, %v3246_v11  ;;  %v3488_v57 = vpop.f32.mrb[123].mxu0 }
 0xc5e   :  { %v3489_v25 = vadd.f32 %v3488_v57, %v3246_v11  ;;  %v5808_v57 = vld [vmem:[%s7729_s11 + $0x58] sm:$0xff] }
 0xc5f   :  { %v3818_v48 = vpack.c.bf16 %v3497_v6, %v3494_v23  ;;  %5350 = vmatpush3.bf16.msra.mxu0 %v3816_v3 }
 0xc60   :  { %v3817_v22 = vpack.c.bf16 %v3489_v25, %v3486_v24 }
 0xc62   :  { %v5309_v27 = vpop.f32.mrb[124].mxu0  ;;  %5336 = vmatmul.mubr.bf16.gmra.mrb[136].mxu1 %v3521_v52  ;;  %5351 = vmatprep.subr.bf16.mxu0 %v3817_v22 }
 0xc63   :  { %v3501_v56 = vpop.f32.mrb[125].mxu0  ;;  %5339 = vmatprep.mubr.bf16.mxu1 %v3522_v63  ;;  %5352 = vmatpush3.bf16.msra.mxu0 %v3817_v22  ;;  %v3510_v14 = vadd.f32 %v5309_v27, %v3246_v11  ;;  %v5798_v63 = vld [vmem:[%s7729_s11 + $0x8] sm:$0xff] }
 0xc64   :  { %v5310_v32 = vpop.f32.mrb[126].mxu0  ;;  %5353 = vmatprep.subr.bf16.mxu0 %v3818_v48  ;;  %v3502_v41 = vadd.f32 %v3501_v56, %v3246_v11  ;;  %v5809_v56 = vld [vmem:[%s7729_s11 + $0x60] sm:$0xff] }
 0xc65   :  { %v3513_v54 = vadd.f32 %v5310_v32, %v3246_v11  ;;  %v3504_v17 = vpop.f32.mrb[127].mxu0 }
 0xc66   :  { %v3505_v28 = vadd.f32 %v3504_v17, %v3246_v11  ;;  %v5801_v11 = vld [vmem:[%s7729_s11 + $0x20] sm:$0xff]  ;;  %v5810_v17 = vld [vmem:[%s7729_s11 + $0x68] sm:$0xff] }
 0xc67   :  { %v3820_v39 = vpack.c.bf16 %v3513_v54, %v3510_v14  ;;  %5354 = vmatpush3.bf16.msra.mxu0 %v3818_v48 }
 0xc68   :  { %v3819_v1 = vpack.c.bf16 %v3505_v28, %v3502_v41  ;;  %v5811_v28 = vld [vmem:[%s7729_s11 + $0x70] sm:$0xff] }
 0xc6a   :  { %5340 = vmatmul.mubr.bf16.gmra.mrb[140].mxu1 %v3523_v15  ;;  %5355 = vmatprep.subr.bf16.mxu0 %v3819_v1 }
 0xc6b   :  { %5356 = vmatpush3.bf16.msra.mxu0 %v3819_v1  ;;  %5423 = vmatprep.mubr.bf16.mxu1 %v5796_v33  ;;  %v5812_v1 = vld [vmem:[%s7729_s11 + $0x78] sm:$0xff] }
 0xc6c   :  { %5357 = vmatprep.subr.bf16.mxu0 %v3820_v39 }
 0xc6f   :  { %5358 = vmatpush3.bf16.msra.mxu0 %v3820_v39 }
 0xd25   :  { %v5329_v7 = vpop.f32.mrb[128].mxu1 }
 0xd26   :  { %v3566_v52 = vpop.f32.mrb[129].mxu1  ;;  %v3631_v9 = vmul.f32 0.17677669, %v5329_v7 }
 0xd27   :  { %v3629_v43 = vmul.f32 0.17677669, %v3566_v52  ;;  %v5330_v12 = vpop.f32.mrb[130].mxu1 }
 0xd28   :  { %v3569_v42 = vpop.f32.mrb[131].mxu1  ;;  %v3632_v45 = vmul.f32 0.17677669, %v5330_v12  ;;  %v7376_v10 = vadd.f32 %v5799_v53, %v3631_v9 }
 0xd29   :  { %v3630_v35 = vmul.f32 0.17677669, %v3569_v42  ;;  %v7365_v47 = vadd.f32 %v5797_v36, %v3629_v43 }
 0xd2a   :  { %v7382_v0 = vadd.f32 %v5800_v26, %v3632_v45 }
 0xd2b   :  { %3661 = vmax.xlane.f32.xlu0 %v7365_v47  ;;  %v7371_v49 = vadd.f32 %v5798_v63, %v3630_v35 }
 0xd2d   :  { %3663 = vmax.xlane.f32.xlu1 %v7371_v49  ;;  %v5333_v37 = vpop.f32.mrb[132].mxu1 }
 0xd2e   :  { %v3582_v61 = vpop.f32.mrb[133].mxu1  ;;  %v3635_v58 = vmul.f32 0.17677669, %v5333_v37 }
 0xd2f   :  { %v3633_v55 = vmul.f32 0.17677669, %v3582_v61  ;;  %3665 = vmax.xlane.f32.xlu0 %v7376_v10  ;;  %v5334_v51 = vpop.f32.mrb[134].mxu1 }
 0xd30   :  { %v3585_v15 = vpop.f32.mrb[135].mxu1  ;;  %v3636_v59 = vmul.f32 0.17677669, %v5334_v51  ;;  %v7400_v8 = vadd.f32 %v5803_v18, %v3635_v58 }
 0xd31   :  { %v7388_v46 = vadd.f32 %v5801_v11, %v3633_v55  ;;  %v3634_v20 = vmul.f32 0.17677669, %v3585_v15  ;;  %3667 = vmax.xlane.f32.xlu1 %v7382_v0 }
 0xd32   :  { %v7406_v19 = vadd.f32 %v5804_v13, %v3636_v59 }
 0xd33   :  { %v7394_v29 = vadd.f32 %v5802_v2, %v3634_v20  ;;  %3669 = vmax.xlane.f32.xlu0 %v7388_v46 }
 0xd35   :  { %3671 = vmax.xlane.f32.xlu1 %v7394_v29  ;;  %v5337_v62 = vpop.f32.mrb[136].mxu1 }
 0xd36   :  { %v3598_v38 = vpop.f32.mrb[137].mxu1  ;;  %v3639_v30 = vmul.f32 0.17677669, %v5337_v62 }
 0xd37   :  { %v3637_v44 = vmul.f32 0.17677669, %v3598_v38  ;;  %3673 = vmax.xlane.f32.xlu0 %v7400_v8  ;;  %v5338_v21 = vpop.f32.mrb[138].mxu1 }
 0xd38   :  { %v3601_v40 = vpop.f32.mrb[139].mxu1  ;;  %v3640_v3 = vmul.f32 0.17677669, %v5338_v21  ;;  %v7424_v4 = vadd.f32 %v5807_v5, %v3639_v30 }
 0xd39   :  { %v7412_v31 = vadd.f32 %v5805_v60, %v3637_v44  ;;  %v3638_v16 = vmul.f32 0.17677669, %v3601_v40  ;;  %3675 = vmax.xlane.f32.xlu1 %v7406_v19 }
 0xd3a   :  { %v7430_v24 = vadd.f32 %v5808_v57, %v3640_v3 }
 0xd3b   :  { %v7418_v34 = vadd.f32 %v5806_v50, %v3638_v16  ;;  %3677 = vmax.xlane.f32.xlu0 %v7412_v31 }
 0xd3d   :  { %3679 = vmax.xlane.f32.xlu1 %v7418_v34  ;;  %v5341_v23 = vpop.f32.mrb[140].mxu1 }
 0xd3e   :  { %v3614_v6 = vpop.f32.mrb[141].mxu1  ;;  %v3643_v27 = vmul.f32 0.17677669, %v5341_v23 }
 0xd3f   :  { %v3641_v25 = vmul.f32 0.17677669, %v3614_v6  ;;  %3681 = vmax.xlane.f32.xlu0 %v7424_v4  ;;  %v5342_v48 = vpop.f32.mrb[142].mxu1 }
 0xd40   :  { %v3617_v22 = vpop.f32.mrb[143].mxu1  ;;  %v3644_v54 = vmul.f32 0.17677669, %v5342_v48  ;;  %v7448_v39 = vadd.f32 %v5811_v28, %v3643_v27 }
 0xd41   :  { %v7436_v32 = vadd.f32 %v5809_v56, %v3641_v25  ;;  %v3642_v14 = vmul.f32 0.17677669, %v3617_v22  ;;  %3683 = vmax.xlane.f32.xlu1 %v7430_v24 }
 0xd42   :  { %v7454_v33 = vadd.f32 %v5812_v1, %v3644_v54 }
 0xd43   :  { %v7442_v41 = vadd.f32 %v5810_v17, %v3642_v14  ;;  %3685 = vmax.xlane.f32.xlu0 %v7436_v32 }
 0xd45   :  { %3687 = vmax.xlane.f32.xlu1 %v7442_v41 }
 0xd47   :  { %3689 = vmax.xlane.f32.xlu0 %v7448_v39 }
 0xd49   :  { %3691 = vmax.xlane.f32.xlu1 %v7454_v33 }
 0xdb8   :  { %v3662_v7 = vpop.xlane.xlu0 %3661 }
 0xdb9   :  { %v3693_v52 = vsub.f32 %v7365_v47, %v3662_v7  ;;  %v5580_v7 = vld [vmem:[%s7696_s23] sm:$0xff]  }
 0xdba   :  { %v3664_v43 = vpop.xlane.xlu1 %3663  ;;  %5375 = vmatprep.subr.bf16.mxu0 %v5580_v7 }
 0xdbb   :  { %v3709_v12 = vmul.f32 1.442695, %v3693_v52  ;;  %v3694_v42 = vsub.f32 %v7371_v49, %v3664_v43 }
 0xdbc   :  { %v3666_v9 = vpop.xlane.xlu0 %3665 }
 0xdbd   :  { %5716 = vpow2.f32 %v3709_v12  ;;  %v3711_v35 = vmul.f32 1.442695, %v3694_v42  ;;  %v3695_v36 = vsub.f32 %v7376_v10, %v3666_v9 }
 0xdbe   :  { %v3668_v45 = vpop.xlane.xlu1 %3667 }
 0xdbf   :  { %5718 = vpow2.f32 %v3711_v35  ;;  %v3713_v63 = vmul.f32 1.442695, %v3695_v36  ;;  %v3696_v53 = vsub.f32 %v7382_v0, %v3668_v45 }
 0xdc0   :  { %v3670_v37 = vpop.xlane.xlu0 %3669 }
 0xdc1   :  { %5720 = vpow2.f32 %v3713_v63  ;;  %v3715_v61 = vmul.f32 1.442695, %v3696_v53  ;;  %v3697_v26 = vsub.f32 %v7388_v46, %v3670_v37 }
 0xdc2   :  { %v3672_v47 = vpop.xlane.xlu1 %3671 }
 0xdc3   :  { %5722 = vpow2.f32 %v3715_v61  ;;  %v3717_v55 = vmul.f32 1.442695, %v3697_v26  ;;  %v3698_v49 = vsub.f32 %v7394_v29, %v3672_v47 }
 0xdc4   :  { %v3674_v51 = vpop.xlane.xlu0 %3673 }
 0xdc5   :  { %5724 = vpow2.f32 %v3717_v55  ;;  %v3719_v15 = vmul.f32 1.442695, %v3698_v49  ;;  %v3699_v10 = vsub.f32 %v7400_v8, %v3674_v51 }
 0xdc6   :  { %v3676_v58 = vpop.xlane.xlu1 %3675 }
 0xdc7   :  { %v7465_v11 = vpop.eup %5716  ;;  %5726 = vpow2.f32 %v3719_v15  ;;  %v3721_v0 = vmul.f32 1.442695, %v3699_v10  ;;  %v3700_v20 = vsub.f32 %v7406_v19, %v3676_v58 }
 0xdc8   :  { %v3678_v59 = vpop.xlane.xlu0 %3677  ;;  %3741 = vadd.xlane.f32.xlu0 %v7465_v11 }
 0xdc9   :  { %v7469_v46 = vpop.eup %5718  ;;  %5728 = vpow2.f32 %v3721_v0  ;;  %v3723_v2 = vmul.f32 1.442695, %v3700_v20  ;;  %v3701_v29 = vsub.f32 %v7412_v31, %v3678_v59 }
 0xdca   :  { %v3680_v18 = vpop.xlane.xlu1 %3679  ;;  %3743 = vadd.xlane.f32.xlu1 %v7469_v46 }
 0xdcb   :  { %v7473_v8 = vpop.eup %5720  ;;  %5730 = vpow2.f32 %v3723_v2  ;;  %v3725_v62 = vmul.f32 1.442695, %v3701_v29  ;;  %v3702_v38 = vsub.f32 %v7418_v34, %v3680_v18 }
 0xdcc   :  { %v3682_v13 = vpop.xlane.xlu0 %3681  ;;  %3745 = vadd.xlane.f32.xlu0 %v7473_v8 }
 0xdcd   :  { %v7477_v19 = vpop.eup %5722  ;;  %5732 = vpow2.f32 %v3725_v62  ;;  %v3727_v44 = vmul.f32 1.442695, %v3702_v38  ;;  %v3703_v21 = vsub.f32 %v7424_v4, %v3682_v13  ;;  %v5582_v38 = vld [vmem:[%s7696_s23 + $0x10] sm:$0xff]  }
 0xdce   :  { %v3684_v40 = vpop.xlane.xlu1 %3683  ;;  %3747 = vadd.xlane.f32.xlu1 %v7477_v19 }
 0xdcf   :  { %v7481_v30 = vpop.eup %5724  ;;  %5734 = vpow2.f32 %v3727_v44  ;;  %v3729_v60 = vmul.f32 1.442695, %v3703_v21  ;;  %v3704_v31 = vsub.f32 %v7430_v24, %v3684_v40 }
 0xdd0   :  { %3749 = vadd.xlane.f32.xlu0 %v7481_v30  ;;  %v3686_v16 = vpop.xlane.xlu0 %3685 }
 0xdd1   :  { %v7485_v3 = vpop.eup %5726  ;;  %5736 = vpow2.f32 %v3729_v60  ;;  %v3731_v50 = vmul.f32 1.442695, %v3704_v31  ;;  %v3705_v34 = vsub.f32 %v7436_v32, %v3686_v16  ;;  %v5583_v31 = vld [vmem:[%s7696_s23 + $0x18] sm:$0xff]  }
 0xdd2   :  { %3751 = vadd.xlane.f32.xlu1 %v7485_v3  ;;  %v3688_v5 = vpop.xlane.xlu1 %3687 }
 0xdd3   :  { %v7489_v4 = vpop.eup %5728  ;;  %5738 = vpow2.f32 %v3731_v50  ;;  %v3733_v23 = vmul.f32 1.442695, %v3705_v34  ;;  %v3706_v6 = vsub.f32 %v7442_v41, %v3688_v5 }
 0xdd4   :  { %3753 = vadd.xlane.f32.xlu0 %v7489_v4  ;;  %v3690_v57 = vpop.xlane.xlu0 %3689 }
 0xdd5   :  { %v7493_v24 = vpop.eup %5730  ;;  %5740 = vpow2.f32 %v3733_v23  ;;  %v3735_v25 = vmul.f32 1.442695, %v3706_v6  ;;  %v3707_v48 = vsub.f32 %v7448_v39, %v3690_v57  ;;  %v5584_v23 = vld [vmem:[%s7696_s23 + $0x20] sm:$0xff]  }
 0xdd6   :  { %3755 = vadd.xlane.f32.xlu1 %v7493_v24  ;;  %v3692_v22 = vpop.xlane.xlu1 %3691 }
 0xdd7   :  { %v7497_v27 = vpop.eup %5732  ;;  %5742 = vpow2.f32 %v3735_v25  ;;  %v3737_v56 = vmul.f32 1.442695, %v3707_v48  ;;  %v3708_v32 = vsub.f32 %v7454_v33, %v3692_v22  ;;  %v5585_v22 = vld [vmem:[%s7696_s23 + $0x28] sm:$0xff]  }
 0xdd8   :  { %3757 = vadd.xlane.f32.xlu0 %v7497_v27 }
 0xdd9   :  { %v7501_v14 = vpop.eup %5734  ;;  %5744 = vpow2.f32 %v3737_v56  ;;  %v3739_v54 = vmul.f32 1.442695, %v3708_v32 }
 0xdda   :  { %3759 = vadd.xlane.f32.xlu1 %v7501_v14 }
 0xddb   :  { %v7504_v17 = vpop.eup %5736  ;;  %5746 = vpow2.f32 %v3739_v54 }
 0xddc   :  { %3761 = vadd.xlane.f32.xlu0 %v7504_v17 }
 0xddd   :  { %v7507_v41 = vpop.eup %5738 }
 0xdde   :  { %3763 = vadd.xlane.f32.xlu1 %v7507_v41 }
 0xddf   :  { %v7510_v28 = vpop.eup %5740 }
 0xde0   :  { %3765 = vadd.xlane.f32.xlu0 %v7510_v28 }
 0xde1   :  { %v7513_v39 = vpop.eup %5742 }
 0xde2   :  { %3767 = vadd.xlane.f32.xlu1 %v7513_v39 }
 0xde3   :  { %v7516_v1 = vpop.eup %5744 }
 0xde4   :  { %3769 = vadd.xlane.f32.xlu0 %v7516_v1 }
 0xde5   :  { %v7519_v33 = vpop.eup %5746 }
 0xde6   :  { %3771 = vadd.xlane.f32.xlu1 %v7519_v33 }
 0xe55   :  { %v3742_v52 = vpop.xlane.xlu0 %3741 }
 0xe56   :  { %5748 = vrcp.f32 %v3742_v52 }
 0xe57   :  { %v3744_v43 = vpop.xlane.xlu1 %3743 }
 0xe58   :  { %5750 = vrcp.f32 %v3744_v43  ;;  %v5586_v43 = vld [vmem:[%s7696_s23 + $0x30] sm:$0xff]  }
 0xe59   :  { %v3746_v12 = vpop.xlane.xlu0 %3745 }
 0xe5a   :  { %5752 = vrcp.f32 %v3746_v12 }
 0xe5b   :  { %v3748_v42 = vpop.xlane.xlu1 %3747 }
 0xe5c   :  { %5754 = vrcp.f32 %v3748_v42 }
 0xe5d   :  { %v3750_v9 = vpop.xlane.xlu0 %3749 }
 0xe5e   :  { %5756 = vrcp.f32 %v3750_v9 }
 0xe5f   :  { %v3752_v35 = vpop.xlane.xlu1 %3751 }
 0xe60   :  { %v5749_v36 = vpop.eup %5748  ;;  %5758 = vrcp.f32 %v3752_v35 }
 0xe61   :  { %v3754_v45 = vpop.xlane.xlu0 %3753  ;;  %v3789_v37 = vmul.f32 %v5749_v36, %v7465_v11  ;;  %v5581_v11 = vld [vmem:[%s7696_s23 + $0x8] sm:$0xff]  }
 0xe62   :  { %v5751_v63 = vpop.eup %5750  ;;  %5760 = vrcp.f32 %v3754_v45 }
 0xe63   :  { %v3756_v53 = vpop.xlane.xlu1 %3755  ;;  %v3790_v61 = vmul.f32 %v5751_v63, %v7469_v46 }
 0xe64   :  { %v5753_v26 = vpop.eup %5752  ;;  %5762 = vrcp.f32 %v3756_v53 }
 0xe65   :  { %v3758_v47 = vpop.xlane.xlu0 %3757  ;;  %v3805_v55 = vpack.c.bf16 %v3790_v61, %v3789_v37  ;;  %v3791_v51 = vmul.f32 %v5753_v26, %v7473_v8 }
 0xe66   :  { %v5755_v49 = vpop.eup %5754  ;;  %5764 = vrcp.f32 %v3758_v47 }
 0xe67   :  { %v3792_v15 = vmul.f32 %v5755_v49, %v7477_v19  ;;  %5359 = vmatprep.mubr.bf16.mxu0 %v3805_v55  ;;  %v3760_v10 = vpop.xlane.xlu1 %3759 }
 0xe68   :  { %v5757_v58 = vpop.eup %5756  ;;  %5766 = vrcp.f32 %v3760_v10 }
 0xe69   :  { %v3762_v0 = vpop.xlane.xlu0 %3761  ;;  %v3806_v20 = vpack.c.bf16 %v3792_v15, %v3791_v51  ;;  %v3793_v2 = vmul.f32 %v5757_v58, %v7481_v30 }
 0xe6a   :  { %v5759_v59 = vpop.eup %5758  ;;  %5768 = vrcp.f32 %v3762_v0 }
 0xe6b   :  { %5360 = vmatmul.mubr.bf16.vlgmr.msra.gmra.mrb[128].mxu0 %v3806_v20  ;;  %v3764_v46 = vpop.xlane.xlu1 %3763  ;;  %v3794_v29 = vmul.f32 %v5759_v59, %v7485_v3 }
 0xe6c   :  { %v5761_v18 = vpop.eup %5760  ;;  %5770 = vrcp.f32 %v3764_v46  ;;  %5376 = vmatpush3.bf16.msra.mxu0 %v5580_v7 }
 0xe6d   :  { %v3766_v8 = vpop.xlane.xlu0 %3765  ;;  %v3807_v62 = vpack.c.bf16 %v3794_v29, %v3793_v2  ;;  %5377 = vmatprep.subr.bf16.mxu0 %v5581_v11  ;;  %v3795_v44 = vmul.f32 %v5761_v18, %v7489_v4 }
 0xe6e   :  { %v5763_v13 = vpop.eup %5762  ;;  %5772 = vrcp.f32 %v3766_v8 }
 0xe6f   :  { %5363 = vmatprep.mubr.bf16.mxu0 %v3807_v62  ;;  %v3768_v19 = vpop.xlane.xlu1 %3767  ;;  %v3796_v21 = vmul.f32 %v5763_v13, %v7493_v24 }
 0xe70   :  { %v5765_v40 = vpop.eup %5764  ;;  %5774 = vrcp.f32 %v3768_v19  ;;  %5378 = vmatpush3.bf16.msra.mxu0 %v5581_v11 }
 0xe71   :  { %v3770_v30 = vpop.xlane.xlu0 %3769  ;;  %v3808_v60 = vpack.c.bf16 %v3796_v21, %v3795_v44  ;;  %5379 = vmatprep.subr.bf16.mxu0 %v5582_v38  ;;  %v3797_v50 = vmul.f32 %v5765_v40, %v7497_v27 }
 0xe72   :  { %v5767_v16 = vpop.eup %5766  ;;  %5776 = vrcp.f32 %v3770_v30 }
 0xe73   :  { %5364 = vmatmul.mubr.bf16.gmra.mrb[132].mxu0 %v3808_v60  ;;  %v3772_v3 = vpop.xlane.xlu1 %3771  ;;  %v3798_v34 = vmul.f32 %v5767_v16, %v7501_v14 }
 0xe74   :  { %v5769_v5 = vpop.eup %5768  ;;  %5778 = vrcp.f32 %v3772_v3  ;;  %5380 = vmatpush3.bf16.msra.mxu0 %v5582_v38 }
 0xe75   :  { %v3809_v4 = vpack.c.bf16 %v3798_v34, %v3797_v50  ;;  %5381 = vmatprep.subr.bf16.mxu0 %v5583_v31  ;;  %v3799_v57 = vmul.f32 %v5769_v5, %v7504_v17 }
 0xe76   :  { %v5771_v6 = vpop.eup %5770 }
 0xe77   :  { %5367 = vmatprep.mubr.bf16.mxu0 %v3809_v4  ;;  %v3800_v24 = vmul.f32 %v5771_v6, %v7507_v41 }
 0xe78   :  { %v5773_v25 = vpop.eup %5772  ;;  %5382 = vmatpush3.bf16.msra.mxu0 %v5583_v31 }
 0xe79   :  { %v3810_v48 = vpack.c.bf16 %v3800_v24, %v3799_v57  ;;  %5383 = vmatprep.subr.bf16.mxu0 %v5584_v23  ;;  %v3801_v56 = vmul.f32 %v5773_v25, %v7510_v28  ;;  %v5587_v28 = vld [vmem:[%s7696_s23 + $0x38] sm:$0xff]  }
 0xe7a   :  { %v5775_v27 = vpop.eup %5774 }
 0xe7b   :  { %5368 = vmatmul.mubr.bf16.gmra.mrb[136].mxu0 %v3810_v48  ;;  %v3802_v32 = vmul.f32 %v5775_v27, %v7513_v39 }
 0xe7c   :  { %v5777_v14 = vpop.eup %5776  ;;  %5384 = vmatpush3.bf16.msra.mxu0 %v5584_v23 }
 0xe7d   :  { %v3811_v54 = vpack.c.bf16 %v3802_v32, %v3801_v56  ;;  %5385 = vmatprep.subr.bf16.mxu0 %v5585_v22  ;;  %v3803_v41 = vmul.f32 %v5777_v14, %v7516_v1 }
 0xe7e   :  { %v5779_v17 = vpop.eup %5778 }
 0xe7f   :  { %5371 = vmatprep.mubr.bf16.mxu0 %v3811_v54  ;;  %v3804_v7 = vmul.f32 %v5779_v17, %v7519_v33 }
 0xe80   :  { %5386 = vmatpush3.bf16.msra.mxu0 %v5585_v22 }
 0xe81   :  { %v3812_v52 = vpack.c.bf16 %v3804_v7, %v3803_v41  ;;  %5387 = vmatprep.subr.bf16.mxu0 %v5586_v43 }
 0xe83   :  { %5372 = vmatmul.mubr.bf16.gmra.mrb[140].mxu0 %v3812_v52 }
 0xe84   :  { %5388 = vmatpush3.bf16.msra.mxu0 %v5586_v43 }
 0xe85   :  { %5389 = vmatprep.subr.bf16.mxu0 %v5587_v28 }
 0xe88   :  { %5390 = vmatpush3.bf16.msra.mxu0 %v5587_v28 }
 0xf3e   :  { %v5361_v39 = vpop.f32.mrb[128].mxu0 }
 0xf3f   :  { %v3855_v12 = vpop.f32.mrb[129].mxu0  ;;  %v3920_v42 = vmax.f32 %v5361_v39, 0.0  ;;  %v5813_v39 = vld [vmem:[%s7686_s1 + $0x8] sm:$0xff]  }
 0xf40   :  { %v5362_v1 = vpop.f32.mrb[130].mxu0  ;;  %v3918_v35 = vmax.f32 %v3855_v12, 0.0  ;;  %v5814_v12 = vld [vmem:[%s7686_s1 + $0x10] sm:$0xff]  }
 0xf41   :  { %v3921_v33 = vmax.f32 %v5362_v1, 0.0  ;;  %v3858_v9 = vpop.f32.mrb[131].mxu0  ;;  %v5815_v1 = vld [vmem:[%s7686_s1 + $0x18] sm:$0xff]  }
 0xf42   :  { %v3919_v36 = vmax.f32 %v3858_v9, 0.0  ;;  %v5818_v9 = vld [vmem:[%s7686_s1 + $0x30] sm:$0xff]  }
 0xf43   :  { %v3935_v45 = vpack.c.bf16 %v3921_v33, %v3920_v42  ;;  %v5816_v42 = vld [vmem:[%s7686_s1 + $0x20] sm:$0xff]   ;;  %v5817_v33 = vld [vmem:[%s7686_s1 + $0x28] sm:$0xff]  }
 0xf44   :  { %v3934_v63 = vpack.c.bf16 %v3919_v36, %v3918_v35  ;;  %v5819_v35 = vld [vmem:[%s7686_s1 + $0x38] sm:$0xff]   ;;  %v4343_v36 = vld [vmem:[%s7697_s25] sm:$0xff] }
 0xf46   :  { %v5365_v53 = vpop.f32.mrb[132].mxu0  ;;  %5391 = vmatprep.mubr.bf16.mxu0 %v3934_v63 }
 0xf47   :  { %v3871_v37 = vpop.f32.mrb[133].mxu0  ;;  %5392 = vmatmul.mubr.bf16.vlgmr.msra.gmra.mrb[144].mxu0 %v3935_v45  ;;  %v3924_v26 = vmax.f32 %v5365_v53, 0.0  ;;  %v4344_v45 = vld [vmem:[%s7697_s25 + $0x8] sm:$0xff]  ;;  %v4345_v53 = vld [vmem:[%s7697_s25 + $0x10] sm:$0xff] }
 0xf48   :  { %v5366_v61 = vpop.f32.mrb[134].mxu0  ;;  %v3922_v49 = vmax.f32 %v3871_v37, 0.0  ;;  %v5450_v63 = vpack.c.bf16 %v4344_v45, %v4343_v36  ;;  %v4346_v37 = vld [vmem:[%s7697_s25 + $0x18] sm:$0xff] }
 0xf49   :  { %v3925_v47 = vmax.f32 %v5366_v61, 0.0  ;;  %v3874_v55 = vpop.f32.mrb[135].mxu0  ;;  %v5454_v61 = vpack.c.bf16 %v4346_v37, %v4345_v53 }
 0xf4a   :  { %v3923_v51 = vmax.f32 %v3874_v55, 0.0  ;;  %5451 = vmatprep.subr.bf16.mxu0 %v5450_v63 }
 0xf4b   :  { %v3937_v15 = vpack.c.bf16 %v3925_v47, %v3924_v26  ;;  %5453 = vmatpush3.bf16.msra.mxu0 %v5450_v63  ;;  %v7598_v26 = vld [vmem:[%s7698_s24] ss:$0 sm:$0xff] }
 0xf4c   :  { %v3936_v10 = vpack.c.bf16 %v3923_v51, %v3922_v49  ;;  %5455 = vmatprep.subr.bf16.mxu0 %v5454_v61 }
 0xf4e   :  { %v5369_v58 = vpop.f32.mrb[136].mxu0  ;;  %5395 = vmatprep.mubr.bf16.mxu0 %v3936_v10 }
 0xf4f   :  { %v3887_v0 = vpop.f32.mrb[137].mxu0  ;;  %5396 = vmatmul.mubr.bf16.gmra.mrb[148].mxu0 %v3937_v15  ;;  %v3928_v11 = vmax.f32 %v5369_v58, 0.0 }
 0xf50   :  { %v5370_v20 = vpop.f32.mrb[138].mxu0  ;;  %v3926_v2 = vmax.f32 %v3887_v0, 0.0  ;;  %5457 = vmatpush3.bf16.msra.mxu0 %v5454_v61 }
 0xf51   :  { %v3929_v59 = vmax.f32 %v5370_v20, 0.0  ;;  %v3890_v46 = vpop.f32.mrb[139].mxu0 }
 0xf52   :  { %v3927_v29 = vmax.f32 %v3890_v46, 0.0 }
 0xf53   :  { %v3939_v18 = vpack.c.bf16 %v3929_v59, %v3928_v11 }
 0xf54   :  { %v3938_v8 = vpack.c.bf16 %v3927_v29, %v3926_v2 }
 0xf56   :  { %v5373_v62 = vpop.f32.mrb[140].mxu0  ;;  %5399 = vmatprep.mubr.bf16.mxu0 %v3938_v8 }
 0xf57   :  { %v3903_v38 = vpop.f32.mrb[141].mxu0  ;;  %5400 = vmatmul.mubr.bf16.gmra.mrb[152].mxu0 %v3939_v18  ;;  %v3932_v19 = vmax.f32 %v5373_v62, 0.0 }
 0xf58   :  { %v5374_v13 = vpop.f32.mrb[142].mxu0  ;;  %v3930_v40 = vmax.f32 %v3903_v38, 0.0 }
 0xf59   :  { %v3933_v44 = vmax.f32 %v5374_v13, 0.0  ;;  %v3906_v21 = vpop.f32.mrb[143].mxu0 }
 0xf5a   :  { %v3931_v30 = vmax.f32 %v3906_v21, 0.0 }
 0xf5b   :  { %v3941_v60 = vpack.c.bf16 %v3933_v44, %v3932_v19 }
 0xf5c   :  { %v3940_v31 = vpack.c.bf16 %v3931_v30, %v3930_v40 }
 0xf5e   :  { %5403 = vmatprep.mubr.bf16.mxu0 %v3940_v31 }
 0xf5f   :  { %5404 = vmatmul.mubr.bf16.gmra.mrb[156].mxu0 %v3941_v60 }
0x101a   :  { %v5393_v16 = vpop.f32.mrb[144].mxu0 }
0x101b   :  { %v4024_v3 = vpop.f32.mrb[145].mxu0 }
0x101c   :  { %v5394_v50 = vpop.f32.mrb[146].mxu0 }
0x101d   :  { %v4088_v34 = vpack.c.bf16 %v5394_v50, %v5393_v16  ;;  %v4027_v5 = vpop.f32.mrb[147].mxu0 }
0x101e   :  { %v4087_v4 = vpack.c.bf16 %v4027_v5, %v4024_v3 }
0x1020   :  { %5407 = vmatprep.subr.bf16.mxu1 %v4087_v4 }
0x1021   :  { %5408 = vmatpush3.bf16.msra.mxu1 %v4087_v4 }
0x1022   :  { %v5397_v23 = vpop.f32.mrb[148].mxu0  ;;  %5409 = vmatprep.subr.bf16.mxu1 %v4088_v34 }
0x1023   :  { %v4040_v6 = vpop.f32.mrb[149].mxu0 }
0x1024   :  { %v5398_v57 = vpop.f32.mrb[150].mxu0 }
0x1025   :  { %v4090_v24 = vpack.c.bf16 %v5398_v57, %v5397_v23  ;;  %v4043_v25 = vpop.f32.mrb[151].mxu0  ;;  %5410 = vmatpush3.bf16.msra.mxu1 %v4088_v34 }
0x1026   :  { %v4089_v48 = vpack.c.bf16 %v4043_v25, %v4040_v6 }
0x1028   :  { %5411 = vmatprep.subr.bf16.mxu1 %v4089_v48 }
0x1029   :  { %5412 = vmatpush3.bf16.msra.mxu1 %v4089_v48 }
0x102a   :  { %v5401_v22 = vpop.f32.mrb[152].mxu0  ;;  %5413 = vmatprep.subr.bf16.mxu1 %v4090_v24 }
0x102b   :  { %v4056_v27 = vpop.f32.mrb[153].mxu0 }
0x102c   :  { %v5402_v56 = vpop.f32.mrb[154].mxu0 }
0x102d   :  { %v4092_v32 = vpack.c.bf16 %v5402_v56, %v5401_v22  ;;  %v4059_v14 = vpop.f32.mrb[155].mxu0  ;;  %5414 = vmatpush3.bf16.msra.mxu1 %v4090_v24 }
0x102e   :  { %v4091_v54 = vpack.c.bf16 %v4059_v14, %v4056_v27 }
0x1030   :  { %5415 = vmatprep.subr.bf16.mxu1 %v4091_v54 }
0x1031   :  { %5416 = vmatpush3.bf16.msra.mxu1 %v4091_v54 }
0x1032   :  { %v5405_v17 = vpop.f32.mrb[156].mxu0  ;;  %5417 = vmatprep.subr.bf16.mxu1 %v4092_v32 }
0x1033   :  { %v4072_v41 = vpop.f32.mrb[157].mxu0 }
0x1034   :  { %v5406_v7 = vpop.f32.mrb[158].mxu0 }
0x1035   :  { %v4094_v52 = vpack.c.bf16 %v5406_v7, %v5405_v17  ;;  %v4075_v43 = vpop.f32.mrb[159].mxu0  ;;  %5418 = vmatpush3.bf16.msra.mxu1 %v4092_v32 }
0x1036   :  { %v4093_v28 = vpack.c.bf16 %v4075_v43, %v4072_v41 }
0x1038   :  { %5419 = vmatprep.subr.bf16.mxu1 %v4093_v28 }
0x1039   :  { %5420 = vmatpush3.bf16.msra.mxu1 %v4093_v28 }
0x103a   :  { %5421 = vmatprep.subr.bf16.mxu1 %v4094_v52 }
0x103d   :  { %5422 = vmatpush3.bf16.msra.mxu1 %v4094_v52 }
0x1040   :  { %5424 = vmatmul.mubr.bf16.vlgmr.msra.gmra.mrb[144].mxu1 %v5813_v39 }
0x1041   :  { %5427 = vmatprep.mubr.bf16.mxu1 %v5814_v12 }
0x1048   :  { %5428 = vmatmul.mubr.bf16.gmra.mrb[148].mxu1 %v5815_v1 }
0x1049   :  { %5431 = vmatprep.mubr.bf16.mxu1 %v5816_v42 }
0x1050   :  { %5432 = vmatmul.mubr.bf16.gmra.mrb[152].mxu1 %v5817_v33 }
0x1051   :  { %5435 = vmatprep.mubr.bf16.mxu1 %v5818_v9 }
0x1058   :  { %5436 = vmatmul.mubr.bf16.gmra.mrb[156].mxu1 %v5819_v35 }
0x1113   :  { %v5425_v47 = vpop.f32.mrb[144].mxu1 }
0x1114   :  { %v4144_v55 = vadd.f32 %v5425_v47, %v7598_v26  ;;  %v4135_v49 = vpop.f32.mrb[145].mxu1 }
0x1115   :  { %v4136_v51 = vadd.f32 %v7598_v26, %v4135_v49  ;;  %v5426_v15 = vpop.f32.mrb[146].mxu1 }
0x1116   :  { %v4200_v10 = vmax.f32 %v4144_v55, 0.0  ;;  %v4147_v58 = vadd.f32 %v5426_v15, %v7598_v26  ;;  %v4138_v0 = vpop.f32.mrb[147].mxu1 }
0x1117   :  { %v4198_v20 = vmax.f32 %v4136_v51, 0.0  ;;  %v4139_v11 = vadd.f32 %v7598_v26, %v4138_v0 }
0x1118   :  { %v4228_v59 = vsel %vm925_vm2, %v4200_v10, 0.0  ;;  %v4201_v46 = vmax.f32 %v4147_v58, 0.0 }
0x1119   :  { %v4229_v2 = vrot.slane %v4228_v59, 4  ;;  %v4214_v29 = vsel %vm925_vm2, %v4198_v20, 0.0  ;;  %v4199_v18 = vmax.f32 %v4139_v11, 0.0 }
0x111a   :  { %v4215_v8 = vrot.slane %v4214_v29, 4  ;;  %v4235_v62 = vsel %vm925_vm2, %v4201_v46, 0.0 }
0x111b   :  { %v4230_v38 = vadd.f32 %v4229_v2, %v4228_v59  ;;  %v4236_v13 = vrot.slane %v4235_v62, 4  ;;  %v4221_v19 = vsel %vm925_vm2, %v4199_v18, 0.0  ;;  %v5429_v44 = vpop.f32.mrb[148].mxu1 }
0x111c   :  { %v4216_v21 = vadd.f32 %v4215_v8, %v4214_v29  ;;  %v4222_v40 = vrot.slane %v4221_v19, 4  ;;  %v4160_v30 = vadd.f32 %v5429_v44, %v7598_v26  ;;  %v4151_v60 = vpop.f32.mrb[149].mxu1 }
0x111d   :  { %v4231_v31 = vrot.slane %v4230_v38, 2  ;;  %v4237_v16 = vadd.f32 %v4236_v13, %v4235_v62  ;;  %v4152_v3 = vadd.f32 %v7598_v26, %v4151_v60  ;;  %v5430_v50 = vpop.f32.mrb[150].mxu1 }
0x111e   :  { %v4217_v34 = vrot.slane %v4216_v21, 2  ;;  %v4223_v5 = vadd.f32 %v4222_v40, %v4221_v19  ;;  %v4204_v4 = vmax.f32 %v4160_v30, 0.0  ;;  %v4163_v23 = vadd.f32 %v5430_v50, %v7598_v26  ;;  %v4154_v6 = vpop.f32.mrb[151].mxu1 }
0x111f   :  { %v4232_v57 = vadd.f32 %v4231_v31, %v4230_v38  ;;  %v4238_v24 = vrot.slane %v4237_v16, 2  ;;  %v4202_v25 = vmax.f32 %v4152_v3, 0.0  ;;  %v4155_v48 = vadd.f32 %v7598_v26, %v4154_v6 }
0x1120   :  { %v4218_v22 = vadd.f32 %v4217_v34, %v4216_v21  ;;  %v4224_v27 = vrot.slane %v4223_v5, 2  ;;  %v4256_v56 = vsel %vm925_vm2, %v4204_v4, 0.0  ;;  %v4205_v32 = vmax.f32 %v4163_v23, 0.0 }
0x1121   :  { %v4233_v14 = vrot.slane %v4232_v57, 1  ;;  %v4239_v54 = vadd.f32 %v4238_v24, %v4237_v16  ;;  %v4257_v17 = vrot.slane %v4256_v56, 4  ;;  %v4242_v41 = vsel %vm925_vm2, %v4202_v25, 0.0 }
0x1122   :  { %v4219_v7 = vrot.slane %v4218_v22, 1  ;;  %v4225_v52 = vadd.f32 %v4224_v27, %v4223_v5  ;;  %v4243_v43 = vrot.slane %v4242_v41, 4  ;;  %v4263_v28 = vsel %vm925_vm2, %v4205_v32, 0.0 }
0x1123   :  { %v4240_v39 = vrot.slane %v4239_v54, 1  ;;  %v4258_v12 = vadd.f32 %v4257_v17, %v4256_v56  ;;  %v4264_v1 = vrot.slane %v4263_v28, 4  ;;  %v5433_v42 = vpop.f32.mrb[152].mxu1  ;;  %v4203_v36 = vmax.f32 %v4155_v48, 0.0 }
0x1124   :  { %v4220_v33 = vadd.f32 %v4219_v7, %v4218_v22  ;;  %v4226_v9 = vrot.slane %v4225_v52, 1  ;;  %v4244_v35 = vadd.f32 %v4243_v43, %v4242_v41  ;;  %v4167_v45 = vpop.f32.mrb[153].mxu1  ;;  %v4234_v63 = vadd.f32 %v4233_v14, %v4232_v57 }
0x1125   :  { %v4259_v53 = vrot.slane %v4258_v12, 2  ;;  %v4265_v37 = vadd.f32 %v4264_v1, %v4263_v28  ;;  %v5434_v61 = vpop.f32.mrb[154].mxu1  ;;  %v4241_v47 = vadd.f32 %v4240_v39, %v4239_v54  ;;  %v4249_v51 = vsel %vm925_vm2, %v4203_v36, 0.0 }
0x1126   :  { %v4227_v55 = vadd.f32 %v4226_v9, %v4225_v52  ;;  %v4245_v49 = vrot.slane %v4244_v35, 2  ;;  %v4170_v15 = vpop.f32.mrb[155].mxu1  ;;  %v4327_v10 = vmul.f32 0.125, %v4220_v33  ;;  %v4250_v20 = vrot.slane %v4249_v51, 4 }
0x1127   :  { %v4260_v58 = vadd.f32 %v4259_v53, %v4258_v12  ;;  %v4266_v0 = vrot.slane %v4265_v37, 2  ;;  %v4176_v46 = vadd.f32 %v5433_v42, %v7598_v26  ;;  %v4168_v2 = vadd.f32 %v7598_v26, %v4167_v45 }
0x1128   :  { %v4328_v11 = vmul.f32 0.125, %v4227_v55  ;;  %v4246_v59 = vadd.f32 %v4245_v49, %v4244_v35  ;;  %v4251_v8 = vadd.f32 %v4250_v20, %v4249_v51  ;;  %v4179_v62 = vadd.f32 %v5434_v61, %v7598_v26 }
0x1129   :  { %v4261_v29 = vrot.slane %v4260_v58, 1  ;;  %v7618_v18 = vadd.f32 %v4266_v0, %v4265_v37  ;;  %v4208_v19 = vmax.f32 %v4176_v46, 0.0  ;;  %v4206_v44 = vmax.f32 %v4168_v2, 0.0 }
0x112a   :  { %v7622_v38 = vsel %vm4370_vm3, %v4328_v11, %v4327_v10  ;;  %v4247_v13 = vrot.slane %v4246_v59, 1  ;;  %v4252_v21 = vrot.slane %v4251_v8, 2  ;;  %v4209_v40 = vmax.f32 %v4179_v62, 0.0 }
0x112b   :  { %v5437_v30 = vpop.f32.mrb[156].mxu1  ;;  %v7624_v60 = vmul.f32 0.125, %v4234_v63  ;;  %v4284_v31 = vsel %vm925_vm2, %v4208_v19, 0.0  ;;  %v4270_v16 = vsel %vm925_vm2, %v4206_v44, 0.0  ;;  %v4171_v3 = vadd.f32 %v7598_v26, %v4170_v15 }
0x112c   :  { %v4183_v50 = vpop.f32.mrb[157].mxu1  ;;  %v7629_v34 = vmul.f32 0.125, %v4241_v47  ;;  %v4262_v5 = vadd.f32 %v4261_v29, %v4260_v58  ;;  %v4268_v4 = vrot.slane %v7618_v18, 1  ;;  %v4285_v23 = vrot.slane %v4284_v31, 4 }
0x112d   :  { %v5438_v6 = vpop.f32.mrb[158].mxu1  ;;  %v4248_v57 = vadd.f32 %v4247_v13, %v4246_v59  ;;  %v4271_v24 = vrot.slane %v4270_v16, 4  ;;  %v4291_v25 = vsel %vm925_vm2, %v4209_v40, 0.0  ;;  %v4207_v48 = vmax.f32 %v4171_v3, 0.0 }
0x112e   :  { %v4186_v22 = vpop.f32.mrb[159].mxu1  ;;  %v4253_v27 = vadd.f32 %v4252_v21, %v4251_v8  ;;  %v4286_v56 = vadd.f32 %v4285_v23, %v4284_v31  ;;  %v4292_v32 = vrot.slane %v4291_v25, 4  ;;  %v4192_v14 = vadd.f32 %v5437_v30, %v7598_v26 }
0x112f   :  { %v4272_v54 = vadd.f32 %v4271_v24, %v4270_v16  ;;  %v4277_v17 = vsel %vm925_vm2, %v4207_v48, 0.0  ;;  %v4184_v41 = vadd.f32 %v7598_v26, %v4183_v50  ;;  %v4195_v7 = vadd.f32 %v5438_v6, %v7598_v26 }
0x1130   :  { %v7637_v52 = vmul.f32 0.125, %v4262_v5  ;;  %v4287_v43 = vrot.slane %v4286_v56, 2  ;;  %v4293_v28 = vadd.f32 %v4292_v32, %v4291_v25  ;;  %v4278_v39 = vrot.slane %v4277_v17, 4 }
0x1131   :  { %v4273_v12 = vrot.slane %v4272_v54, 2  ;;  %v4212_v1 = vmax.f32 %v4192_v14, 0.0  ;;  %v4210_v42 = vmax.f32 %v4184_v41, 0.0  ;;  %v4213_v33 = vmax.f32 %v4195_v7, 0.0 }
0x1132   :  { %v4254_v9 = vrot.slane %v4253_v27, 1  ;;  %v4288_v35 = vadd.f32 %v4287_v43, %v4286_v56  ;;  %v4294_v36 = vrot.slane %v4293_v28, 2  ;;  %v4279_v45 = vadd.f32 %v4278_v39, %v4277_v17 }
0x1133   :  { %v4274_v63 = vadd.f32 %v4273_v12, %v4272_v54  ;;  %v4312_v53 = vsel %vm925_vm2, %v4212_v1, 0.0  ;;  %v4298_v37 = vsel %vm925_vm2, %v4210_v42, 0.0  ;;  %v4319_v61 = vsel %vm925_vm2, %v4213_v33, 0.0 }
0x1134   :  { %v4289_v47 = vrot.slane %v4288_v35, 1  ;;  %v4295_v55 = vadd.f32 %v4294_v36, %v4293_v28  ;;  %v4280_v49 = vrot.slane %v4279_v45, 2  ;;  %v4313_v51 = vrot.slane %v4312_v53, 4 }
0x1135   :  { %v4275_v15 = vrot.slane %v4274_v63, 1  ;;  %v4299_v10 = vrot.slane %v4298_v37, 4  ;;  %v4320_v58 = vrot.slane %v4319_v61, 4  ;;  %v4187_v0 = vadd.f32 %v7598_v26, %v4186_v22 }
0x1136   :  { %v4255_v20 = vadd.f32 %v4254_v9, %v4253_v27  ;;  %v4296_v11 = vrot.slane %v4295_v55, 1  ;;  %v4281_v59 = vadd.f32 %v4280_v49, %v4279_v45  ;;  %v4314_v46 = vadd.f32 %v4313_v51, %v4312_v53 }
0x1137   :  { %v4276_v2 = vadd.f32 %v4275_v15, %v4274_v63  ;;  %v4300_v29 = vadd.f32 %v4299_v10, %v4298_v37  ;;  %v4321_v8 = vadd.f32 %v4320_v58, %v4319_v61  ;;  %v4211_v62 = vmax.f32 %v4187_v0, 0.0 }
0x1138   :  { %v4331_v13 = vmul.f32 0.125, %v4248_v57  ;;  %v4290_v19 = vadd.f32 %v4289_v47, %v4288_v35  ;;  %v4282_v44 = vrot.slane %v4281_v59, 1  ;;  %v4315_v21 = vrot.slane %v4314_v46, 2  ;;  %v4623_v47 = vld [vmem:[%s7699_s26] ss:$0 sm:$0xff] }
0x1139   :  { %v4297_v40 = vadd.f32 %v4296_v11, %v4295_v55  ;;  %v4301_v30 = vrot.slane %v4300_v29, 2  ;;  %v4322_v31 = vrot.slane %v4321_v8, 2  ;;  %v4305_v16 = vsel %vm925_vm2, %v4211_v62, 0.0 }
0x113a   :  { %v4269_v26 = vadd.f32 %v4268_v4, %v7618_v18  ;;  %v4332_v3 = vmul.f32 0.125, %v4255_v20  ;;  %v4283_v50 = vadd.f32 %v4282_v44, %v4281_v59  ;;  %v4306_v5 = vrot.slane %v4305_v16, 4 }
0x113b   :  { %v4335_v23 = vmul.f32 0.125, %v4276_v2  ;;  %v4316_v6 = vadd.f32 %v4315_v21, %v4314_v46  ;;  %v4302_v24 = vadd.f32 %v4301_v30, %v4300_v29  ;;  %v4373_v57 = vsel %vm4372_vm4, %v7624_v60, %v7622_v38 }
0x113c   :  { %v4336_v25 = vmul.f32 0.125, %v4283_v50  ;;  %v4323_v48 = vadd.f32 %v4322_v31, %v4321_v8  ;;  %v4307_v22 = vadd.f32 %v4306_v5, %v4305_v16  ;;  %v4375_v27 = vsel %vm4374_vm5, %v7629_v34, %v4373_v57 }
0x113d   :  { %v4337_v56 = vmul.f32 0.125, %v4290_v19  ;;  %v4338_v32 = vmul.f32 0.125, %v4297_v40  ;;  %v4303_v14 = vrot.slane %v4302_v24, 1  ;;  %v4377_v18 = vsel %vm4376_vm6, %v4331_v13, %v4375_v27 }
0x113e   :  { %v4384_v4 = vsel %vm4370_vm3, %v4336_v25, %v4335_v23  ;;  %v4308_v54 = vrot.slane %v4307_v22, 2  ;;  %v4334_v17 = vmul.f32 0.125, %v4269_v26  ;;  %v4379_v41 = vsel %vm4378_vm7, %v4332_v3, %v4377_v18 }
0x113f   :  { %v4385_v7 = vsel %vm4372_vm4, %v4337_v56, %v4384_v4  ;;  %v4317_v38 = vrot.slane %v4316_v6, 1  ;;  %v4304_v60 = vadd.f32 %v4303_v14, %v4302_v24  ;;  %v4381_v43 = vsel %vm4380_vm8, %v7637_v52, %v4379_v41 }
0x1140   :  { %v4324_v28 = vrot.slane %v4323_v48, 1  ;;  %v4309_v34 = vadd.f32 %v4308_v54, %v4307_v22  ;;  %v4383_v39 = vsel %vm4382_vm9, %v4334_v17, %v4381_v43  ;;  %v4386_v12 = vsel %vm4374_vm5, %v4338_v32, %v4385_v7 }
0x1141   :  { %v4339_v1 = vmul.f32 0.125, %v4304_v60  ;;  %5447 = vmatprep.mubr.msk.f32.mxu0 %vm925_vm2, %v4383_v39  ;;  %v4318_v33 = vadd.f32 %v4317_v38, %v4316_v6 }
0x1142   :  { %v4310_v42 = vrot.slane %v4309_v34, 1  ;;  %v4325_v35 = vadd.f32 %v4324_v28, %v4323_v48 }
0x1143   :  { %v4387_v9 = vsel %vm4376_vm6, %v4339_v1, %v4386_v12  ;;  %v4341_v63 = vmul.f32 0.125, %v4318_v33 }
0x1144   :  { %v4311_v36 = vadd.f32 %v4310_v42, %v4309_v34  ;;  %v4342_v53 = vmul.f32 0.125, %v4325_v35 }
0x1146   :  { %v4340_v45 = vmul.f32 0.125, %v4311_v36 }
0x1148   :  { %v4388_v52 = vsel %vm4378_vm7, %v4340_v45, %v4387_v9 }
0x1149   :  { %v4389_v37 = vsel %vm4380_vm8, %v4341_v63, %v4388_v52 }
0x114a   :  { %v4390_v61 = vsel %vm4382_vm9, %v4342_v53, %v4389_v37 }
0x114b   :  { %5448 = vmatmul.mubr.msk.f32.vlgmr.msra.gmra.mrb[160].mxu0 %vm925_vm2, %v4390_v61 }
0x121e   :  { %v5449_v55 = vpop.f32.mrb[160].mxu0 }
0x121f   :  { %v4467_v49 = vadd.f32 %v5449_v55, %v4623_v47  ;;  %v4461_v51 = vpop.f32.mrb[161].mxu0 }
0x1220   :  { %v4462_v15 = vadd.f32 %v4623_v47, %v4461_v51 }
0x1221   :  { %4472 = vst.msk [vmem:[%s7700_s27 + $0x8] sm:$0xff] %vm4470_vm10, %v4467_v49 }
0x1222   :  { %4471 = vst.msk [vmem:[%s7700_s27] sm:$0xff] %vm4470_vm10, %v4462_v15 }

</bundles_post_ra>
